<compile_context>
chip_gen: v6e
topology: v6e:2x2x1
jax: 0.10.0
libtpu: 0.0.40
codegen_flags: <defaults>
</compile_context>

<pallas_src>
import functools

import jax
import jax.numpy as jnp
from jax.experimental import pallas as pl
from jax.experimental.pallas import tpu as pltpu

_LEAKY_SLOPE = 0.2


# ----------------------------------------------------------------------------
# helpers
# ----------------------------------------------------------------------------
def _round_up(x, m):
    return ((x + m - 1) // m) * m


def _pad_cout(c):
    """Lane-dense channel padding (multiple of 128), but only when the byte
    overhead is <= 2x (never triggered at dim=4)."""
    p = _round_up(c, 128)
    return p if p <= 2 * c else c


def _sigmoid(y):
    # exp and the (approx) reciprocal both go to the EUP slot: no VPU divide.
    return pl.reciprocal(1.0 + jnp.exp(-y), approx=True)


def _phase_split(x):
    """(B, H, W, C) -> stride-2 phase planes (B*4, H/2+1, W/2+1, C).

    Phase index = row_parity*2 + col_parity of the zero-padded image.  A conv
    tap (kh, kw) then reads a *contiguous* (Ho, Wo) window of a single phase
    plane, so the kernel needs no strided loads and no 16x im2col copy is
    ever materialized in HBM.
    """
    B, H, W, C = x.shape
    xp = jnp.pad(x, ((0, 0), (1, 1), (1, 1), (0, 0)))
    hh, wh = (H + 2) // 2, (W + 2) // 2
    ph = xp.reshape(B, hh, 2, wh, 2, C).transpose(0, 2, 4, 1, 3, 5)
    return ph.reshape(B * 4, hh, wh, C), hh, wh


# ----------------------------------------------------------------------------
# Pallas kernels
# ----------------------------------------------------------------------------
def _accumulate_taps(x_ref, w_ref, ho, wo, cin, cop):
    """Direct conv4x4/s2: accumulate 16 bf16 tap matmuls into an f32 acc.

    x_ref : (4, hh, wh, cin) bf16  -- 4 stride-2 phases of ONE padded image.
    w_ref : (16, cin, cop)   bf16  -- per-tap weight matrices.
    Returns (ho*wo, cop) float32 pre-activation (no bias).
    """
    m = ho * wo
    planes = [x_ref[t] for t in range(4)]            # each (hh, wh, cin)
    acc = jnp.zeros((m, cop), jnp.float32)
    for kh in range(4):
        for kw in range(4):
            win = planes[(kh % 2) * 2 + (kw % 2)][
                kh // 2:kh // 2 + ho, kw // 2:kw // 2 + wo, :]
            acc = acc + jnp.dot(win.reshape(m, cin), w_ref[kh * 4 + kw],
                                preferred_element_type=jnp.float32)
    return acc


def _conv_kernel(x_ref, w_ref, b_ref, o_ref, *, ho, wo, cin, cop):
    """Conv2d(4,2,1) + bias + LeakyReLU(0.2) for one batch element."""
    y = _accumulate_taps(x_ref, w_ref, ho, wo, cin, cop) + b_ref[...]
    y = jnp.where(y >= 0.0, y, _LEAKY_SLOPE * y)
    o_ref[0] = y.reshape(ho, wo, cop).astype(o_ref.dtype)


def _conv_head_kernel(x_ref, w_ref, b_ref, wl_ref, bl_ref, o_ref,
                      *, ho, wo, cin, cop):
    """Layer-4 Conv + Sigmoid fused with the Linear(F,1) + Sigmoid head.

    The (B, F) x (F, 1) linear would use a single MXU output lane and produce
    a lane-sparse (B, 1) store; instead do a VPU multiply + reduction here, so
    the layer-4 activation never round-trips through HBM.
    """
    y = _accumulate_taps(x_ref, w_ref, ho, wo, cin, cop) + b_ref[...]
    y = _sigmoid(y)                                         # (m, cop) f32
    z = jnp.sum(y * wl_ref[...], axis=1, keepdims=True)     # (m, 1)
    z = jnp.sum(z, axis=0, keepdims=True) + bl_ref[...]     # (1, 1)
    o_ref[0] = _sigmoid(z).astype(o_ref.dtype)


# ----------------------------------------------------------------------------
# pallas_call launchers
# ----------------------------------------------------------------------------
def conv4x4_s2_p1_lrelu(x, w_taps, b_row):
    """x: (B, H, W, Cin) bf16, w_taps: (16, Cin, Cop) bf16, b_row: (1, Cop) f32."""
    B, H, W, C = x.shape
    assert w_taps.shape[1] == C
    ho, wo = H // 2, W // 2
    cop = w_taps.shape[2]
    ph, hh, wh = _phase_split(x)
    kern = functools.partial(_conv_kernel, ho=ho, wo=wo, cin=C, cop=cop)
    return pl.pallas_call(
        kern,
        out_shape=jax.ShapeDtypeStruct((B, ho, wo, cop), jnp.bfloat16),
        grid=(B,),
        in_specs=[
            pl.BlockSpec((4, hh, wh, C), lambda b: (b, 0, 0, 0)),
            pl.BlockSpec((16, C, cop), lambda b: (0, 0, 0)),
            pl.BlockSpec((1, cop), lambda b: (0, 0)),
        ],
        out_specs=pl.BlockSpec((1, ho, wo, cop), lambda b: (b, 0, 0, 0)),
        compiler_params=pltpu.CompilerParams(
            dimension_semantics=("parallel",)),
    )(ph, w_taps, b_row)


def conv4_and_head(x, w_taps, b_row, wl_mat, bl):
    """Fused layer-4 conv + sigmoid + Linear(F,1) + sigmoid.  Returns (B, 1)."""
    B, H, W, C = x.shape
    assert w_taps.shape[1] == C
    ho, wo = H // 2, W // 2
    cop = w_taps.shape[2]
    ph, hh, wh = _phase_split(x)
    kern = functools.partial(_conv_head_kernel, ho=ho, wo=wo, cin=C, cop=cop)
    out = pl.pallas_call(
        kern,
        out_shape=jax.ShapeDtypeStruct((B, 1, 1), jnp.float32),
        grid=(B,),
        in_specs=[
            pl.BlockSpec((4, hh, wh, C), lambda b: (b, 0, 0, 0)),
            pl.BlockSpec((16, C, cop), lambda b: (0, 0, 0)),
            pl.BlockSpec((1, cop), lambda b: (0, 0)),
            pl.BlockSpec((ho * wo, cop), lambda b: (0, 0)),
            pl.BlockSpec((1, 1), lambda b: (0, 0)),
        ],
        out_specs=pl.BlockSpec((1, 1, 1), lambda b: (b, 0, 0)),
        compiler_params=pltpu.CompilerParams(
            dimension_semantics=("parallel",)),
    )(ph, w_taps, b_row, wl_mat, bl)
    return out.reshape(B, 1)


# ----------------------------------------------------------------------------
# Parameters: torch-layout init + one-time kernel-layout prep.
# ----------------------------------------------------------------------------
def init_params(key, img_size, dim):
    """Torch-layout (OIHW) parameters, like the nn.Module's state dict."""
    c_in = img_size[2]
    chans = [c_in, dim, 2 * dim, 4 * dim, 8 * dim]
    feat = 8 * dim * (img_size[0] // 16) * (img_size[1] // 16)
    keys = jax.random.split(key, 5)
    params = {}
    for layer in range(4):
        ci, co = chans[layer], chans[layer + 1]
        params[f"w{layer + 1}"] = 0.05 * jax.random.normal(
            keys[layer], (co, ci, 4, 4), jnp.float32)
        params[f"b{layer + 1}"] = jnp.zeros((co,), jnp.float32)
    params["wl"] = 0.05 * jax.random.normal(keys[4], (1, feat), jnp.float32)
    params["bl"] = jnp.zeros((1,), jnp.float32)
    return params


def prepare_params(raw, img_size, dim):
    """One-time conversion to kernel layouts: OIHW -> (16, Cin, Cout) tap
    matrices (bf16), padded channels, and the linear weight permuted to the
    kernel's (H, W, C) flatten order (torch flattens NCHW => (C, H, W))."""
    c_in = img_size[2]
    chans = [c_in, dim, 2 * dim, 4 * dim, 8 * dim]
    prepped = {}
    cin_pad = c_in                       # image channels are not padded
    for layer in range(4):
        cin, cout = chans[layer], chans[layer + 1]
        cop = _pad_cout(cout)
        w = raw[f"w{layer + 1}"]                           # (cout, cin, 4, 4)
        w_taps = jnp.transpose(w, (2, 3, 1, 0)).reshape(16, cin, cout)
        w_full = jnp.zeros((16, cin_pad, cop), jnp.float32)
        w_full = w_full.at[:, :cin, :cout].set(w_taps)
        prepped[f"w{layer + 1}"] = w_full.astype(jnp.bfloat16)
        b_full = jnp.zeros((1, cop), jnp.float32)
        prepped[f"b{layer + 1}"] = b_full.at[0, :cout].set(raw[f"b{layer + 1}"])
        cin_pad = cop
    h4, w4 = img_size[0] // 16, img_size[1] // 16
    c4, c4p = chans[4], _pad_cout(chans[4])
    wl = raw["wl"].reshape(c4, h4, w4).transpose(1, 2, 0).reshape(h4 * w4, c4)
    prepped["wl"] = jnp.zeros((h4 * w4, c4p), jnp.float32).at[:, :c4].set(wl)
    prepped["bl"] = raw["bl"].reshape(1, 1).astype(jnp.float32)
    return prepped


# ----------------------------------------------------------------------------
# Forward pass.
# ----------------------------------------------------------------------------
def discriminator2_forward(x_nchw, p):
    x = jnp.transpose(x_nchw, (0, 2, 3, 1)).astype(jnp.bfloat16)   # NCHW->NHWC
    x = conv4x4_s2_p1_lrelu(x, p["w1"], p["b1"])
    x = conv4x4_s2_p1_lrelu(x, p["w2"], p["b2"])
    x = conv4x4_s2_p1_lrelu(x, p["w3"], p["b3"])
    return conv4_and_head(x, p["w4"], p["b4"], p["wl"], p["bl"])   # (B, 1)


def reference_forward(x_nchw, raw):
    """Pure-JAX reference with torch semantics (for a sanity check)."""
    x = x_nchw.astype(jnp.float32)
    for layer in range(1, 5):
        w, b = raw[f"w{layer}"], raw[f"b{layer}"]
        x = jax.lax.conv_general_dilated(
            x, w, window_strides=(2, 2), padding=((1, 1), (1, 1)),
            dimension_numbers=("NCHW", "OIHW", "NCHW"))
        x = x + b.reshape(1, -1, 1, 1)
        x = jnp.where(x >= 0.0, x, _LEAKY_SLOPE * x) if layer < 4 else jax.nn.sigmoid(x)
    feat = x.reshape(x.shape[0], -1)
    return jax.nn.sigmoid(feat @ raw["wl"].T + raw["bl"])


if __name__ == "__main__":
    # Small config: img_size=(16, 16, 1) (powers of 2), dim=4, batch=2.
    img_size = (16, 16, 1)
    dim = 4
    batch = 2

    root = jax.random.PRNGKey(0)
    k_x, k_p = jax.random.split(root)
    x = jax.random.normal(k_x, (batch, img_size[2], img_size[0], img_size[1]),
                          jnp.float32)                    # NCHW like torch
    raw = init_params(k_p, img_size, dim)
    params = prepare_params(raw, img_size, dim)

    fwd = jax.jit(discriminator2_forward)
    out = jax.block_until_ready(fwd(x, params))
    assert out.shape == (batch, 1), out.shape
    assert bool(jnp.all(jnp.isfinite(out)))

    ref = reference_forward(x, raw)
    assert bool(jnp.allclose(out, ref, atol=3e-2, rtol=0.0)), (out, ref)
    print("KERNEL_OK")
</pallas_src>

<mosaic_0001>
module attributes {stable_mosaic.version = 11 : i64} {
  func.func @_conv_kernel(%arg0: i32, %arg1: memref<4x9x9x1xbf16, #tpu.memory_space<vmem>>, %arg2: memref<16x1x4xbf16, #tpu.memory_space<vmem>>, %arg3: memref<1x4xf32, #tpu.memory_space<vmem>>, %arg4: memref<1x8x8x4xbf16, #tpu.memory_space<vmem>>) attributes {dimension_semantics = [#tpu.dimension_semantics<parallel>], iteration_bounds = array<i64: 2>, scalar_prefetch = 0 : i64, scratch_operands = 0 : i64, tpu.core_type = #tpu.core_type<tc>, window_params = [{transform_indices = @transform_0, window_bounds = array<i64: 4, 9, 9, 1>}, {pipeline_mode = #tpu.pipeline_mode<synchronous>, transform_indices = @transform_1, window_bounds = array<i64: 16, 1, 4>}, {pipeline_mode = #tpu.pipeline_mode<synchronous>, transform_indices = @transform_2, window_bounds = array<i64: 1, 4>}, {transform_indices = @transform_3, window_bounds = array<i64: 1, 8, 8, 4>}]} {
    %c0 = arith.constant 0 : index
    %c0_0 = arith.constant 0 : index
    %c0_1 = arith.constant 0 : index
    %c0_2 = arith.constant 0 : index
    %0 = vector.load %arg1[%c0, %c0_0, %c0_1, %c0_2] : memref<4x9x9x1xbf16, #tpu.memory_space<vmem>>, vector<1x9x9x1xbf16>
    %1 = vector.shape_cast %0 : vector<1x9x9x1xbf16> to vector<9x9x1xbf16>
    %c1 = arith.constant 1 : index
    %c0_3 = arith.constant 0 : index
    %c0_4 = arith.constant 0 : index
    %c0_5 = arith.constant 0 : index
    %2 = vector.load %arg1[%c1, %c0_3, %c0_4, %c0_5] : memref<4x9x9x1xbf16, #tpu.memory_space<vmem>>, vector<1x9x9x1xbf16>
    %3 = vector.shape_cast %2 : vector<1x9x9x1xbf16> to vector<9x9x1xbf16>
    %c2 = arith.constant 2 : index
    %c0_6 = arith.constant 0 : index
    %c0_7 = arith.constant 0 : index
    %c0_8 = arith.constant 0 : index
    %4 = vector.load %arg1[%c2, %c0_6, %c0_7, %c0_8] : memref<4x9x9x1xbf16, #tpu.memory_space<vmem>>, vector<1x9x9x1xbf16>
    %5 = vector.shape_cast %4 : vector<1x9x9x1xbf16> to vector<9x9x1xbf16>
    %c3 = arith.constant 3 : index
    %c0_9 = arith.constant 0 : index
    %c0_10 = arith.constant 0 : index
    %c0_11 = arith.constant 0 : index
    %6 = vector.load %arg1[%c3, %c0_9, %c0_10, %c0_11] : memref<4x9x9x1xbf16, #tpu.memory_space<vmem>>, vector<1x9x9x1xbf16>
    %7 = vector.shape_cast %6 : vector<1x9x9x1xbf16> to vector<9x9x1xbf16>
    %cst = arith.constant 0.000000e+00 : f32
    %8 = vector.broadcast %cst : f32 to vector<64x4xf32>
    %9 = vector.extract_strided_slice %1 {offsets = [0, 0, 0], sizes = [8, 8, 1], strides = [1, 1, 1]} : vector<9x9x1xbf16> to vector<8x8x1xbf16>
    %10 = vector.shape_cast %9 : vector<8x8x1xbf16> to vector<64x1xbf16>
    %c0_12 = arith.constant 0 : index
    %c0_13 = arith.constant 0 : index
    %c0_14 = arith.constant 0 : index
    %11 = vector.load %arg2[%c0_12, %c0_13, %c0_14] : memref<16x1x4xbf16, #tpu.memory_space<vmem>>, vector<1x1x4xbf16>
    %12 = vector.shape_cast %11 : vector<1x1x4xbf16> to vector<1x4xbf16>
    %cst_15 = arith.constant dense<0.000000e+00> : vector<64x4xf32>
    %13 = tpu.matmul %10, %12, %cst_15 {dimension_numbers = #tpu.dot_dimension_numbers<[1], [0], [0], [1], [0, 0, 1, 1], [], []>} : vector<64x1xbf16>, vector<1x4xbf16>, vector<64x4xf32> -> vector<64x4xf32>
    %14 = arith.addf %8, %13 : vector<64x4xf32>
    %15 = vector.extract_strided_slice %3 {offsets = [0, 0, 0], sizes = [8, 8, 1], strides = [1, 1, 1]} : vector<9x9x1xbf16> to vector<8x8x1xbf16>
    %16 = vector.shape_cast %15 : vector<8x8x1xbf16> to vector<64x1xbf16>
    %c1_16 = arith.constant 1 : index
    %c0_17 = arith.constant 0 : index
    %c0_18 = arith.constant 0 : index
    %17 = vector.load %arg2[%c1_16, %c0_17, %c0_18] : memref<16x1x4xbf16, #tpu.memory_space<vmem>>, vector<1x1x4xbf16>
    %18 = vector.shape_cast %17 : vector<1x1x4xbf16> to vector<1x4xbf16>
    %cst_19 = arith.constant dense<0.000000e+00> : vector<64x4xf32>
    %19 = tpu.matmul %16, %18, %cst_19 {dimension_numbers = #tpu.dot_dimension_numbers<[1], [0], [0], [1], [0, 0, 1, 1], [], []>} : vector<64x1xbf16>, vector<1x4xbf16>, vector<64x4xf32> -> vector<64x4xf32>
    %20 = arith.addf %14, %19 : vector<64x4xf32>
    %21 = vector.extract_strided_slice %1 {offsets = [0, 1, 0], sizes = [8, 8, 1], strides = [1, 1, 1]} : vector<9x9x1xbf16> to vector<8x8x1xbf16>
    %22 = vector.shape_cast %21 : vector<8x8x1xbf16> to vector<64x1xbf16>
    %c2_20 = arith.constant 2 : index
    %c0_21 = arith.constant 0 : index
    %c0_22 = arith.constant 0 : index
    %23 = vector.load %arg2[%c2_20, %c0_21, %c0_22] : memref<16x1x4xbf16, #tpu.memory_space<vmem>>, vector<1x1x4xbf16>
    %24 = vector.shape_cast %23 : vector<1x1x4xbf16> to vector<1x4xbf16>
    %cst_23 = arith.constant dense<0.000000e+00> : vector<64x4xf32>
    %25 = tpu.matmul %22, %24, %cst_23 {dimension_numbers = #tpu.dot_dimension_numbers<[1], [0], [0], [1], [0, 0, 1, 1], [], []>} : vector<64x1xbf16>, vector<1x4xbf16>, vector<64x4xf32> -> vector<64x4xf32>
    %26 = arith.addf %20, %25 : vector<64x4xf32>
    %27 = vector.extract_strided_slice %3 {offsets = [0, 1, 0], sizes = [8, 8, 1], strides = [1, 1, 1]} : vector<9x9x1xbf16> to vector<8x8x1xbf16>
    %28 = vector.shape_cast %27 : vector<8x8x1xbf16> to vector<64x1xbf16>
    %c3_24 = arith.constant 3 : index
    %c0_25 = arith.constant 0 : index
    %c0_26 = arith.constant 0 : index
    %29 = vector.load %arg2[%c3_24, %c0_25, %c0_26] : memref<16x1x4xbf16, #tpu.memory_space<vmem>>, vector<1x1x4xbf16>
    %30 = vector.shape_cast %29 : vector<1x1x4xbf16> to vector<1x4xbf16>
    %cst_27 = arith.constant dense<0.000000e+00> : vector<64x4xf32>
    %31 = tpu.matmul %28, %30, %cst_27 {dimension_numbers = #tpu.dot_dimension_numbers<[1], [0], [0], [1], [0, 0, 1, 1], [], []>} : vector<64x1xbf16>, vector<1x4xbf16>, vector<64x4xf32> -> vector<64x4xf32>
    %32 = arith.addf %26, %31 : vector<64x4xf32>
    %33 = vector.extract_strided_slice %5 {offsets = [0, 0, 0], sizes = [8, 8, 1], strides = [1, 1, 1]} : vector<9x9x1xbf16> to vector<8x8x1xbf16>
    %34 = vector.shape_cast %33 : vector<8x8x1xbf16> to vector<64x1xbf16>
    %c4 = arith.constant 4 : index
    %c0_28 = arith.constant 0 : index
    %c0_29 = arith.constant 0 : index
    %35 = vector.load %arg2[%c4, %c0_28, %c0_29] : memref<16x1x4xbf16, #tpu.memory_space<vmem>>, vector<1x1x4xbf16>
    %36 = vector.shape_cast %35 : vector<1x1x4xbf16> to vector<1x4xbf16>
    %cst_30 = arith.constant dense<0.000000e+00> : vector<64x4xf32>
    %37 = tpu.matmul %34, %36, %cst_30 {dimension_numbers = #tpu.dot_dimension_numbers<[1], [0], [0], [1], [0, 0, 1, 1], [], []>} : vector<64x1xbf16>, vector<1x4xbf16>, vector<64x4xf32> -> vector<64x4xf32>
    %38 = arith.addf %32, %37 : vector<64x4xf32>
    %39 = vector.extract_strided_slice %7 {offsets = [0, 0, 0], sizes = [8, 8, 1], strides = [1, 1, 1]} : vector<9x9x1xbf16> to vector<8x8x1xbf16>
    %40 = vector.shape_cast %39 : vector<8x8x1xbf16> to vector<64x1xbf16>
    %c5 = arith.constant 5 : index
    %c0_31 = arith.constant 0 : index
    %c0_32 = arith.constant 0 : index
    %41 = vector.load %arg2[%c5, %c0_31, %c0_32] : memref<16x1x4xbf16, #tpu.memory_space<vmem>>, vector<1x1x4xbf16>
    %42 = vector.shape_cast %41 : vector<1x1x4xbf16> to vector<1x4xbf16>
    %cst_33 = arith.constant dense<0.000000e+00> : vector<64x4xf32>
    %43 = tpu.matmul %40, %42, %cst_33 {dimension_numbers = #tpu.dot_dimension_numbers<[1], [0], [0], [1], [0, 0, 1, 1], [], []>} : vector<64x1xbf16>, vector<1x4xbf16>, vector<64x4xf32> -> vector<64x4xf32>
    %44 = arith.addf %38, %43 : vector<64x4xf32>
    %45 = vector.extract_strided_slice %5 {offsets = [0, 1, 0], sizes = [8, 8, 1], strides = [1, 1, 1]} : vector<9x9x1xbf16> to vector<8x8x1xbf16>
    %46 = vector.shape_cast %45 : vector<8x8x1xbf16> to vector<64x1xbf16>
    %c6 = arith.constant 6 : index
    %c0_34 = arith.constant 0 : index
    %c0_35 = arith.constant 0 : index
    %47 = vector.load %arg2[%c6, %c0_34, %c0_35] : memref<16x1x4xbf16, #tpu.memory_space<vmem>>, vector<1x1x4xbf16>
    %48 = vector.shape_cast %47 : vector<1x1x4xbf16> to vector<1x4xbf16>
    %cst_36 = arith.constant dense<0.000000e+00> : vector<64x4xf32>
    %49 = tpu.matmul %46, %48, %cst_36 {dimension_numbers = #tpu.dot_dimension_numbers<[1], [0], [0], [1], [0, 0, 1, 1], [], []>} : vector<64x1xbf16>, vector<1x4xbf16>, vector<64x4xf32> -> vector<64x4xf32>
    %50 = arith.addf %44, %49 : vector<64x4xf32>
    %51 = vector.extract_strided_slice %7 {offsets = [0, 1, 0], sizes = [8, 8, 1], strides = [1, 1, 1]} : vector<9x9x1xbf16> to vector<8x8x1xbf16>
    %52 = vector.shape_cast %51 : vector<8x8x1xbf16> to vector<64x1xbf16>
    %c7 = arith.constant 7 : index
    %c0_37 = arith.constant 0 : index
    %c0_38 = arith.constant 0 : index
    %53 = vector.load %arg2[%c7, %c0_37, %c0_38] : memref<16x1x4xbf16, #tpu.memory_space<vmem>>, vector<1x1x4xbf16>
    %54 = vector.shape_cast %53 : vector<1x1x4xbf16> to vector<1x4xbf16>
    %cst_39 = arith.constant dense<0.000000e+00> : vector<64x4xf32>
    %55 = tpu.matmul %52, %54, %cst_39 {dimension_numbers = #tpu.dot_dimension_numbers<[1], [0], [0], [1], [0, 0, 1, 1], [], []>} : vector<64x1xbf16>, vector<1x4xbf16>, vector<64x4xf32> -> vector<64x4xf32>
    %56 = arith.addf %50, %55 : vector<64x4xf32>
    %57 = vector.extract_strided_slice %1 {offsets = [1, 0, 0], sizes = [8, 8, 1], strides = [1, 1, 1]} : vector<9x9x1xbf16> to vector<8x8x1xbf16>
    %58 = vector.shape_cast %57 : vector<8x8x1xbf16> to vector<64x1xbf16>
    %c8 = arith.constant 8 : index
    %c0_40 = arith.constant 0 : index
    %c0_41 = arith.constant 0 : index
    %59 = vector.load %arg2[%c8, %c0_40, %c0_41] : memref<16x1x4xbf16, #tpu.memory_space<vmem>>, vector<1x1x4xbf16>
    %60 = vector.shape_cast %59 : vector<1x1x4xbf16> to vector<1x4xbf16>
    %cst_42 = arith.constant dense<0.000000e+00> : vector<64x4xf32>
    %61 = tpu.matmul %58, %60, %cst_42 {dimension_numbers = #tpu.dot_dimension_numbers<[1], [0], [0], [1], [0, 0, 1, 1], [], []>} : vector<64x1xbf16>, vector<1x4xbf16>, vector<64x4xf32> -> vector<64x4xf32>
    %62 = arith.addf %56, %61 : vector<64x4xf32>
    %63 = vector.extract_strided_slice %3 {offsets = [1, 0, 0], sizes = [8, 8, 1], strides = [1, 1, 1]} : vector<9x9x1xbf16> to vector<8x8x1xbf16>
    %64 = vector.shape_cast %63 : vector<8x8x1xbf16> to vector<64x1xbf16>
    %c9 = arith.constant 9 : index
    %c0_43 = arith.constant 0 : index
    %c0_44 = arith.constant 0 : index
    %65 = vector.load %arg2[%c9, %c0_43, %c0_44] : memref<16x1x4xbf16, #tpu.memory_space<vmem>>, vector<1x1x4xbf16>
    %66 = vector.shape_cast %65 : vector<1x1x4xbf16> to vector<1x4xbf16>
    %cst_45 = arith.constant dense<0.000000e+00> : vector<64x4xf32>
    %67 = tpu.matmul %64, %66, %cst_45 {dimension_numbers = #tpu.dot_dimension_numbers<[1], [0], [0], [1], [0, 0, 1, 1], [], []>} : vector<64x1xbf16>, vector<1x4xbf16>, vector<64x4xf32> -> vector<64x4xf32>
    %68 = arith.addf %62, %67 : vector<64x4xf32>
    %69 = vector.extract_strided_slice %1 {offsets = [1, 1, 0], sizes = [8, 8, 1], strides = [1, 1, 1]} : vector<9x9x1xbf16> to vector<8x8x1xbf16>
    %70 = vector.shape_cast %69 : vector<8x8x1xbf16> to vector<64x1xbf16>
    %c10 = arith.constant 10 : index
    %c0_46 = arith.constant 0 : index
    %c0_47 = arith.constant 0 : index
    %71 = vector.load %arg2[%c10, %c0_46, %c0_47] : memref<16x1x4xbf16, #tpu.memory_space<vmem>>, vector<1x1x4xbf16>
    %72 = vector.shape_cast %71 : vector<1x1x4xbf16> to vector<1x4xbf16>
    %cst_48 = arith.constant dense<0.000000e+00> : vector<64x4xf32>
    %73 = tpu.matmul %70, %72, %cst_48 {dimension_numbers = #tpu.dot_dimension_numbers<[1], [0], [0], [1], [0, 0, 1, 1], [], []>} : vector<64x1xbf16>, vector<1x4xbf16>, vector<64x4xf32> -> vector<64x4xf32>
    %74 = arith.addf %68, %73 : vector<64x4xf32>
    %75 = vector.extract_strided_slice %3 {offsets = [1, 1, 0], sizes = [8, 8, 1], strides = [1, 1, 1]} : vector<9x9x1xbf16> to vector<8x8x1xbf16>
    %76 = vector.shape_cast %75 : vector<8x8x1xbf16> to vector<64x1xbf16>
    %c11 = arith.constant 11 : index
    %c0_49 = arith.constant 0 : index
    %c0_50 = arith.constant 0 : index
    %77 = vector.load %arg2[%c11, %c0_49, %c0_50] : memref<16x1x4xbf16, #tpu.memory_space<vmem>>, vector<1x1x4xbf16>
    %78 = vector.shape_cast %77 : vector<1x1x4xbf16> to vector<1x4xbf16>
    %cst_51 = arith.constant dense<0.000000e+00> : vector<64x4xf32>
    %79 = tpu.matmul %76, %78, %cst_51 {dimension_numbers = #tpu.dot_dimension_numbers<[1], [0], [0], [1], [0, 0, 1, 1], [], []>} : vector<64x1xbf16>, vector<1x4xbf16>, vector<64x4xf32> -> vector<64x4xf32>
    %80 = arith.addf %74, %79 : vector<64x4xf32>
    %81 = vector.extract_strided_slice %5 {offsets = [1, 0, 0], sizes = [8, 8, 1], strides = [1, 1, 1]} : vector<9x9x1xbf16> to vector<8x8x1xbf16>
    %82 = vector.shape_cast %81 : vector<8x8x1xbf16> to vector<64x1xbf16>
    %c12 = arith.constant 12 : index
    %c0_52 = arith.constant 0 : index
    %c0_53 = arith.constant 0 : index
    %83 = vector.load %arg2[%c12, %c0_52, %c0_53] : memref<16x1x4xbf16, #tpu.memory_space<vmem>>, vector<1x1x4xbf16>
    %84 = vector.shape_cast %83 : vector<1x1x4xbf16> to vector<1x4xbf16>
    %cst_54 = arith.constant dense<0.000000e+00> : vector<64x4xf32>
    %85 = tpu.matmul %82, %84, %cst_54 {dimension_numbers = #tpu.dot_dimension_numbers<[1], [0], [0], [1], [0, 0, 1, 1], [], []>} : vector<64x1xbf16>, vector<1x4xbf16>, vector<64x4xf32> -> vector<64x4xf32>
    %86 = arith.addf %80, %85 : vector<64x4xf32>
    %87 = vector.extract_strided_slice %7 {offsets = [1, 0, 0], sizes = [8, 8, 1], strides = [1, 1, 1]} : vector<9x9x1xbf16> to vector<8x8x1xbf16>
    %88 = vector.shape_cast %87 : vector<8x8x1xbf16> to vector<64x1xbf16>
    %c13 = arith.constant 13 : index
    %c0_55 = arith.constant 0 : index
    %c0_56 = arith.constant 0 : index
    %89 = vector.load %arg2[%c13, %c0_55, %c0_56] : memref<16x1x4xbf16, #tpu.memory_space<vmem>>, vector<1x1x4xbf16>
    %90 = vector.shape_cast %89 : vector<1x1x4xbf16> to vector<1x4xbf16>
    %cst_57 = arith.constant dense<0.000000e+00> : vector<64x4xf32>
    %91 = tpu.matmul %88, %90, %cst_57 {dimension_numbers = #tpu.dot_dimension_numbers<[1], [0], [0], [1], [0, 0, 1, 1], [], []>} : vector<64x1xbf16>, vector<1x4xbf16>, vector<64x4xf32> -> vector<64x4xf32>
    %92 = arith.addf %86, %91 : vector<64x4xf32>
    %93 = vector.extract_strided_slice %5 {offsets = [1, 1, 0], sizes = [8, 8, 1], strides = [1, 1, 1]} : vector<9x9x1xbf16> to vector<8x8x1xbf16>
    %94 = vector.shape_cast %93 : vector<8x8x1xbf16> to vector<64x1xbf16>
    %c14 = arith.constant 14 : index
    %c0_58 = arith.constant 0 : index
    %c0_59 = arith.constant 0 : index
    %95 = vector.load %arg2[%c14, %c0_58, %c0_59] : memref<16x1x4xbf16, #tpu.memory_space<vmem>>, vector<1x1x4xbf16>
    %96 = vector.shape_cast %95 : vector<1x1x4xbf16> to vector<1x4xbf16>
    %cst_60 = arith.constant dense<0.000000e+00> : vector<64x4xf32>
    %97 = tpu.matmul %94, %96, %cst_60 {dimension_numbers = #tpu.dot_dimension_numbers<[1], [0], [0], [1], [0, 0, 1, 1], [], []>} : vector<64x1xbf16>, vector<1x4xbf16>, vector<64x4xf32> -> vector<64x4xf32>
    %98 = arith.addf %92, %97 : vector<64x4xf32>
    %99 = vector.extract_strided_slice %7 {offsets = [1, 1, 0], sizes = [8, 8, 1], strides = [1, 1, 1]} : vector<9x9x1xbf16> to vector<8x8x1xbf16>
    %100 = vector.shape_cast %99 : vector<8x8x1xbf16> to vector<64x1xbf16>
    %c15 = arith.constant 15 : index
    %c0_61 = arith.constant 0 : index
    %c0_62 = arith.constant 0 : index
    %101 = vector.load %arg2[%c15, %c0_61, %c0_62] : memref<16x1x4xbf16, #tpu.memory_space<vmem>>, vector<1x1x4xbf16>
    %102 = vector.shape_cast %101 : vector<1x1x4xbf16> to vector<1x4xbf16>
    %cst_63 = arith.constant dense<0.000000e+00> : vector<64x4xf32>
    %103 = tpu.matmul %100, %102, %cst_63 {dimension_numbers = #tpu.dot_dimension_numbers<[1], [0], [0], [1], [0, 0, 1, 1], [], []>} : vector<64x1xbf16>, vector<1x4xbf16>, vector<64x4xf32> -> vector<64x4xf32>
    %104 = arith.addf %98, %103 : vector<64x4xf32>
    %c0_64 = arith.constant 0 : index
    %c0_65 = arith.constant 0 : index
    %105 = vector.load %arg3[%c0_64, %c0_65] : memref<1x4xf32, #tpu.memory_space<vmem>>, vector<1x4xf32>
    %106 = vector.broadcast %105 : vector<1x4xf32> to vector<64x4xf32>
    %107 = arith.addf %104, %106 : vector<64x4xf32>
    %cst_66 = arith.constant 0.000000e+00 : f32
    %108 = vector.broadcast %cst_66 : f32 to vector<64x4xf32>
    %109 = arith.cmpf oge, %107, %108 : vector<64x4xf32>
    %cst_67 = arith.constant 2.000000e-01 : f32
    %110 = vector.broadcast %cst_67 : f32 to vector<64x4xf32>
    %111 = arith.mulf %110, %107 : vector<64x4xf32>
    %112 = arith.select %109, %107, %111 : vector<64x4xi1>, vector<64x4xf32>
    %113 = vector.shape_cast %112 : vector<64x4xf32> to vector<8x8x4xf32>
    %114 = arith.truncf %113 : vector<8x8x4xf32> to vector<8x8x4xbf16>
    %c0_68 = arith.constant 0 : index
    %c0_69 = arith.constant 0 : index
    %c0_70 = arith.constant 0 : index
    %c0_71 = arith.constant 0 : index
    %115 = vector.load %arg4[%c0_68, %c0_69, %c0_70, %c0_71] : memref<1x8x8x4xbf16, #tpu.memory_space<vmem>>, vector<1x8x8x4xbf16>
    %116 = vector.shape_cast %115 : vector<1x8x8x4xbf16> to vector<8x8x4xbf16>
    %117 = vector.shape_cast %114 : vector<8x8x4xbf16> to vector<1x8x8x4xbf16>
    tpu.vector_store %arg4[%c0_68, %c0_69, %c0_70, %c0_71], %117 {strides = array<i32>} : memref<1x8x8x4xbf16, #tpu.memory_space<vmem>>, vector<1x8x8x4xbf16>,
    return
  }
  func.func @transform_0(%arg0: i32) -> (i32, i32, i32, i32) {
    %c0_i32 = arith.constant 0 : i32
    %c0_i32_0 = arith.constant 0 : i32
    %c0_i32_1 = arith.constant 0 : i32
    %c0_i32_2 = arith.constant 0 : i32
    return %arg0, %c0_i32, %c0_i32_0, %c0_i32_1 : i32, i32, i32, i32
  }
  func.func @transform_1(%arg0: i32) -> (i32, i32, i32) {
    %c0_i32 = arith.constant 0 : i32
    %c0_i32_0 = arith.constant 0 : i32
    %c0_i32_1 = arith.constant 0 : i32
    %c0_i32_2 = arith.constant 0 : i32
    return %c0_i32, %c0_i32_0, %c0_i32_1 : i32, i32, i32
  }
  func.func @transform_2(%arg0: i32) -> (i32, i32) {
    %c0_i32 = arith.constant 0 : i32
    %c0_i32_0 = arith.constant 0 : i32
    %c0_i32_1 = arith.constant 0 : i32
    return %c0_i32, %c0_i32_0 : i32, i32
  }
  func.func @transform_3(%arg0: i32) -> (i32, i32, i32, i32) {
    %c0_i32 = arith.constant 0 : i32
    %c0_i32_0 = arith.constant 0 : i32
    %c0_i32_1 = arith.constant 0 : i32
    %c0_i32_2 = arith.constant 0 : i32
    return %arg0, %c0_i32, %c0_i32_0, %c0_i32_1 : i32, i32, i32, i32
  }
}

module attributes {stable_mosaic.version = 11 : i64} {
  func.func @_conv_kernel(%arg0: i32, %arg1: memref<4x5x5x4xbf16, #tpu.memory_space<vmem>>, %arg2: memref<16x4x8xbf16, #tpu.memory_space<vmem>>, %arg3: memref<1x8xf32, #tpu.memory_space<vmem>>, %arg4: memref<1x4x4x8xbf16, #tpu.memory_space<vmem>>) attributes {dimension_semantics = [#tpu.dimension_semantics<parallel>], iteration_bounds = array<i64: 2>, scalar_prefetch = 0 : i64, scratch_operands = 0 : i64, tpu.core_type = #tpu.core_type<tc>, window_params = [{transform_indices = @transform_0, window_bounds = array<i64: 4, 5, 5, 4>}, {pipeline_mode = #tpu.pipeline_mode<synchronous>, transform_indices = @transform_1, window_bounds = array<i64: 16, 4, 8>}, {pipeline_mode = #tpu.pipeline_mode<synchronous>, transform_indices = @transform_2, window_bounds = array<i64: 1, 8>}, {transform_indices = @transform_3, window_bounds = array<i64: 1, 4, 4, 8>}]} {
    %c0 = arith.constant 0 : index
    %c0_0 = arith.constant 0 : index
    %c0_1 = arith.constant 0 : index
    %c0_2 = arith.constant 0 : index
    %0 = vector.load %arg1[%c0, %c0_0, %c0_1, %c0_2] : memref<4x5x5x4xbf16, #tpu.memory_space<vmem>>, vector<1x5x5x4xbf16>
    %1 = vector.shape_cast %0 : vector<1x5x5x4xbf16> to vector<5x5x4xbf16>
    %c1 = arith.constant 1 : index
    %c0_3 = arith.constant 0 : index
    %c0_4 = arith.constant 0 : index
    %c0_5 = arith.constant 0 : index
    %2 = vector.load %arg1[%c1, %c0_3, %c0_4, %c0_5] : memref<4x5x5x4xbf16, #tpu.memory_space<vmem>>, vector<1x5x5x4xbf16>
    %3 = vector.shape_cast %2 : vector<1x5x5x4xbf16> to vector<5x5x4xbf16>
    %c2 = arith.constant 2 : index
    %c0_6 = arith.constant 0 : index
    %c0_7 = arith.constant 0 : index
    %c0_8 = arith.constant 0 : index
    %4 = vector.load %arg1[%c2, %c0_6, %c0_7, %c0_8] : memref<4x5x5x4xbf16, #tpu.memory_space<vmem>>, vector<1x5x5x4xbf16>
    %5 = vector.shape_cast %4 : vector<1x5x5x4xbf16> to vector<5x5x4xbf16>
    %c3 = arith.constant 3 : index
    %c0_9 = arith.constant 0 : index
    %c0_10 = arith.constant 0 : index
    %c0_11 = arith.constant 0 : index
    %6 = vector.load %arg1[%c3, %c0_9, %c0_10, %c0_11] : memref<4x5x5x4xbf16, #tpu.memory_space<vmem>>, vector<1x5x5x4xbf16>
    %7 = vector.shape_cast %6 : vector<1x5x5x4xbf16> to vector<5x5x4xbf16>
    %cst = arith.constant 0.000000e+00 : f32
    %8 = vector.broadcast %cst : f32 to vector<16x8xf32>
    %9 = vector.extract_strided_slice %1 {offsets = [0, 0, 0], sizes = [4, 4, 4], strides = [1, 1, 1]} : vector<5x5x4xbf16> to vector<4x4x4xbf16>
    %10 = vector.shape_cast %9 : vector<4x4x4xbf16> to vector<16x4xbf16>
    %c0_12 = arith.constant 0 : index
    %c0_13 = arith.constant 0 : index
    %c0_14 = arith.constant 0 : index
    %11 = vector.load %arg2[%c0_12, %c0_13, %c0_14] : memref<16x4x8xbf16, #tpu.memory_space<vmem>>, vector<1x4x8xbf16>
    %12 = vector.shape_cast %11 : vector<1x4x8xbf16> to vector<4x8xbf16>
    %cst_15 = arith.constant dense<0.000000e+00> : vector<16x8xf32>
    %13 = tpu.matmul %10, %12, %cst_15 {dimension_numbers = #tpu.dot_dimension_numbers<[1], [0], [0], [1], [0, 0, 1, 1], [], []>} : vector<16x4xbf16>, vector<4x8xbf16>, vector<16x8xf32> -> vector<16x8xf32>
    %14 = arith.addf %8, %13 : vector<16x8xf32>
    %15 = vector.extract_strided_slice %3 {offsets = [0, 0, 0], sizes = [4, 4, 4], strides = [1, 1, 1]} : vector<5x5x4xbf16> to vector<4x4x4xbf16>
    %16 = vector.shape_cast %15 : vector<4x4x4xbf16> to vector<16x4xbf16>
    %c1_16 = arith.constant 1 : index
    %c0_17 = arith.constant 0 : index
    %c0_18 = arith.constant 0 : index
    %17 = vector.load %arg2[%c1_16, %c0_17, %c0_18] : memref<16x4x8xbf16, #tpu.memory_space<vmem>>, vector<1x4x8xbf16>
    %18 = vector.shape_cast %17 : vector<1x4x8xbf16> to vector<4x8xbf16>
    %cst_19 = arith.constant dense<0.000000e+00> : vector<16x8xf32>
    %19 = tpu.matmul %16, %18, %cst_19 {dimension_numbers = #tpu.dot_dimension_numbers<[1], [0], [0], [1], [0, 0, 1, 1], [], []>} : vector<16x4xbf16>, vector<4x8xbf16>, vector<16x8xf32> -> vector<16x8xf32>
    %20 = arith.addf %14, %19 : vector<16x8xf32>
    %21 = vector.extract_strided_slice %1 {offsets = [0, 1, 0], sizes = [4, 4, 4], strides = [1, 1, 1]} : vector<5x5x4xbf16> to vector<4x4x4xbf16>
    %22 = vector.shape_cast %21 : vector<4x4x4xbf16> to vector<16x4xbf16>
    %c2_20 = arith.constant 2 : index
    %c0_21 = arith.constant 0 : index
    %c0_22 = arith.constant 0 : index
    %23 = vector.load %arg2[%c2_20, %c0_21, %c0_22] : memref<16x4x8xbf16, #tpu.memory_space<vmem>>, vector<1x4x8xbf16>
    %24 = vector.shape_cast %23 : vector<1x4x8xbf16> to vector<4x8xbf16>
    %cst_23 = arith.constant dense<0.000000e+00> : vector<16x8xf32>
    %25 = tpu.matmul %22, %24, %cst_23 {dimension_numbers = #tpu.dot_dimension_numbers<[1], [0], [0], [1], [0, 0, 1, 1], [], []>} : vector<16x4xbf16>, vector<4x8xbf16>, vector<16x8xf32> -> vector<16x8xf32>
    %26 = arith.addf %20, %25 : vector<16x8xf32>
    %27 = vector.extract_strided_slice %3 {offsets = [0, 1, 0], sizes = [4, 4, 4], strides = [1, 1, 1]} : vector<5x5x4xbf16> to vector<4x4x4xbf16>
    %28 = vector.shape_cast %27 : vector<4x4x4xbf16> to vector<16x4xbf16>
    %c3_24 = arith.constant 3 : index
    %c0_25 = arith.constant 0 : index
    %c0_26 = arith.constant 0 : index
    %29 = vector.load %arg2[%c3_24, %c0_25, %c0_26] : memref<16x4x8xbf16, #tpu.memory_space<vmem>>, vector<1x4x8xbf16>
    %30 = vector.shape_cast %29 : vector<1x4x8xbf16> to vector<4x8xbf16>
    %cst_27 = arith.constant dense<0.000000e+00> : vector<16x8xf32>
    %31 = tpu.matmul %28, %30, %cst_27 {dimension_numbers = #tpu.dot_dimension_numbers<[1], [0], [0], [1], [0, 0, 1, 1], [], []>} : vector<16x4xbf16>, vector<4x8xbf16>, vector<16x8xf32> -> vector<16x8xf32>
    %32 = arith.addf %26, %31 : vector<16x8xf32>
    %33 = vector.extract_strided_slice %5 {offsets = [0, 0, 0], sizes = [4, 4, 4], strides = [1, 1, 1]} : vector<5x5x4xbf16> to vector<4x4x4xbf16>
    %34 = vector.shape_cast %33 : vector<4x4x4xbf16> to vector<16x4xbf16>
    %c4 = arith.constant 4 : index
    %c0_28 = arith.constant 0 : index
    %c0_29 = arith.constant 0 : index
    %35 = vector.load %arg2[%c4, %c0_28, %c0_29] : memref<16x4x8xbf16, #tpu.memory_space<vmem>>, vector<1x4x8xbf16>
    %36 = vector.shape_cast %35 : vector<1x4x8xbf16> to vector<4x8xbf16>
    %cst_30 = arith.constant dense<0.000000e+00> : vector<16x8xf32>
    %37 = tpu.matmul %34, %36, %cst_30 {dimension_numbers = #tpu.dot_dimension_numbers<[1], [0], [0], [1], [0, 0, 1, 1], [], []>} : vector<16x4xbf16>, vector<4x8xbf16>, vector<16x8xf32> -> vector<16x8xf32>
    %38 = arith.addf %32, %37 : vector<16x8xf32>
    %39 = vector.extract_strided_slice %7 {offsets = [0, 0, 0], sizes = [4, 4, 4], strides = [1, 1, 1]} : vector<5x5x4xbf16> to vector<4x4x4xbf16>
    %40 = vector.shape_cast %39 : vector<4x4x4xbf16> to vector<16x4xbf16>
    %c5 = arith.constant 5 : index
    %c0_31 = arith.constant 0 : index
    %c0_32 = arith.constant 0 : index
    %41 = vector.load %arg2[%c5, %c0_31, %c0_32] : memref<16x4x8xbf16, #tpu.memory_space<vmem>>, vector<1x4x8xbf16>
    %42 = vector.shape_cast %41 : vector<1x4x8xbf16> to vector<4x8xbf16>
    %cst_33 = arith.constant dense<0.000000e+00> : vector<16x8xf32>
    %43 = tpu.matmul %40, %42, %cst_33 {dimension_numbers = #tpu.dot_dimension_numbers<[1], [0], [0], [1], [0, 0, 1, 1], [], []>} : vector<16x4xbf16>, vector<4x8xbf16>, vector<16x8xf32> -> vector<16x8xf32>
    %44 = arith.addf %38, %43 : vector<16x8xf32>
    %45 = vector.extract_strided_slice %5 {offsets = [0, 1, 0], sizes = [4, 4, 4], strides = [1, 1, 1]} : vector<5x5x4xbf16> to vector<4x4x4xbf16>
    %46 = vector.shape_cast %45 : vector<4x4x4xbf16> to vector<16x4xbf16>
    %c6 = arith.constant 6 : index
    %c0_34 = arith.constant 0 : index
    %c0_35 = arith.constant 0 : index
    %47 = vector.load %arg2[%c6, %c0_34, %c0_35] : memref<16x4x8xbf16, #tpu.memory_space<vmem>>, vector<1x4x8xbf16>
    %48 = vector.shape_cast %47 : vector<1x4x8xbf16> to vector<4x8xbf16>
    %cst_36 = arith.constant dense<0.000000e+00> : vector<16x8xf32>
    %49 = tpu.matmul %46, %48, %cst_36 {dimension_numbers = #tpu.dot_dimension_numbers<[1], [0], [0], [1], [0, 0, 1, 1], [], []>} : vector<16x4xbf16>, vector<4x8xbf16>, vector<16x8xf32> -> vector<16x8xf32>
    %50 = arith.addf %44, %49 : vector<16x8xf32>
    %51 = vector.extract_strided_slice %7 {offsets = [0, 1, 0], sizes = [4, 4, 4], strides = [1, 1, 1]} : vector<5x5x4xbf16> to vector<4x4x4xbf16>
    %52 = vector.shape_cast %51 : vector<4x4x4xbf16> to vector<16x4xbf16>
    %c7 = arith.constant 7 : index
    %c0_37 = arith.constant 0 : index
    %c0_38 = arith.constant 0 : index
    %53 = vector.load %arg2[%c7, %c0_37, %c0_38] : memref<16x4x8xbf16, #tpu.memory_space<vmem>>, vector<1x4x8xbf16>
    %54 = vector.shape_cast %53 : vector<1x4x8xbf16> to vector<4x8xbf16>
    %cst_39 = arith.constant dense<0.000000e+00> : vector<16x8xf32>
    %55 = tpu.matmul %52, %54, %cst_39 {dimension_numbers = #tpu.dot_dimension_numbers<[1], [0], [0], [1], [0, 0, 1, 1], [], []>} : vector<16x4xbf16>, vector<4x8xbf16>, vector<16x8xf32> -> vector<16x8xf32>
    %56 = arith.addf %50, %55 : vector<16x8xf32>
    %57 = vector.extract_strided_slice %1 {offsets = [1, 0, 0], sizes = [4, 4, 4], strides = [1, 1, 1]} : vector<5x5x4xbf16> to vector<4x4x4xbf16>
    %58 = vector.shape_cast %57 : vector<4x4x4xbf16> to vector<16x4xbf16>
    %c8 = arith.constant 8 : index
    %c0_40 = arith.constant 0 : index
    %c0_41 = arith.constant 0 : index
    %59 = vector.load %arg2[%c8, %c0_40, %c0_41] : memref<16x4x8xbf16, #tpu.memory_space<vmem>>, vector<1x4x8xbf16>
    %60 = vector.shape_cast %59 : vector<1x4x8xbf16> to vector<4x8xbf16>
    %cst_42 = arith.constant dense<0.000000e+00> : vector<16x8xf32>
    %61 = tpu.matmul %58, %60, %cst_42 {dimension_numbers = #tpu.dot_dimension_numbers<[1], [0], [0], [1], [0, 0, 1, 1], [], []>} : vector<16x4xbf16>, vector<4x8xbf16>, vector<16x8xf32> -> vector<16x8xf32>
    %62 = arith.addf %56, %61 : vector<16x8xf32>
    %63 = vector.extract_strided_slice %3 {offsets = [1, 0, 0], sizes = [4, 4, 4], strides = [1, 1, 1]} : vector<5x5x4xbf16> to vector<4x4x4xbf16>
    %64 = vector.shape_cast %63 : vector<4x4x4xbf16> to vector<16x4xbf16>
    %c9 = arith.constant 9 : index
    %c0_43 = arith.constant 0 : index
    %c0_44 = arith.constant 0 : index
    %65 = vector.load %arg2[%c9, %c0_43, %c0_44] : memref<16x4x8xbf16, #tpu.memory_space<vmem>>, vector<1x4x8xbf16>
    %66 = vector.shape_cast %65 : vector<1x4x8xbf16> to vector<4x8xbf16>
    %cst_45 = arith.constant dense<0.000000e+00> : vector<16x8xf32>
    %67 = tpu.matmul %64, %66, %cst_45 {dimension_numbers = #tpu.dot_dimension_numbers<[1], [0], [0], [1], [0, 0, 1, 1], [], []>} : vector<16x4xbf16>, vector<4x8xbf16>, vector<16x8xf32> -> vector<16x8xf32>
    %68 = arith.addf %62, %67 : vector<16x8xf32>
    %69 = vector.extract_strided_slice %1 {offsets = [1, 1, 0], sizes = [4, 4, 4], strides = [1, 1, 1]} : vector<5x5x4xbf16> to vector<4x4x4xbf16>
    %70 = vector.shape_cast %69 : vector<4x4x4xbf16> to vector<16x4xbf16>
    %c10 = arith.constant 10 : index
    %c0_46 = arith.constant 0 : index
    %c0_47 = arith.constant 0 : index
    %71 = vector.load %arg2[%c10, %c0_46, %c0_47] : memref<16x4x8xbf16, #tpu.memory_space<vmem>>, vector<1x4x8xbf16>
    %72 = vector.shape_cast %71 : vector<1x4x8xbf16> to vector<4x8xbf16>
    %cst_48 = arith.constant dense<0.000000e+00> : vector<16x8xf32>
    %73 = tpu.matmul %70, %72, %cst_48 {dimension_numbers = #tpu.dot_dimension_numbers<[1], [0], [0], [1], [0, 0, 1, 1], [], []>} : vector<16x4xbf16>, vector<4x8xbf16>, vector<16x8xf32> -> vector<16x8xf32>
    %74 = arith.addf %68, %73 : vector<16x8xf32>
    %75 = vector.extract_strided_slice %3 {offsets = [1, 1, 0], sizes = [4, 4, 4], strides = [1, 1, 1]} : vector<5x5x4xbf16> to vector<4x4x4xbf16>
    %76 = vector.shape_cast %75 : vector<4x4x4xbf16> to vector<16x4xbf16>
    %c11 = arith.constant 11 : index
    %c0_49 = arith.constant 0 : index
    %c0_50 = arith.constant 0 : index
    %77 = vector.load %arg2[%c11, %c0_49, %c0_50] : memref<16x4x8xbf16, #tpu.memory_space<vmem>>, vector<1x4x8xbf16>
    %78 = vector.shape_cast %77 : vector<1x4x8xbf16> to vector<4x8xbf16>
    %cst_51 = arith.constant dense<0.000000e+00> : vector<16x8xf32>
    %79 = tpu.matmul %76, %78, %cst_51 {dimension_numbers = #tpu.dot_dimension_numbers<[1], [0], [0], [1], [0, 0, 1, 1], [], []>} : vector<16x4xbf16>, vector<4x8xbf16>, vector<16x8xf32> -> vector<16x8xf32>
    %80 = arith.addf %74, %79 : vector<16x8xf32>
    %81 = vector.extract_strided_slice %5 {offsets = [1, 0, 0], sizes = [4, 4, 4], strides = [1, 1, 1]} : vector<5x5x4xbf16> to vector<4x4x4xbf16>
    %82 = vector.shape_cast %81 : vector<4x4x4xbf16> to vector<16x4xbf16>
    %c12 = arith.constant 12 : index
    %c0_52 = arith.constant 0 : index
    %c0_53 = arith.constant 0 : index
    %83 = vector.load %arg2[%c12, %c0_52, %c0_53] : memref<16x4x8xbf16, #tpu.memory_space<vmem>>, vector<1x4x8xbf16>
    %84 = vector.shape_cast %83 : vector<1x4x8xbf16> to vector<4x8xbf16>
    %cst_54 = arith.constant dense<0.000000e+00> : vector<16x8xf32>
    %85 = tpu.matmul %82, %84, %cst_54 {dimension_numbers = #tpu.dot_dimension_numbers<[1], [0], [0], [1], [0, 0, 1, 1], [], []>} : vector<16x4xbf16>, vector<4x8xbf16>, vector<16x8xf32> -> vector<16x8xf32>
    %86 = arith.addf %80, %85 : vector<16x8xf32>
    %87 = vector.extract_strided_slice %7 {offsets = [1, 0, 0], sizes = [4, 4, 4], strides = [1, 1, 1]} : vector<5x5x4xbf16> to vector<4x4x4xbf16>
    %88 = vector.shape_cast %87 : vector<4x4x4xbf16> to vector<16x4xbf16>
    %c13 = arith.constant 13 : index
    %c0_55 = arith.constant 0 : index
    %c0_56 = arith.constant 0 : index
    %89 = vector.load %arg2[%c13, %c0_55, %c0_56] : memref<16x4x8xbf16, #tpu.memory_space<vmem>>, vector<1x4x8xbf16>
    %90 = vector.shape_cast %89 : vector<1x4x8xbf16> to vector<4x8xbf16>
    %cst_57 = arith.constant dense<0.000000e+00> : vector<16x8xf32>
    %91 = tpu.matmul %88, %90, %cst_57 {dimension_numbers = #tpu.dot_dimension_numbers<[1], [0], [0], [1], [0, 0, 1, 1], [], []>} : vector<16x4xbf16>, vector<4x8xbf16>, vector<16x8xf32> -> vector<16x8xf32>
    %92 = arith.addf %86, %91 : vector<16x8xf32>
    %93 = vector.extract_strided_slice %5 {offsets = [1, 1, 0], sizes = [4, 4, 4], strides = [1, 1, 1]} : vector<5x5x4xbf16> to vector<4x4x4xbf16>
    %94 = vector.shape_cast %93 : vector<4x4x4xbf16> to vector<16x4xbf16>
    %c14 = arith.constant 14 : index
    %c0_58 = arith.constant 0 : index
    %c0_59 = arith.constant 0 : index
    %95 = vector.load %arg2[%c14, %c0_58, %c0_59] : memref<16x4x8xbf16, #tpu.memory_space<vmem>>, vector<1x4x8xbf16>
    %96 = vector.shape_cast %95 : vector<1x4x8xbf16> to vector<4x8xbf16>
    %cst_60 = arith.constant dense<0.000000e+00> : vector<16x8xf32>
    %97 = tpu.matmul %94, %96, %cst_60 {dimension_numbers = #tpu.dot_dimension_numbers<[1], [0], [0], [1], [0, 0, 1, 1], [], []>} : vector<16x4xbf16>, vector<4x8xbf16>, vector<16x8xf32> -> vector<16x8xf32>
    %98 = arith.addf %92, %97 : vector<16x8xf32>
    %99 = vector.extract_strided_slice %7 {offsets = [1, 1, 0], sizes = [4, 4, 4], strides = [1, 1, 1]} : vector<5x5x4xbf16> to vector<4x4x4xbf16>
    %100 = vector.shape_cast %99 : vector<4x4x4xbf16> to vector<16x4xbf16>
    %c15 = arith.constant 15 : index
    %c0_61 = arith.constant 0 : index
    %c0_62 = arith.constant 0 : index
    %101 = vector.load %arg2[%c15, %c0_61, %c0_62] : memref<16x4x8xbf16, #tpu.memory_space<vmem>>, vector<1x4x8xbf16>
    %102 = vector.shape_cast %101 : vector<1x4x8xbf16> to vector<4x8xbf16>
    %cst_63 = arith.constant dense<0.000000e+00> : vector<16x8xf32>
    %103 = tpu.matmul %100, %102, %cst_63 {dimension_numbers = #tpu.dot_dimension_numbers<[1], [0], [0], [1], [0, 0, 1, 1], [], []>} : vector<16x4xbf16>, vector<4x8xbf16>, vector<16x8xf32> -> vector<16x8xf32>
    %104 = arith.addf %98, %103 : vector<16x8xf32>
    %c0_64 = arith.constant 0 : index
    %c0_65 = arith.constant 0 : index
    %105 = vector.load %arg3[%c0_64, %c0_65] : memref<1x8xf32, #tpu.memory_space<vmem>>, vector<1x8xf32>
    %106 = vector.broadcast %105 : vector<1x8xf32> to vector<16x8xf32>
    %107 = arith.addf %104, %106 : vector<16x8xf32>
    %cst_66 = arith.constant 0.000000e+00 : f32
    %108 = vector.broadcast %cst_66 : f32 to vector<16x8xf32>
    %109 = arith.cmpf oge, %107, %108 : vector<16x8xf32>
    %cst_67 = arith.constant 2.000000e-01 : f32
    %110 = vector.broadcast %cst_67 : f32 to vector<16x8xf32>
    %111 = arith.mulf %110, %107 : vector<16x8xf32>
    %112 = arith.select %109, %107, %111 : vector<16x8xi1>, vector<16x8xf32>
    %113 = vector.shape_cast %112 : vector<16x8xf32> to vector<4x4x8xf32>
    %114 = arith.truncf %113 : vector<4x4x8xf32> to vector<4x4x8xbf16>
    %c0_68 = arith.constant 0 : index
    %c0_69 = arith.constant 0 : index
    %c0_70 = arith.constant 0 : index
    %c0_71 = arith.constant 0 : index
    %115 = vector.load %arg4[%c0_68, %c0_69, %c0_70, %c0_71] : memref<1x4x4x8xbf16, #tpu.memory_space<vmem>>, vector<1x4x4x8xbf16>
    %116 = vector.shape_cast %115 : vector<1x4x4x8xbf16> to vector<4x4x8xbf16>
    %117 = vector.shape_cast %114 : vector<4x4x8xbf16> to vector<1x4x4x8xbf16>
    tpu.vector_store %arg4[%c0_68, %c0_69, %c0_70, %c0_71], %117 {strides = array<i32>} : memref<1x4x4x8xbf16, #tpu.memory_space<vmem>>, vector<1x4x4x8xbf16>,
    return
  }
  func.func @transform_0(%arg0: i32) -> (i32, i32, i32, i32) {
    %c0_i32 = arith.constant 0 : i32
    %c0_i32_0 = arith.constant 0 : i32
    %c0_i32_1 = arith.constant 0 : i32
    %c0_i32_2 = arith.constant 0 : i32
    return %arg0, %c0_i32, %c0_i32_0, %c0_i32_1 : i32, i32, i32, i32
  }
  func.func @transform_1(%arg0: i32) -> (i32, i32, i32) {
    %c0_i32 = arith.constant 0 : i32
    %c0_i32_0 = arith.constant 0 : i32
    %c0_i32_1 = arith.constant 0 : i32
    %c0_i32_2 = arith.constant 0 : i32
    return %c0_i32, %c0_i32_0, %c0_i32_1 : i32, i32, i32
  }
  func.func @transform_2(%arg0: i32) -> (i32, i32) {
    %c0_i32 = arith.constant 0 : i32
    %c0_i32_0 = arith.constant 0 : i32
    %c0_i32_1 = arith.constant 0 : i32
    return %c0_i32, %c0_i32_0 : i32, i32
  }
  func.func @transform_3(%arg0: i32) -> (i32, i32, i32, i32) {
    %c0_i32 = arith.constant 0 : i32
    %c0_i32_0 = arith.constant 0 : i32
    %c0_i32_1 = arith.constant 0 : i32
    %c0_i32_2 = arith.constant 0 : i32
    return %arg0, %c0_i32, %c0_i32_0, %c0_i32_1 : i32, i32, i32, i32
  }
}

module attributes {stable_mosaic.version = 11 : i64} {
  func.func @_conv_kernel(%arg0: i32, %arg1: memref<4x3x3x8xbf16, #tpu.memory_space<vmem>>, %arg2: memref<16x8x16xbf16, #tpu.memory_space<vmem>>, %arg3: memref<1x16xf32, #tpu.memory_space<vmem>>, %arg4: memref<1x2x2x16xbf16, #tpu.memory_space<vmem>>) attributes {dimension_semantics = [#tpu.dimension_semantics<parallel>], iteration_bounds = array<i64: 2>, scalar_prefetch = 0 : i64, scratch_operands = 0 : i64, tpu.core_type = #tpu.core_type<tc>, window_params = [{transform_indices = @transform_0, window_bounds = array<i64: 4, 3, 3, 8>}, {pipeline_mode = #tpu.pipeline_mode<synchronous>, transform_indices = @transform_1, window_bounds = array<i64: 16, 8, 16>}, {pipeline_mode = #tpu.pipeline_mode<synchronous>, transform_indices = @transform_2, window_bounds = array<i64: 1, 16>}, {transform_indices = @transform_3, window_bounds = array<i64: 1, 2, 2, 16>}]} {
    %c0 = arith.constant 0 : index
    %c0_0 = arith.constant 0 : index
    %c0_1 = arith.constant 0 : index
    %c0_2 = arith.constant 0 : index
    %0 = vector.load %arg1[%c0, %c0_0, %c0_1, %c0_2] : memref<4x3x3x8xbf16, #tpu.memory_space<vmem>>, vector<1x3x3x8xbf16>
    %1 = vector.shape_cast %0 : vector<1x3x3x8xbf16> to vector<3x3x8xbf16>
    %c1 = arith.constant 1 : index
    %c0_3 = arith.constant 0 : index
    %c0_4 = arith.constant 0 : index
    %c0_5 = arith.constant 0 : index
    %2 = vector.load %arg1[%c1, %c0_3, %c0_4, %c0_5] : memref<4x3x3x8xbf16, #tpu.memory_space<vmem>>, vector<1x3x3x8xbf16>
    %3 = vector.shape_cast %2 : vector<1x3x3x8xbf16> to vector<3x3x8xbf16>
    %c2 = arith.constant 2 : index
    %c0_6 = arith.constant 0 : index
    %c0_7 = arith.constant 0 : index
    %c0_8 = arith.constant 0 : index
    %4 = vector.load %arg1[%c2, %c0_6, %c0_7, %c0_8] : memref<4x3x3x8xbf16, #tpu.memory_space<vmem>>, vector<1x3x3x8xbf16>
    %5 = vector.shape_cast %4 : vector<1x3x3x8xbf16> to vector<3x3x8xbf16>
    %c3 = arith.constant 3 : index
    %c0_9 = arith.constant 0 : index
    %c0_10 = arith.constant 0 : index
    %c0_11 = arith.constant 0 : index
    %6 = vector.load %arg1[%c3, %c0_9, %c0_10, %c0_11] : memref<4x3x3x8xbf16, #tpu.memory_space<vmem>>, vector<1x3x3x8xbf16>
    %7 = vector.shape_cast %6 : vector<1x3x3x8xbf16> to vector<3x3x8xbf16>
    %cst = arith.constant 0.000000e+00 : f32
    %8 = vector.broadcast %cst : f32 to vector<4x16xf32>
    %9 = vector.extract_strided_slice %1 {offsets = [0, 0, 0], sizes = [2, 2, 8], strides = [1, 1, 1]} : vector<3x3x8xbf16> to vector<2x2x8xbf16>
    %10 = vector.shape_cast %9 : vector<2x2x8xbf16> to vector<4x8xbf16>
    %c0_12 = arith.constant 0 : index
    %c0_13 = arith.constant 0 : index
    %c0_14 = arith.constant 0 : index
    %11 = vector.load %arg2[%c0_12, %c0_13, %c0_14] : memref<16x8x16xbf16, #tpu.memory_space<vmem>>, vector<1x8x16xbf16>
    %12 = vector.shape_cast %11 : vector<1x8x16xbf16> to vector<8x16xbf16>
    %cst_15 = arith.constant dense<0.000000e+00> : vector<4x16xf32>
    %13 = tpu.matmul %10, %12, %cst_15 {dimension_numbers = #tpu.dot_dimension_numbers<[1], [0], [0], [1], [0, 0, 1, 1], [], []>} : vector<4x8xbf16>, vector<8x16xbf16>, vector<4x16xf32> -> vector<4x16xf32>
    %14 = arith.addf %8, %13 : vector<4x16xf32>
    %15 = vector.extract_strided_slice %3 {offsets = [0, 0, 0], sizes = [2, 2, 8], strides = [1, 1, 1]} : vector<3x3x8xbf16> to vector<2x2x8xbf16>
    %16 = vector.shape_cast %15 : vector<2x2x8xbf16> to vector<4x8xbf16>
    %c1_16 = arith.constant 1 : index
    %c0_17 = arith.constant 0 : index
    %c0_18 = arith.constant 0 : index
    %17 = vector.load %arg2[%c1_16, %c0_17, %c0_18] : memref<16x8x16xbf16, #tpu.memory_space<vmem>>, vector<1x8x16xbf16>
    %18 = vector.shape_cast %17 : vector<1x8x16xbf16> to vector<8x16xbf16>
    %cst_19 = arith.constant dense<0.000000e+00> : vector<4x16xf32>
    %19 = tpu.matmul %16, %18, %cst_19 {dimension_numbers = #tpu.dot_dimension_numbers<[1], [0], [0], [1], [0, 0, 1, 1], [], []>} : vector<4x8xbf16>, vector<8x16xbf16>, vector<4x16xf32> -> vector<4x16xf32>
    %20 = arith.addf %14, %19 : vector<4x16xf32>
    %21 = vector.extract_strided_slice %1 {offsets = [0, 1, 0], sizes = [2, 2, 8], strides = [1, 1, 1]} : vector<3x3x8xbf16> to vector<2x2x8xbf16>
    %22 = vector.shape_cast %21 : vector<2x2x8xbf16> to vector<4x8xbf16>
    %c2_20 = arith.constant 2 : index
    %c0_21 = arith.constant 0 : index
    %c0_22 = arith.constant 0 : index
    %23 = vector.load %arg2[%c2_20, %c0_21, %c0_22] : memref<16x8x16xbf16, #tpu.memory_space<vmem>>, vector<1x8x16xbf16>
    %24 = vector.shape_cast %23 : vector<1x8x16xbf16> to vector<8x16xbf16>
    %cst_23 = arith.constant dense<0.000000e+00> : vector<4x16xf32>
    %25 = tpu.matmul %22, %24, %cst_23 {dimension_numbers = #tpu.dot_dimension_numbers<[1], [0], [0], [1], [0, 0, 1, 1], [], []>} : vector<4x8xbf16>, vector<8x16xbf16>, vector<4x16xf32> -> vector<4x16xf32>
    %26 = arith.addf %20, %25 : vector<4x16xf32>
    %27 = vector.extract_strided_slice %3 {offsets = [0, 1, 0], sizes = [2, 2, 8], strides = [1, 1, 1]} : vector<3x3x8xbf16> to vector<2x2x8xbf16>
    %28 = vector.shape_cast %27 : vector<2x2x8xbf16> to vector<4x8xbf16>
    %c3_24 = arith.constant 3 : index
    %c0_25 = arith.constant 0 : index
    %c0_26 = arith.constant 0 : index
    %29 = vector.load %arg2[%c3_24, %c0_25, %c0_26] : memref<16x8x16xbf16, #tpu.memory_space<vmem>>, vector<1x8x16xbf16>
    %30 = vector.shape_cast %29 : vector<1x8x16xbf16> to vector<8x16xbf16>
    %cst_27 = arith.constant dense<0.000000e+00> : vector<4x16xf32>
    %31 = tpu.matmul %28, %30, %cst_27 {dimension_numbers = #tpu.dot_dimension_numbers<[1], [0], [0], [1], [0, 0, 1, 1], [], []>} : vector<4x8xbf16>, vector<8x16xbf16>, vector<4x16xf32> -> vector<4x16xf32>
    %32 = arith.addf %26, %31 : vector<4x16xf32>
    %33 = vector.extract_strided_slice %5 {offsets = [0, 0, 0], sizes = [2, 2, 8], strides = [1, 1, 1]} : vector<3x3x8xbf16> to vector<2x2x8xbf16>
    %34 = vector.shape_cast %33 : vector<2x2x8xbf16> to vector<4x8xbf16>
    %c4 = arith.constant 4 : index
    %c0_28 = arith.constant 0 : index
    %c0_29 = arith.constant 0 : index
    %35 = vector.load %arg2[%c4, %c0_28, %c0_29] : memref<16x8x16xbf16, #tpu.memory_space<vmem>>, vector<1x8x16xbf16>
    %36 = vector.shape_cast %35 : vector<1x8x16xbf16> to vector<8x16xbf16>
    %cst_30 = arith.constant dense<0.000000e+00> : vector<4x16xf32>
    %37 = tpu.matmul %34, %36, %cst_30 {dimension_numbers = #tpu.dot_dimension_numbers<[1], [0], [0], [1], [0, 0, 1, 1], [], []>} : vector<4x8xbf16>, vector<8x16xbf16>, vector<4x16xf32> -> vector<4x16xf32>
    %38 = arith.addf %32, %37 : vector<4x16xf32>
    %39 = vector.extract_strided_slice %7 {offsets = [0, 0, 0], sizes = [2, 2, 8], strides = [1, 1, 1]} : vector<3x3x8xbf16> to vector<2x2x8xbf16>
    %40 = vector.shape_cast %39 : vector<2x2x8xbf16> to vector<4x8xbf16>
    %c5 = arith.constant 5 : index
    %c0_31 = arith.constant 0 : index
    %c0_32 = arith.constant 0 : index
    %41 = vector.load %arg2[%c5, %c0_31, %c0_32] : memref<16x8x16xbf16, #tpu.memory_space<vmem>>, vector<1x8x16xbf16>
    %42 = vector.shape_cast %41 : vector<1x8x16xbf16> to vector<8x16xbf16>
    %cst_33 = arith.constant dense<0.000000e+00> : vector<4x16xf32>
    %43 = tpu.matmul %40, %42, %cst_33 {dimension_numbers = #tpu.dot_dimension_numbers<[1], [0], [0], [1], [0, 0, 1, 1], [], []>} : vector<4x8xbf16>, vector<8x16xbf16>, vector<4x16xf32> -> vector<4x16xf32>
    %44 = arith.addf %38, %43 : vector<4x16xf32>
    %45 = vector.extract_strided_slice %5 {offsets = [0, 1, 0], sizes = [2, 2, 8], strides = [1, 1, 1]} : vector<3x3x8xbf16> to vector<2x2x8xbf16>
    %46 = vector.shape_cast %45 : vector<2x2x8xbf16> to vector<4x8xbf16>
    %c6 = arith.constant 6 : index
    %c0_34 = arith.constant 0 : index
    %c0_35 = arith.constant 0 : index
    %47 = vector.load %arg2[%c6, %c0_34, %c0_35] : memref<16x8x16xbf16, #tpu.memory_space<vmem>>, vector<1x8x16xbf16>
    %48 = vector.shape_cast %47 : vector<1x8x16xbf16> to vector<8x16xbf16>
    %cst_36 = arith.constant dense<0.000000e+00> : vector<4x16xf32>
    %49 = tpu.matmul %46, %48, %cst_36 {dimension_numbers = #tpu.dot_dimension_numbers<[1], [0], [0], [1], [0, 0, 1, 1], [], []>} : vector<4x8xbf16>, vector<8x16xbf16>, vector<4x16xf32> -> vector<4x16xf32>
    %50 = arith.addf %44, %49 : vector<4x16xf32>
    %51 = vector.extract_strided_slice %7 {offsets = [0, 1, 0], sizes = [2, 2, 8], strides = [1, 1, 1]} : vector<3x3x8xbf16> to vector<2x2x8xbf16>
    %52 = vector.shape_cast %51 : vector<2x2x8xbf16> to vector<4x8xbf16>
    %c7 = arith.constant 7 : index
    %c0_37 = arith.constant 0 : index
    %c0_38 = arith.constant 0 : index
    %53 = vector.load %arg2[%c7, %c0_37, %c0_38] : memref<16x8x16xbf16, #tpu.memory_space<vmem>>, vector<1x8x16xbf16>
    %54 = vector.shape_cast %53 : vector<1x8x16xbf16> to vector<8x16xbf16>
    %cst_39 = arith.constant dense<0.000000e+00> : vector<4x16xf32>
    %55 = tpu.matmul %52, %54, %cst_39 {dimension_numbers = #tpu.dot_dimension_numbers<[1], [0], [0], [1], [0, 0, 1, 1], [], []>} : vector<4x8xbf16>, vector<8x16xbf16>, vector<4x16xf32> -> vector<4x16xf32>
    %56 = arith.addf %50, %55 : vector<4x16xf32>
    %57 = vector.extract_strided_slice %1 {offsets = [1, 0, 0], sizes = [2, 2, 8], strides = [1, 1, 1]} : vector<3x3x8xbf16> to vector<2x2x8xbf16>
    %58 = vector.shape_cast %57 : vector<2x2x8xbf16> to vector<4x8xbf16>
    %c8 = arith.constant 8 : index
    %c0_40 = arith.constant 0 : index
    %c0_41 = arith.constant 0 : index
    %59 = vector.load %arg2[%c8, %c0_40, %c0_41] : memref<16x8x16xbf16, #tpu.memory_space<vmem>>, vector<1x8x16xbf16>
    %60 = vector.shape_cast %59 : vector<1x8x16xbf16> to vector<8x16xbf16>
    %cst_42 = arith.constant dense<0.000000e+00> : vector<4x16xf32>
    %61 = tpu.matmul %58, %60, %cst_42 {dimension_numbers = #tpu.dot_dimension_numbers<[1], [0], [0], [1], [0, 0, 1, 1], [], []>} : vector<4x8xbf16>, vector<8x16xbf16>, vector<4x16xf32> -> vector<4x16xf32>
    %62 = arith.addf %56, %61 : vector<4x16xf32>
    %63 = vector.extract_strided_slice %3 {offsets = [1, 0, 0], sizes = [2, 2, 8], strides = [1, 1, 1]} : vector<3x3x8xbf16> to vector<2x2x8xbf16>
    %64 = vector.shape_cast %63 : vector<2x2x8xbf16> to vector<4x8xbf16>
    %c9 = arith.constant 9 : index
    %c0_43 = arith.constant 0 : index
    %c0_44 = arith.constant 0 : index
    %65 = vector.load %arg2[%c9, %c0_43, %c0_44] : memref<16x8x16xbf16, #tpu.memory_space<vmem>>, vector<1x8x16xbf16>
    %66 = vector.shape_cast %65 : vector<1x8x16xbf16> to vector<8x16xbf16>
    %cst_45 = arith.constant dense<0.000000e+00> : vector<4x16xf32>
    %67 = tpu.matmul %64, %66, %cst_45 {dimension_numbers = #tpu.dot_dimension_numbers<[1], [0], [0], [1], [0, 0, 1, 1], [], []>} : vector<4x8xbf16>, vector<8x16xbf16>, vector<4x16xf32> -> vector<4x16xf32>
    %68 = arith.addf %62, %67 : vector<4x16xf32>
    %69 = vector.extract_strided_slice %1 {offsets = [1, 1, 0], sizes = [2, 2, 8], strides = [1, 1, 1]} : vector<3x3x8xbf16> to vector<2x2x8xbf16>
    %70 = vector.shape_cast %69 : vector<2x2x8xbf16> to vector<4x8xbf16>
    %c10 = arith.constant 10 : index
    %c0_46 = arith.constant 0 : index
    %c0_47 = arith.constant 0 : index
    %71 = vector.load %arg2[%c10, %c0_46, %c0_47] : memref<16x8x16xbf16, #tpu.memory_space<vmem>>, vector<1x8x16xbf16>
    %72 = vector.shape_cast %71 : vector<1x8x16xbf16> to vector<8x16xbf16>
    %cst_48 = arith.constant dense<0.000000e+00> : vector<4x16xf32>
    %73 = tpu.matmul %70, %72, %cst_48 {dimension_numbers = #tpu.dot_dimension_numbers<[1], [0], [0], [1], [0, 0, 1, 1], [], []>} : vector<4x8xbf16>, vector<8x16xbf16>, vector<4x16xf32> -> vector<4x16xf32>
    %74 = arith.addf %68, %73 : vector<4x16xf32>
    %75 = vector.extract_strided_slice %3 {offsets = [1, 1, 0], sizes = [2, 2, 8], strides = [1, 1, 1]} : vector<3x3x8xbf16> to vector<2x2x8xbf16>
    %76 = vector.shape_cast %75 : vector<2x2x8xbf16> to vector<4x8xbf16>
    %c11 = arith.constant 11 : index
    %c0_49 = arith.constant 0 : index
    %c0_50 = arith.constant 0 : index
    %77 = vector.load %arg2[%c11, %c0_49, %c0_50] : memref<16x8x16xbf16, #tpu.memory_space<vmem>>, vector<1x8x16xbf16>
    %78 = vector.shape_cast %77 : vector<1x8x16xbf16> to vector<8x16xbf16>
    %cst_51 = arith.constant dense<0.000000e+00> : vector<4x16xf32>
    %79 = tpu.matmul %76, %78, %cst_51 {dimension_numbers = #tpu.dot_dimension_numbers<[1], [0], [0], [1], [0, 0, 1, 1], [], []>} : vector<4x8xbf16>, vector<8x16xbf16>, vector<4x16xf32> -> vector<4x16xf32>
    %80 = arith.addf %74, %79 : vector<4x16xf32>
    %81 = vector.extract_strided_slice %5 {offsets = [1, 0, 0], sizes = [2, 2, 8], strides = [1, 1, 1]} : vector<3x3x8xbf16> to vector<2x2x8xbf16>
    %82 = vector.shape_cast %81 : vector<2x2x8xbf16> to vector<4x8xbf16>
    %c12 = arith.constant 12 : index
    %c0_52 = arith.constant 0 : index
    %c0_53 = arith.constant 0 : index
    %83 = vector.load %arg2[%c12, %c0_52, %c0_53] : memref<16x8x16xbf16, #tpu.memory_space<vmem>>, vector<1x8x16xbf16>
    %84 = vector.shape_cast %83 : vector<1x8x16xbf16> to vector<8x16xbf16>
    %cst_54 = arith.constant dense<0.000000e+00> : vector<4x16xf32>
    %85 = tpu.matmul %82, %84, %cst_54 {dimension_numbers = #tpu.dot_dimension_numbers<[1], [0], [0], [1], [0, 0, 1, 1], [], []>} : vector<4x8xbf16>, vector<8x16xbf16>, vector<4x16xf32> -> vector<4x16xf32>
    %86 = arith.addf %80, %85 : vector<4x16xf32>
    %87 = vector.extract_strided_slice %7 {offsets = [1, 0, 0], sizes = [2, 2, 8], strides = [1, 1, 1]} : vector<3x3x8xbf16> to vector<2x2x8xbf16>
    %88 = vector.shape_cast %87 : vector<2x2x8xbf16> to vector<4x8xbf16>
    %c13 = arith.constant 13 : index
    %c0_55 = arith.constant 0 : index
    %c0_56 = arith.constant 0 : index
    %89 = vector.load %arg2[%c13, %c0_55, %c0_56] : memref<16x8x16xbf16, #tpu.memory_space<vmem>>, vector<1x8x16xbf16>
    %90 = vector.shape_cast %89 : vector<1x8x16xbf16> to vector<8x16xbf16>
    %cst_57 = arith.constant dense<0.000000e+00> : vector<4x16xf32>
    %91 = tpu.matmul %88, %90, %cst_57 {dimension_numbers = #tpu.dot_dimension_numbers<[1], [0], [0], [1], [0, 0, 1, 1], [], []>} : vector<4x8xbf16>, vector<8x16xbf16>, vector<4x16xf32> -> vector<4x16xf32>
    %92 = arith.addf %86, %91 : vector<4x16xf32>
    %93 = vector.extract_strided_slice %5 {offsets = [1, 1, 0], sizes = [2, 2, 8], strides = [1, 1, 1]} : vector<3x3x8xbf16> to vector<2x2x8xbf16>
    %94 = vector.shape_cast %93 : vector<2x2x8xbf16> to vector<4x8xbf16>
    %c14 = arith.constant 14 : index
    %c0_58 = arith.constant 0 : index
    %c0_59 = arith.constant 0 : index
    %95 = vector.load %arg2[%c14, %c0_58, %c0_59] : memref<16x8x16xbf16, #tpu.memory_space<vmem>>, vector<1x8x16xbf16>
    %96 = vector.shape_cast %95 : vector<1x8x16xbf16> to vector<8x16xbf16>
    %cst_60 = arith.constant dense<0.000000e+00> : vector<4x16xf32>
    %97 = tpu.matmul %94, %96, %cst_60 {dimension_numbers = #tpu.dot_dimension_numbers<[1], [0], [0], [1], [0, 0, 1, 1], [], []>} : vector<4x8xbf16>, vector<8x16xbf16>, vector<4x16xf32> -> vector<4x16xf32>
    %98 = arith.addf %92, %97 : vector<4x16xf32>
    %99 = vector.extract_strided_slice %7 {offsets = [1, 1, 0], sizes = [2, 2, 8], strides = [1, 1, 1]} : vector<3x3x8xbf16> to vector<2x2x8xbf16>
    %100 = vector.shape_cast %99 : vector<2x2x8xbf16> to vector<4x8xbf16>
    %c15 = arith.constant 15 : index
    %c0_61 = arith.constant 0 : index
    %c0_62 = arith.constant 0 : index
    %101 = vector.load %arg2[%c15, %c0_61, %c0_62] : memref<16x8x16xbf16, #tpu.memory_space<vmem>>, vector<1x8x16xbf16>
    %102 = vector.shape_cast %101 : vector<1x8x16xbf16> to vector<8x16xbf16>
    %cst_63 = arith.constant dense<0.000000e+00> : vector<4x16xf32>
    %103 = tpu.matmul %100, %102, %cst_63 {dimension_numbers = #tpu.dot_dimension_numbers<[1], [0], [0], [1], [0, 0, 1, 1], [], []>} : vector<4x8xbf16>, vector<8x16xbf16>, vector<4x16xf32> -> vector<4x16xf32>
    %104 = arith.addf %98, %103 : vector<4x16xf32>
    %c0_64 = arith.constant 0 : index
    %c0_65 = arith.constant 0 : index
    %105 = vector.load %arg3[%c0_64, %c0_65] : memref<1x16xf32, #tpu.memory_space<vmem>>, vector<1x16xf32>
    %106 = vector.broadcast %105 : vector<1x16xf32> to vector<4x16xf32>
    %107 = arith.addf %104, %106 : vector<4x16xf32>
    %cst_66 = arith.constant 0.000000e+00 : f32
    %108 = vector.broadcast %cst_66 : f32 to vector<4x16xf32>
    %109 = arith.cmpf oge, %107, %108 : vector<4x16xf32>
    %cst_67 = arith.constant 2.000000e-01 : f32
    %110 = vector.broadcast %cst_67 : f32 to vector<4x16xf32>
    %111 = arith.mulf %110, %107 : vector<4x16xf32>
    %112 = arith.select %109, %107, %111 : vector<4x16xi1>, vector<4x16xf32>
    %113 = vector.shape_cast %112 : vector<4x16xf32> to vector<2x2x16xf32>
    %114 = arith.truncf %113 : vector<2x2x16xf32> to vector<2x2x16xbf16>
    %c0_68 = arith.constant 0 : index
    %c0_69 = arith.constant 0 : index
    %c0_70 = arith.constant 0 : index
    %c0_71 = arith.constant 0 : index
    %115 = vector.load %arg4[%c0_68, %c0_69, %c0_70, %c0_71] : memref<1x2x2x16xbf16, #tpu.memory_space<vmem>>, vector<1x2x2x16xbf16>
    %116 = vector.shape_cast %115 : vector<1x2x2x16xbf16> to vector<2x2x16xbf16>
    %117 = vector.shape_cast %114 : vector<2x2x16xbf16> to vector<1x2x2x16xbf16>
    tpu.vector_store %arg4[%c0_68, %c0_69, %c0_70, %c0_71], %117 {strides = array<i32>} : memref<1x2x2x16xbf16, #tpu.memory_space<vmem>>, vector<1x2x2x16xbf16>,
    return
  }
  func.func @transform_0(%arg0: i32) -> (i32, i32, i32, i32) {
    %c0_i32 = arith.constant 0 : i32
    %c0_i32_0 = arith.constant 0 : i32
    %c0_i32_1 = arith.constant 0 : i32
    %c0_i32_2 = arith.constant 0 : i32
    return %arg0, %c0_i32, %c0_i32_0, %c0_i32_1 : i32, i32, i32, i32
  }
  func.func @transform_1(%arg0: i32) -> (i32, i32, i32) {
    %c0_i32 = arith.constant 0 : i32
    %c0_i32_0 = arith.constant 0 : i32
    %c0_i32_1 = arith.constant 0 : i32
    %c0_i32_2 = arith.constant 0 : i32
    return %c0_i32, %c0_i32_0, %c0_i32_1 : i32, i32, i32
  }
  func.func @transform_2(%arg0: i32) -> (i32, i32) {
    %c0_i32 = arith.constant 0 : i32
    %c0_i32_0 = arith.constant 0 : i32
    %c0_i32_1 = arith.constant 0 : i32
    return %c0_i32, %c0_i32_0 : i32, i32
  }
  func.func @transform_3(%arg0: i32) -> (i32, i32, i32, i32) {
    %c0_i32 = arith.constant 0 : i32
    %c0_i32_0 = arith.constant 0 : i32
    %c0_i32_1 = arith.constant 0 : i32
    %c0_i32_2 = arith.constant 0 : i32
    return %arg0, %c0_i32, %c0_i32_0, %c0_i32_1 : i32, i32, i32, i32
  }
}

module attributes {stable_mosaic.version = 11 : i64} {
  func.func @_conv_head_kernel(%arg0: i32, %arg1: memref<4x2x2x16xbf16, #tpu.memory_space<vmem>>, %arg2: memref<16x16x32xbf16, #tpu.memory_space<vmem>>, %arg3: memref<1x32xf32, #tpu.memory_space<vmem>>, %arg4: memref<1x32xf32, #tpu.memory_space<vmem>>, %arg5: memref<1x1xf32, #tpu.memory_space<vmem>>, %arg6: memref<1x1x1xf32, #tpu.memory_space<vmem>>) attributes {dimension_semantics = [#tpu.dimension_semantics<parallel>], iteration_bounds = array<i64: 2>, scalar_prefetch = 0 : i64, scratch_operands = 0 : i64, tpu.core_type = #tpu.core_type<tc>, window_params = [{transform_indices = @transform_0, window_bounds = array<i64: 4, 2, 2, 16>}, {pipeline_mode = #tpu.pipeline_mode<synchronous>, transform_indices = @transform_1, window_bounds = array<i64: 16, 16, 32>}, {pipeline_mode = #tpu.pipeline_mode<synchronous>, transform_indices = @transform_2, window_bounds = array<i64: 1, 32>}, {pipeline_mode = #tpu.pipeline_mode<synchronous>, transform_indices = @transform_3, window_bounds = array<i64: 1, 32>}, {pipeline_mode = #tpu.pipeline_mode<synchronous>, transform_indices = @transform_4, window_bounds = array<i64: 1, 1>}, {transform_indices = @transform_5, window_bounds = array<i64: 1, 1, 1>}]} {
    %c0 = arith.constant 0 : index
    %c0_0 = arith.constant 0 : index
    %c0_1 = arith.constant 0 : index
    %c0_2 = arith.constant 0 : index
    %0 = vector.load %arg1[%c0, %c0_0, %c0_1, %c0_2] : memref<4x2x2x16xbf16, #tpu.memory_space<vmem>>, vector<1x2x2x16xbf16>
    %1 = vector.shape_cast %0 : vector<1x2x2x16xbf16> to vector<2x2x16xbf16>
    %c1 = arith.constant 1 : index
    %c0_3 = arith.constant 0 : index
    %c0_4 = arith.constant 0 : index
    %c0_5 = arith.constant 0 : index
    %2 = vector.load %arg1[%c1, %c0_3, %c0_4, %c0_5] : memref<4x2x2x16xbf16, #tpu.memory_space<vmem>>, vector<1x2x2x16xbf16>
    %3 = vector.shape_cast %2 : vector<1x2x2x16xbf16> to vector<2x2x16xbf16>
    %c2 = arith.constant 2 : index
    %c0_6 = arith.constant 0 : index
    %c0_7 = arith.constant 0 : index
    %c0_8 = arith.constant 0 : index
    %4 = vector.load %arg1[%c2, %c0_6, %c0_7, %c0_8] : memref<4x2x2x16xbf16, #tpu.memory_space<vmem>>, vector<1x2x2x16xbf16>
    %5 = vector.shape_cast %4 : vector<1x2x2x16xbf16> to vector<2x2x16xbf16>
    %c3 = arith.constant 3 : index
    %c0_9 = arith.constant 0 : index
    %c0_10 = arith.constant 0 : index
    %c0_11 = arith.constant 0 : index
    %6 = vector.load %arg1[%c3, %c0_9, %c0_10, %c0_11] : memref<4x2x2x16xbf16, #tpu.memory_space<vmem>>, vector<1x2x2x16xbf16>
    %7 = vector.shape_cast %6 : vector<1x2x2x16xbf16> to vector<2x2x16xbf16>
    %cst = arith.constant 0.000000e+00 : f32
    %8 = vector.broadcast %cst : f32 to vector<1x32xf32>
    %9 = vector.extract_strided_slice %1 {offsets = [0, 0, 0], sizes = [1, 1, 16], strides = [1, 1, 1]} : vector<2x2x16xbf16> to vector<1x1x16xbf16>
    %10 = vector.shape_cast %9 : vector<1x1x16xbf16> to vector<1x16xbf16>
    %c0_12 = arith.constant 0 : index
    %c0_13 = arith.constant 0 : index
    %c0_14 = arith.constant 0 : index
    %11 = vector.load %arg2[%c0_12, %c0_13, %c0_14] : memref<16x16x32xbf16, #tpu.memory_space<vmem>>, vector<1x16x32xbf16>
    %12 = vector.shape_cast %11 : vector<1x16x32xbf16> to vector<16x32xbf16>
    %cst_15 = arith.constant dense<0.000000e+00> : vector<1x32xf32>
    %13 = tpu.matmul %10, %12, %cst_15 {dimension_numbers = #tpu.dot_dimension_numbers<[1], [0], [0], [1], [0, 0, 1, 1], [], []>} : vector<1x16xbf16>, vector<16x32xbf16>, vector<1x32xf32> -> vector<1x32xf32>
    %14 = arith.addf %8, %13 : vector<1x32xf32>
    %15 = vector.extract_strided_slice %3 {offsets = [0, 0, 0], sizes = [1, 1, 16], strides = [1, 1, 1]} : vector<2x2x16xbf16> to vector<1x1x16xbf16>
    %16 = vector.shape_cast %15 : vector<1x1x16xbf16> to vector<1x16xbf16>
    %c1_16 = arith.constant 1 : index
    %c0_17 = arith.constant 0 : index
    %c0_18 = arith.constant 0 : index
    %17 = vector.load %arg2[%c1_16, %c0_17, %c0_18] : memref<16x16x32xbf16, #tpu.memory_space<vmem>>, vector<1x16x32xbf16>
    %18 = vector.shape_cast %17 : vector<1x16x32xbf16> to vector<16x32xbf16>
    %cst_19 = arith.constant dense<0.000000e+00> : vector<1x32xf32>
    %19 = tpu.matmul %16, %18, %cst_19 {dimension_numbers = #tpu.dot_dimension_numbers<[1], [0], [0], [1], [0, 0, 1, 1], [], []>} : vector<1x16xbf16>, vector<16x32xbf16>, vector<1x32xf32> -> vector<1x32xf32>
    %20 = arith.addf %14, %19 : vector<1x32xf32>
    %21 = vector.extract_strided_slice %1 {offsets = [0, 1, 0], sizes = [1, 1, 16], strides = [1, 1, 1]} : vector<2x2x16xbf16> to vector<1x1x16xbf16>
    %22 = vector.shape_cast %21 : vector<1x1x16xbf16> to vector<1x16xbf16>
    %c2_20 = arith.constant 2 : index
    %c0_21 = arith.constant 0 : index
    %c0_22 = arith.constant 0 : index
    %23 = vector.load %arg2[%c2_20, %c0_21, %c0_22] : memref<16x16x32xbf16, #tpu.memory_space<vmem>>, vector<1x16x32xbf16>
    %24 = vector.shape_cast %23 : vector<1x16x32xbf16> to vector<16x32xbf16>
    %cst_23 = arith.constant dense<0.000000e+00> : vector<1x32xf32>
    %25 = tpu.matmul %22, %24, %cst_23 {dimension_numbers = #tpu.dot_dimension_numbers<[1], [0], [0], [1], [0, 0, 1, 1], [], []>} : vector<1x16xbf16>, vector<16x32xbf16>, vector<1x32xf32> -> vector<1x32xf32>
    %26 = arith.addf %20, %25 : vector<1x32xf32>
    %27 = vector.extract_strided_slice %3 {offsets = [0, 1, 0], sizes = [1, 1, 16], strides = [1, 1, 1]} : vector<2x2x16xbf16> to vector<1x1x16xbf16>
    %28 = vector.shape_cast %27 : vector<1x1x16xbf16> to vector<1x16xbf16>
    %c3_24 = arith.constant 3 : index
    %c0_25 = arith.constant 0 : index
    %c0_26 = arith.constant 0 : index
    %29 = vector.load %arg2[%c3_24, %c0_25, %c0_26] : memref<16x16x32xbf16, #tpu.memory_space<vmem>>, vector<1x16x32xbf16>
    %30 = vector.shape_cast %29 : vector<1x16x32xbf16> to vector<16x32xbf16>
    %cst_27 = arith.constant dense<0.000000e+00> : vector<1x32xf32>
    %31 = tpu.matmul %28, %30, %cst_27 {dimension_numbers = #tpu.dot_dimension_numbers<[1], [0], [0], [1], [0, 0, 1, 1], [], []>} : vector<1x16xbf16>, vector<16x32xbf16>, vector<1x32xf32> -> vector<1x32xf32>
    %32 = arith.addf %26, %31 : vector<1x32xf32>
    %33 = vector.extract_strided_slice %5 {offsets = [0, 0, 0], sizes = [1, 1, 16], strides = [1, 1, 1]} : vector<2x2x16xbf16> to vector<1x1x16xbf16>
    %34 = vector.shape_cast %33 : vector<1x1x16xbf16> to vector<1x16xbf16>
    %c4 = arith.constant 4 : index
    %c0_28 = arith.constant 0 : index
    %c0_29 = arith.constant 0 : index
    %35 = vector.load %arg2[%c4, %c0_28, %c0_29] : memref<16x16x32xbf16, #tpu.memory_space<vmem>>, vector<1x16x32xbf16>
    %36 = vector.shape_cast %35 : vector<1x16x32xbf16> to vector<16x32xbf16>
    %cst_30 = arith.constant dense<0.000000e+00> : vector<1x32xf32>
    %37 = tpu.matmul %34, %36, %cst_30 {dimension_numbers = #tpu.dot_dimension_numbers<[1], [0], [0], [1], [0, 0, 1, 1], [], []>} : vector<1x16xbf16>, vector<16x32xbf16>, vector<1x32xf32> -> vector<1x32xf32>
    %38 = arith.addf %32, %37 : vector<1x32xf32>
    %39 = vector.extract_strided_slice %7 {offsets = [0, 0, 0], sizes = [1, 1, 16], strides = [1, 1, 1]} : vector<2x2x16xbf16> to vector<1x1x16xbf16>
    %40 = vector.shape_cast %39 : vector<1x1x16xbf16> to vector<1x16xbf16>
    %c5 = arith.constant 5 : index
    %c0_31 = arith.constant 0 : index
    %c0_32 = arith.constant 0 : index
    %41 = vector.load %arg2[%c5, %c0_31, %c0_32] : memref<16x16x32xbf16, #tpu.memory_space<vmem>>, vector<1x16x32xbf16>
    %42 = vector.shape_cast %41 : vector<1x16x32xbf16> to vector<16x32xbf16>
    %cst_33 = arith.constant dense<0.000000e+00> : vector<1x32xf32>
    %43 = tpu.matmul %40, %42, %cst_33 {dimension_numbers = #tpu.dot_dimension_numbers<[1], [0], [0], [1], [0, 0, 1, 1], [], []>} : vector<1x16xbf16>, vector<16x32xbf16>, vector<1x32xf32> -> vector<1x32xf32>
    %44 = arith.addf %38, %43 : vector<1x32xf32>
    %45 = vector.extract_strided_slice %5 {offsets = [0, 1, 0], sizes = [1, 1, 16], strides = [1, 1, 1]} : vector<2x2x16xbf16> to vector<1x1x16xbf16>
    %46 = vector.shape_cast %45 : vector<1x1x16xbf16> to vector<1x16xbf16>
    %c6 = arith.constant 6 : index
    %c0_34 = arith.constant 0 : index
    %c0_35 = arith.constant 0 : index
    %47 = vector.load %arg2[%c6, %c0_34, %c0_35] : memref<16x16x32xbf16, #tpu.memory_space<vmem>>, vector<1x16x32xbf16>
    %48 = vector.shape_cast %47 : vector<1x16x32xbf16> to vector<16x32xbf16>
    %cst_36 = arith.constant dense<0.000000e+00> : vector<1x32xf32>
    %49 = tpu.matmul %46, %48, %cst_36 {dimension_numbers = #tpu.dot_dimension_numbers<[1], [0], [0], [1], [0, 0, 1, 1], [], []>} : vector<1x16xbf16>, vector<16x32xbf16>, vector<1x32xf32> -> vector<1x32xf32>
    %50 = arith.addf %44, %49 : vector<1x32xf32>
    %51 = vector.extract_strided_slice %7 {offsets = [0, 1, 0], sizes = [1, 1, 16], strides = [1, 1, 1]} : vector<2x2x16xbf16> to vector<1x1x16xbf16>
    %52 = vector.shape_cast %51 : vector<1x1x16xbf16> to vector<1x16xbf16>
    %c7 = arith.constant 7 : index
    %c0_37 = arith.constant 0 : index
    %c0_38 = arith.constant 0 : index
    %53 = vector.load %arg2[%c7, %c0_37, %c0_38] : memref<16x16x32xbf16, #tpu.memory_space<vmem>>, vector<1x16x32xbf16>
    %54 = vector.shape_cast %53 : vector<1x16x32xbf16> to vector<16x32xbf16>
    %cst_39 = arith.constant dense<0.000000e+00> : vector<1x32xf32>
    %55 = tpu.matmul %52, %54, %cst_39 {dimension_numbers = #tpu.dot_dimension_numbers<[1], [0], [0], [1], [0, 0, 1, 1], [], []>} : vector<1x16xbf16>, vector<16x32xbf16>, vector<1x32xf32> -> vector<1x32xf32>
    %56 = arith.addf %50, %55 : vector<1x32xf32>
    %57 = vector.extract_strided_slice %1 {offsets = [1, 0, 0], sizes = [1, 1, 16], strides = [1, 1, 1]} : vector<2x2x16xbf16> to vector<1x1x16xbf16>
    %58 = vector.shape_cast %57 : vector<1x1x16xbf16> to vector<1x16xbf16>
    %c8 = arith.constant 8 : index
    %c0_40 = arith.constant 0 : index
    %c0_41 = arith.constant 0 : index
    %59 = vector.load %arg2[%c8, %c0_40, %c0_41] : memref<16x16x32xbf16, #tpu.memory_space<vmem>>, vector<1x16x32xbf16>
    %60 = vector.shape_cast %59 : vector<1x16x32xbf16> to vector<16x32xbf16>
    %cst_42 = arith.constant dense<0.000000e+00> : vector<1x32xf32>
    %61 = tpu.matmul %58, %60, %cst_42 {dimension_numbers = #tpu.dot_dimension_numbers<[1], [0], [0], [1], [0, 0, 1, 1], [], []>} : vector<1x16xbf16>, vector<16x32xbf16>, vector<1x32xf32> -> vector<1x32xf32>
    %62 = arith.addf %56, %61 : vector<1x32xf32>
    %63 = vector.extract_strided_slice %3 {offsets = [1, 0, 0], sizes = [1, 1, 16], strides = [1, 1, 1]} : vector<2x2x16xbf16> to vector<1x1x16xbf16>
    %64 = vector.shape_cast %63 : vector<1x1x16xbf16> to vector<1x16xbf16>
    %c9 = arith.constant 9 : index
    %c0_43 = arith.constant 0 : index
    %c0_44 = arith.constant 0 : index
    %65 = vector.load %arg2[%c9, %c0_43, %c0_44] : memref<16x16x32xbf16, #tpu.memory_space<vmem>>, vector<1x16x32xbf16>
    %66 = vector.shape_cast %65 : vector<1x16x32xbf16> to vector<16x32xbf16>
    %cst_45 = arith.constant dense<0.000000e+00> : vector<1x32xf32>
    %67 = tpu.matmul %64, %66, %cst_45 {dimension_numbers = #tpu.dot_dimension_numbers<[1], [0], [0], [1], [0, 0, 1, 1], [], []>} : vector<1x16xbf16>, vector<16x32xbf16>, vector<1x32xf32> -> vector<1x32xf32>
    %68 = arith.addf %62, %67 : vector<1x32xf32>
    %69 = vector.extract_strided_slice %1 {offsets = [1, 1, 0], sizes = [1, 1, 16], strides = [1, 1, 1]} : vector<2x2x16xbf16> to vector<1x1x16xbf16>
    %70 = vector.shape_cast %69 : vector<1x1x16xbf16> to vector<1x16xbf16>
    %c10 = arith.constant 10 : index
    %c0_46 = arith.constant 0 : index
    %c0_47 = arith.constant 0 : index
    %71 = vector.load %arg2[%c10, %c0_46, %c0_47] : memref<16x16x32xbf16, #tpu.memory_space<vmem>>, vector<1x16x32xbf16>
    %72 = vector.shape_cast %71 : vector<1x16x32xbf16> to vector<16x32xbf16>
    %cst_48 = arith.constant dense<0.000000e+00> : vector<1x32xf32>
    %73 = tpu.matmul %70, %72, %cst_48 {dimension_numbers = #tpu.dot_dimension_numbers<[1], [0], [0], [1], [0, 0, 1, 1], [], []>} : vector<1x16xbf16>, vector<16x32xbf16>, vector<1x32xf32> -> vector<1x32xf32>
    %74 = arith.addf %68, %73 : vector<1x32xf32>
    %75 = vector.extract_strided_slice %3 {offsets = [1, 1, 0], sizes = [1, 1, 16], strides = [1, 1, 1]} : vector<2x2x16xbf16> to vector<1x1x16xbf16>
    %76 = vector.shape_cast %75 : vector<1x1x16xbf16> to vector<1x16xbf16>
    %c11 = arith.constant 11 : index
    %c0_49 = arith.constant 0 : index
    %c0_50 = arith.constant 0 : index
    %77 = vector.load %arg2[%c11, %c0_49, %c0_50] : memref<16x16x32xbf16, #tpu.memory_space<vmem>>, vector<1x16x32xbf16>
    %78 = vector.shape_cast %77 : vector<1x16x32xbf16> to vector<16x32xbf16>
    %cst_51 = arith.constant dense<0.000000e+00> : vector<1x32xf32>
    %79 = tpu.matmul %76, %78, %cst_51 {dimension_numbers = #tpu.dot_dimension_numbers<[1], [0], [0], [1], [0, 0, 1, 1], [], []>} : vector<1x16xbf16>, vector<16x32xbf16>, vector<1x32xf32> -> vector<1x32xf32>
    %80 = arith.addf %74, %79 : vector<1x32xf32>
    %81 = vector.extract_strided_slice %5 {offsets = [1, 0, 0], sizes = [1, 1, 16], strides = [1, 1, 1]} : vector<2x2x16xbf16> to vector<1x1x16xbf16>
    %82 = vector.shape_cast %81 : vector<1x1x16xbf16> to vector<1x16xbf16>
    %c12 = arith.constant 12 : index
    %c0_52 = arith.constant 0 : index
    %c0_53 = arith.constant 0 : index
    %83 = vector.load %arg2[%c12, %c0_52, %c0_53] : memref<16x16x32xbf16, #tpu.memory_space<vmem>>, vector<1x16x32xbf16>
    %84 = vector.shape_cast %83 : vector<1x16x32xbf16> to vector<16x32xbf16>
    %cst_54 = arith.constant dense<0.000000e+00> : vector<1x32xf32>
    %85 = tpu.matmul %82, %84, %cst_54 {dimension_numbers = #tpu.dot_dimension_numbers<[1], [0], [0], [1], [0, 0, 1, 1], [], []>} : vector<1x16xbf16>, vector<16x32xbf16>, vector<1x32xf32> -> vector<1x32xf32>
    %86 = arith.addf %80, %85 : vector<1x32xf32>
    %87 = vector.extract_strided_slice %7 {offsets = [1, 0, 0], sizes = [1, 1, 16], strides = [1, 1, 1]} : vector<2x2x16xbf16> to vector<1x1x16xbf16>
    %88 = vector.shape_cast %87 : vector<1x1x16xbf16> to vector<1x16xbf16>
    %c13 = arith.constant 13 : index
    %c0_55 = arith.constant 0 : index
    %c0_56 = arith.constant 0 : index
    %89 = vector.load %arg2[%c13, %c0_55, %c0_56] : memref<16x16x32xbf16, #tpu.memory_space<vmem>>, vector<1x16x32xbf16>
    %90 = vector.shape_cast %89 : vector<1x16x32xbf16> to vector<16x32xbf16>
    %cst_57 = arith.constant dense<0.000000e+00> : vector<1x32xf32>
    %91 = tpu.matmul %88, %90, %cst_57 {dimension_numbers = #tpu.dot_dimension_numbers<[1], [0], [0], [1], [0, 0, 1, 1], [], []>} : vector<1x16xbf16>, vector<16x32xbf16>, vector<1x32xf32> -> vector<1x32xf32>
    %92 = arith.addf %86, %91 : vector<1x32xf32>
    %93 = vector.extract_strided_slice %5 {offsets = [1, 1, 0], sizes = [1, 1, 16], strides = [1, 1, 1]} : vector<2x2x16xbf16> to vector<1x1x16xbf16>
    %94 = vector.shape_cast %93 : vector<1x1x16xbf16> to vector<1x16xbf16>
    %c14 = arith.constant 14 : index
    %c0_58 = arith.constant 0 : index
    %c0_59 = arith.constant 0 : index
    %95 = vector.load %arg2[%c14, %c0_58, %c0_59] : memref<16x16x32xbf16, #tpu.memory_space<vmem>>, vector<1x16x32xbf16>
    %96 = vector.shape_cast %95 : vector<1x16x32xbf16> to vector<16x32xbf16>
    %cst_60 = arith.constant dense<0.000000e+00> : vector<1x32xf32>
    %97 = tpu.matmul %94, %96, %cst_60 {dimension_numbers = #tpu.dot_dimension_numbers<[1], [0], [0], [1], [0, 0, 1, 1], [], []>} : vector<1x16xbf16>, vector<16x32xbf16>, vector<1x32xf32> -> vector<1x32xf32>
    %98 = arith.addf %92, %97 : vector<1x32xf32>
    %99 = vector.extract_strided_slice %7 {offsets = [1, 1, 0], sizes = [1, 1, 16], strides = [1, 1, 1]} : vector<2x2x16xbf16> to vector<1x1x16xbf16>
    %100 = vector.shape_cast %99 : vector<1x1x16xbf16> to vector<1x16xbf16>
    %c15 = arith.constant 15 : index
    %c0_61 = arith.constant 0 : index
    %c0_62 = arith.constant 0 : index
    %101 = vector.load %arg2[%c15, %c0_61, %c0_62] : memref<16x16x32xbf16, #tpu.memory_space<vmem>>, vector<1x16x32xbf16>
    %102 = vector.shape_cast %101 : vector<1x16x32xbf16> to vector<16x32xbf16>
    %cst_63 = arith.constant dense<0.000000e+00> : vector<1x32xf32>
    %103 = tpu.matmul %100, %102, %cst_63 {dimension_numbers = #tpu.dot_dimension_numbers<[1], [0], [0], [1], [0, 0, 1, 1], [], []>} : vector<1x16xbf16>, vector<16x32xbf16>, vector<1x32xf32> -> vector<1x32xf32>
    %104 = arith.addf %98, %103 : vector<1x32xf32>
    %c0_64 = arith.constant 0 : index
    %c0_65 = arith.constant 0 : index
    %105 = vector.load %arg3[%c0_64, %c0_65] : memref<1x32xf32, #tpu.memory_space<vmem>>, vector<1x32xf32>
    %106 = arith.addf %104, %105 : vector<1x32xf32>
    %cst_66 = arith.constant 0.000000e+00 : f32
    %107 = vector.broadcast %cst_66 : f32 to vector<1x32xf32>
    %108 = arith.subf %107, %106 : vector<1x32xf32>
    %109 = math.exp %108 : vector<1x32xf32>
    %cst_67 = arith.constant 1.000000e+00 : f32
    %110 = vector.broadcast %cst_67 : f32 to vector<1x32xf32>
    %111 = arith.addf %110, %109 : vector<1x32xf32>
    %112 = tpu.reciprocal %111 {approx = true} : vector<1x32xf32> -> vector<1x32xf32>
    %c0_68 = arith.constant 0 : index
    %c0_69 = arith.constant 0 : index
    %113 = vector.load %arg4[%c0_68, %c0_69] : memref<1x32xf32, #tpu.memory_space<vmem>>, vector<1x32xf32>
    %114 = arith.mulf %112, %113 : vector<1x32xf32>
    %cst_70 = arith.constant dense<0.000000e+00> : vector<1xf32>
    %115 = vector.multi_reduction <add>, %114, %cst_70 [1] : vector<1x32xf32> to vector<1xf32>
    %116 = vector.shape_cast %115 : vector<1xf32> to vector<1x1xf32>
    %cst_71 = arith.constant dense<0.000000e+00> : vector<1xf32>
    %117 = vector.multi_reduction <add>, %116, %cst_71 [0] : vector<1x1xf32> to vector<1xf32>
    %118 = vector.shape_cast %117 : vector<1xf32> to vector<1x1xf32>
    %c0_72 = arith.constant 0 : index
    %c0_73 = arith.constant 0 : index
    %119 = vector.load %arg5[%c0_72, %c0_73] : memref<1x1xf32, #tpu.memory_space<vmem>>, vector<1x1xf32>
    %120 = arith.addf %118, %119 : vector<1x1xf32>
    %cst_74 = arith.constant 0.000000e+00 : f32
    %121 = vector.broadcast %cst_74 : f32 to vector<1x1xf32>
    %122 = arith.subf %121, %120 : vector<1x1xf32>
    %123 = math.exp %122 : vector<1x1xf32>
    %cst_75 = arith.constant 1.000000e+00 : f32
    %124 = vector.broadcast %cst_75 : f32 to vector<1x1xf32>
    %125 = arith.addf %124, %123 : vector<1x1xf32>
    %126 = tpu.reciprocal %125 {approx = true} : vector<1x1xf32> -> vector<1x1xf32>
    %c0_76 = arith.constant 0 : index
    %c0_77 = arith.constant 0 : index
    %c0_78 = arith.constant 0 : index
    %127 = vector.load %arg6[%c0_76, %c0_77, %c0_78] : memref<1x1x1xf32, #tpu.memory_space<vmem>>, vector<1x1x1xf32>
    %128 = vector.shape_cast %127 : vector<1x1x1xf32> to vector<1x1xf32>
    %129 = vector.shape_cast %126 : vector<1x1xf32> to vector<1x1x1xf32>
    tpu.vector_store %arg6[%c0_76, %c0_77, %c0_78], %129 {strides = array<i32>} : memref<1x1x1xf32, #tpu.memory_space<vmem>>, vector<1x1x1xf32>,
    return
  }
  func.func @transform_0(%arg0: i32) -> (i32, i32, i32, i32) {
    %c0_i32 = arith.constant 0 : i32
    %c0_i32_0 = arith.constant 0 : i32
    %c0_i32_1 = arith.constant 0 : i32
    %c0_i32_2 = arith.constant 0 : i32
    return %arg0, %c0_i32, %c0_i32_0, %c0_i32_1 : i32, i32, i32, i32
  }
  func.func @transform_1(%arg0: i32) -> (i32, i32, i32) {
    %c0_i32 = arith.constant 0 : i32
    %c0_i32_0 = arith.constant 0 : i32
    %c0_i32_1 = arith.constant 0 : i32
    %c0_i32_2 = arith.constant 0 : i32
    return %c0_i32, %c0_i32_0, %c0_i32_1 : i32, i32, i32
  }
  func.func @transform_2(%arg0: i32) -> (i32, i32) {
    %c0_i32 = arith.constant 0 : i32
    %c0_i32_0 = arith.constant 0 : i32
    %c0_i32_1 = arith.constant 0 : i32
    return %c0_i32, %c0_i32_0 : i32, i32
  }
  func.func @transform_3(%arg0: i32) -> (i32, i32) {
    %c0_i32 = arith.constant 0 : i32
    %c0_i32_0 = arith.constant 0 : i32
    %c0_i32_1 = arith.constant 0 : i32
    return %c0_i32, %c0_i32_0 : i32, i32
  }
  func.func @transform_4(%arg0: i32) -> (i32, i32) {
    %c0_i32 = arith.constant 0 : i32
    %c0_i32_0 = arith.constant 0 : i32
    %c0_i32_1 = arith.constant 0 : i32
    return %c0_i32, %c0_i32_0 : i32, i32
  }
  func.func @transform_5(%arg0: i32) -> (i32, i32, i32) {
    %c0_i32 = arith.constant 0 : i32
    %c0_i32_0 = arith.constant 0 : i32
    %c0_i32_1 = arith.constant 0 : i32
    return %arg0, %c0_i32, %c0_i32_0 : i32, i32, i32
  }
}

</mosaic_0001>

<bundles_post_ra>
// kernel: discriminator2_forward.5
= control target key start
LH: loop header
LB: loop body
LE: loop exit
PB: predicated region body
PF: predicated region fallthrough
CT: control target
= control target key end

     0   :  { %s2083_s12 = smov 0   ;;  %s2554_s0 = inlined_call_operand.vmem [shape: bf16[8,5,5,4], index: 0, kind: input, shape index: {}]   ;;  %s2555_s1 = inlined_call_operand.vmem [shape: bf16[16,4,8], index: 1, kind: input, shape index: {}]   ;;  %s2556_s2 = inlined_call_operand.vmem [shape: f32[1,8], index: 2, kind: input, shape index: {}]   ;;  %s2557_s3 = inlined_call_operand.vmem [shape: bf16[2,4,4,8], index: 3, kind: output, shape index: {}]  }
   0x1 LB: > { %s2089_s13 = sadd.s32 4294967295, %s2058_s12   ;;  %p1841_p0 = scmp.ge.s32.totalorder %s2058_s12, 1  ;;  %s2058_s12 = sphi %s2083_s12, %s13_s12  }
   0x2   : > { %p139_p1 = scmp.lt.s32.totalorder %s2058_s12, 3 }
   0x4   : > { %p140_p2 = pnand %p1841_p0, %p139_p1 }
   0x5   : > { %s1842_s18 = sshll.u32 (!%p140_p2), %s2089_s13, 2  ;;  %p171_p4 = scmp.lt.s32.totalorder (!%p140_p2), %s2089_s13, 1 }
   0x6   : > { %143 = sbr.rel (%p140_p2) target bundleno = 324 (0x144), region = 32  ;;  %p165_p3 = scmp.lt.s32.totalorder (!%p140_p2), %s1842_s18, 7 }
   0xb   : > { %v1861_v0 = vld [vmem:[%s2555_s1 + $0x2] sm:$0x3]  ;;  %vm228_vm0 = vcmask 1041408   ;;  %v200_v1 = vld [vmem:[%s2555_s1] sm:$0x3]  ;;  %v212_v2 = vlaneseq  ;;  %v2060_v3 = vmov 0.0  }
   0xc   : > { %1928 = vmatprep.subr.bf16.mxu0 %v2060_v3  ;;  %1934 = vmatprep.subr.bf16.mxu1 %v2060_v3  ;;  %v230_v4 = vsel %vm228_vm0, %v1861_v0, 0  ;;  %v298_v5 = vsel %vm228_vm0, %v200_v1, 0  ;;  %v2061_v6 = vmov 1983009808   ;;  %vm2062_vm1 = vmmov 0   ;;  %s2563_s18 = smov (!%p165_p3, %s1842_s18), 7 }
   0xd   : > { %1929 = vmatpush3.bf16.msra.mxu0 %v230_v4  ;;  %1935 = vmatpush3.bf16.msra.mxu1 %v298_v5  ;;  %v210_v7 = vunpack.c.l.s4 %v2061_v6  ;;  %v213_v8 = vshrl.u32 %v212_v2, 7  ;;  %v1864_v10 = vld [vmem:[%s2555_s1 + $0x4] sm:$0x3]  ;;  %v1866_v11 = vld [vmem:[%s2555_s1 + $0x6] sm:$0x3]  ;;  %s2024_s27 = smul.u32 20, %s2563_s18 }
   0xe   : > { %1930 = vmatprep.mubr.msk.bf16.mxu0 %vm2062_vm1, %v2060_v3  ;;  %1936 = vmatprep.mubr.msk.bf16.mxu1 %vm2062_vm1, %v2060_v3  ;;  %v1868_v12 = vld [vmem:[%s2555_s1 + $0x8] sm:$0x3]  ;;  %v1870_v13 = vld [vmem:[%s2555_s1 + $0xa] sm:$0x3]  ;;  %v1872_v15 = vld [vmem:[%s2555_s1 + $0xc] sm:$0x3] }
   0xf   : > { %v211_v9 = vunpack.c.0.s8 %v210_v7  ;;  %1940 = vmatprep.subr.bf16.mxu0 %v2060_v3  ;;  %1946 = vmatprep.subr.bf16.mxu1 %v2060_v3  ;;  %vm224_vm2 = vcmask 31744   ;;  %v459_v16 = vsel %vm228_vm0, %v1864_v10, 0  ;;  %v2129_v17 = vsel %vm228_vm0, %v1866_v11, 0  ;;  %v1874_v18 = vld [vmem:[%s2555_s1 + $0xe] sm:$0x3]  ;;  %s2137_s7 = scalar_lea.vmem %s2554_s0, %s2024_s27  ;;  %s2565_s13 = smov (!%p171_p4, %s2089_s13), 1 }
  0x10   : > { %v2140_v19 = vsel %vm228_vm0, %v1868_v12, 0  ;;  %v2143_v20 = vsel %vm228_vm0, %v1870_v13, 0  ;;  %v2146_v21 = vsel %vm228_vm0, %v1872_v15, 0  ;;  %v2149_v22 = vsel %vm228_vm0, %v1874_v18, 0  ;;  %v1846_v23 = vld [vmem:[%s2137_s7 + $0x14] sm:$0x7] }
  0x11   : > { %v2122_v14 = vsub.s32 %v211_v9, %v213_v8  ;;  %v2153_v24 = vld [vmem:[%s2137_s7 + $0x18] sm:$0x7]  ;;  %v2156_v25 = vld [vmem:[%s2137_s7 + $0x1c] sm:$0x7]  ;;  %vm373_vm3 = vsmask.f32 1280 }
  0x12   : > { %vm374_vm4 = vsmask.f32 3336  ;;  %v2159_v26 = vld [vmem:[%s2137_s7 + $0x20] sm:$0x7]  ;;  %v207_v27 = vcombine.low %v1846_v23, %v2153_v24  ;;  %v2169_v32 = vld [vmem:[%s2137_s7 + $0x4] sm:$0x7] }
  0x13   : > { %v510_v28 = vrot.slane %v1846_v23, %v2122_v14  ;;  %v518_v29 = vrot.slane %v2153_v24, %v2122_v14  ;;  %v526_v30 = vrot.slane %v2156_v25, %v2122_v14  ;;  %v177_v31 = vld [vmem:[%s2137_s7] sm:$0x7]  ;;  %v208_v33 = vcombine.low %v2156_v25, %v2159_v26  ;;  %v2184_v49 = vld [vmem:[%s2137_s7 + $0x8] sm:$0x7]  ;;  %v2187_v54 = vld [vmem:[%s2137_s7 + $0xc] sm:$0x7] }
  0x14   : > { %v534_v34 = vrot.slane %v2159_v26, %v2122_v14  ;;  %v277_v35 = vcombine.low %v177_v31, %v2169_v32  ;;  %v347_v36 = vrot.slane %v177_v31, %v2122_v14  ;;  %v215_v37 = vrot.slane %v207_v27, %v2122_v14  ;;  %vm375_vm7 = vmor %vm373_vm3, %vm374_vm4  ;;  %s1895_s28 = sshll.u32 %s2565_s13, 3 }
  0x15   : > { %v511_v38 = vcombine.high %v510_v28, %v510_v28  ;;  %v519_v39 = vcombine.high %v518_v29, %v518_v29  ;;  %v527_v40 = vcombine.high %v526_v30, %v526_v30  ;;  %vm376_vm5 = vsmask.f32 5392  ;;  %s175_s4 = scalar_lea.vmem %s2557_s3, %s1895_s28 }
  0x16   : > { %v222_v41 = vrot.slane %v208_v33, %v2122_v14  ;;  %v535_v42 = vcombine.high %v534_v34, %v534_v34  ;;  %v537_v43 = vshrl.u32 %v510_v28, 16  ;;  %v540_v44 = vshll.u32 %v510_v28, 16  ;;  %vm2223_vm8 = vmor %vm375_vm7, %vm376_vm5 }
  0x17   : > { %v2179_v45 = vshll.u32 %v511_v38, 16  ;;  %v551_v46 = vshrl.u32 %v518_v29, 16  ;;  %v554_v47 = vshll.u32 %v518_v29, 16  ;;  %v2181_v48 = vshll.u32 %v519_v39, 16 }
  0x18   : > { %v223_v50 = vcombine.low %v215_v37, %v222_v41  ;;  %v539_v51 = vrot.slane %v537_v43, 6  ;;  %v542_v52 = vrot.slane %v540_v44, 7  ;;  %v565_v53 = vshrl.u32 %v526_v30, 16 }
  0x19   : > { %vm378_vm6 = vsmask.f32 7448  ;;  %v548_v55 = vrot.slane %v2179_v45, 7  ;;  %v2190_v56 = vrot.slane %v551_v46, 6  ;;  %v2192_v57 = vrot.slane %v554_v47, 7 }
  0x1a   : > { %v568_v58 = vshll.u32 %v526_v30, 16  ;;  %1931 = vmatmul.mubr.msk.bf16.vlgmr.msra.gmra.mxu0 %vm224_vm2, %v223_v50  ;;  %v543_v59 = vor.u32 %v542_v52, %v539_v51  ;;  %v2195_v60 = vrot.slane %v565_v53, 6  ;;  %v2197_v61 = vshll.u32 %v527_v40, 16  ;;  %vm2234_vm9 = vmor %vm2223_vm8, %vm378_vm6  ;;  %v1890_v50 = vld [vmem:[%s2555_s1 + $0x1e] sm:$0x3] }
  0x1b   : > { %v579_v62 = vshrl.u32 %v534_v34, 16  ;;  %v582_v0 = vshll.u32 %v534_v34, 16  ;;  %v2201_v1 = vshll.u32 %v535_v42, 16  ;;  %v278_v2 = vcombine.low %v2184_v49, %v2187_v54  ;;  %1941 = vmatpush3.bf16.msra.mxu0 %v459_v16  ;;  %1942 = vmatprep.mubr.msk.bf16.mxu0 %vm2062_vm1, %v2060_v3 }
  0x1c   : > { %v2199_v63 = vrot.slane %v568_v58, 7  ;;  %v544_v4 = vrot.slane %v543_v59, 2  ;;  %v285_v6 = vrot.slane %v277_v35, %v2122_v14  ;;  %v348_v7 = vcombine.high %v347_v36, %v347_v36  ;;  %1952 = vmatprep.subr.bf16.mxu0 %v2060_v3 }
  0x1d   : > { %v2207_v5 = vrot.slane %v579_v62, 6  ;;  %v2211_v8 = vrot.slane %v582_v0, 7  ;;  %v292_v9 = vrot.slane %v278_v2, %v2122_v14  ;;  %v355_v10 = vrot.slane %v2169_v32, %v2122_v14 }
  0x1e   : > { %v363_v11 = vrot.slane %v2184_v49, %v2122_v14  ;;  %v371_v12 = vrot.slane %v2187_v54, %v2122_v14  ;;  %v381_v13 = vshrl.u32 %v347_v36, 16  ;;  %v384_v15 = vshll.u32 %v347_v36, 16 }
  0x1f   : > { %v390_v16 = vshll.u32 %v348_v7, 16  ;;  %v293_v18 = vcombine.low %v285_v6, %v292_v9  ;;  %v356_v23 = vcombine.high %v355_v10, %v355_v10  ;;  %v395_v28 = vshrl.u32 %v355_v10, 16 }
  0x20   : > { %v364_v27 = vcombine.high %v363_v11, %v363_v11  ;;  %v372_v29 = vcombine.high %v371_v12, %v371_v12  ;;  %v383_v30 = vrot.slane %v381_v13, 6  ;;  %v386_v31 = vrot.slane %v384_v15, 7 }
  0x21   : > { %v392_v33 = vrot.slane %v390_v16, 7  ;;  %1937 = vmatmul.mubr.msk.bf16.vlgmr.msra.gmra.mxu1 %vm224_vm2, %v293_v18  ;;  %v397_v35 = vrot.slane %v395_v28, 6  ;;  %v398_v37 = vshll.u32 %v355_v10, 16  ;;  %v404_v38 = vshll.u32 %v356_v23, 16  ;;  %v2272_v23 = vld [vmem:[%s2137_s7 + $0x2c] sm:$0x7] }
  0x22   : > { %v409_v36 = vshrl.u32 %v363_v11, 16  ;;  %v387_v39 = vor.u32 %v386_v31, %v383_v30  ;;  %v412_v40 = vshll.u32 %v363_v11, 16  ;;  %v418_v41 = vshll.u32 %v364_v27, 16  ;;  %1947 = vmatpush3.bf16.msra.mxu1 %v2129_v17  ;;  %1948 = vmatprep.mubr.msk.bf16.mxu1 %vm2062_vm1, %v2060_v3  ;;  %v2287_v30 = vld [vmem:[%s2137_s7 + $0x34] sm:$0x7] }
  0x23   : > { %v423_v42 = vshrl.u32 %v371_v12, 16  ;;  %v400_v43 = vrot.slane %v398_v37, 7  ;;  %v426_v46 = vshll.u32 %v371_v12, 16  ;;  %v432_v47 = vshll.u32 %v372_v29, 16  ;;  %1958 = vmatprep.subr.bf16.mxu1 %v2060_v3  ;;  %v2284_v29 = vld [vmem:[%s2137_s7 + $0x30] sm:$0x7] }
  0x24   : > { %v411_v44 = vrot.slane %v409_v36, 6  ;;  %v388_v51 = vrot.slane %v387_v39, 2  ;;  %v414_v52 = vrot.slane %v412_v40, 7  ;;  %v406_v17 = vrot.slane %v404_v38, 7 }
  0x25   : > { %v425_v53 = vrot.slane %v423_v42, 6  ;;  %v428_v58 = vrot.slane %v426_v46, 7  ;;  %v401_v59 = vor.u32 %v400_v43, %v397_v35  ;;  %v420_v62 = vrot.slane %v418_v41, 7  ;;  %v1856_v46 = vld [vmem:[%s2137_s7 + $0x3c] sm:$0x7] }
  0x26   : > { %v434_v0 = vrot.slane %v432_v47, 7  ;;  %v393_v2 = vsel %vm2234_vm9, %v388_v51, %v392_v33  ;;  %v415_v6 = vor.u32 %v414_v52, %v411_v44  ;;  %v549_v7 = vsel %vm2234_vm9, %v544_v4, %v548_v55  ;;  %v2313_v47 = vld [vmem:[%s2137_s7 + $0x40] sm:$0x7] }
  0x27   : > { %v557_v9 = vor.u32 %v2192_v57, %v2190_v56  ;;  %v402_v10 = vrot.slane %v401_v59, 2  ;;  %v429_v11 = vor.u32 %v428_v58, %v425_v53  ;;  %v562_v12 = vrot.slane %v2181_v48, 7  ;;  %v2319_v58 = vld [vmem:[%s2137_s7 + $0x44] sm:$0x7]  ;;  %v2322_v59 = vld [vmem:[%s2137_s7 + $0x48] sm:$0x7] }
  0x28   : > { %v571_v13 = vor.u32 %v2199_v63, %v2195_v60  ;;  %v416_v15 = vrot.slane %v415_v6, 2  ;;  %v576_v18 = vrot.slane %v2197_v61, 7  ;;  %v585_v45 = vor.u32 %v2211_v8, %v2207_v5  ;;  %v1876_v60 = vld [vmem:[%s2555_s1 + $0x10] sm:$0x3]  ;;  %v1851_v8 = vld [vmem:[%s2137_s7 + $0x28] sm:$0x7] }
  0x29   : > { %v558_v16 = vrot.slane %v557_v9, 2  ;;  %v2255_v55 = vsel %vm2234_vm9, %v402_v10, %v406_v17  ;;  %v430_v56 = vrot.slane %v429_v11, 2  ;;  %v590_v48 = vrot.slane %v2201_v1, 7 }
  0x2a   : > { %v572_v57 = vrot.slane %v571_v13, 2  ;;  %v2263_v61 = vsel %vm2234_vm9, %v416_v15, %v420_v62  ;;  %v438_v63 = vcombine.low %v393_v2, %v2255_v55  ;;  %v586_v5 = vrot.slane %v585_v45, 2 }
  0x2b   : > { %v2268_v4 = vsel %vm2234_vm9, %v558_v16, %v562_v12  ;;  %v2276_v1 = vsel %vm2234_vm9, %v430_v56, %v434_v0  ;;  %v666_v31 = vcombine.low %v1851_v8, %v2272_v23  ;;  %v667_v37 = vcombine.low %v2284_v29, %v2287_v30 }
  0x2c   : > { %v2280_v27 = vsel %vm2234_vm9, %v572_v57, %v576_v18  ;;  %v594_v28 = vcombine.low %v549_v7, %v2268_v4  ;;  %v439_v33 = vcombine.low %v2263_v61, %v2276_v1  ;;  %v446_v34 = vrot.slane %v438_v63, %v2122_v14 }
  0x2d   : > { %v2295_v35 = vsel %vm2234_vm9, %v586_v5, %v590_v48  ;;  %v810_v39 = vrot.slane %v1851_v8, %v2122_v14  ;;  %v2304_v40 = vsel %vm228_vm0, %v1876_v60, 0  ;;  %v674_v42 = vrot.slane %v666_v31, %v2122_v14 }
  0x2e   : > { %v595_v38 = vcombine.low %v2280_v27, %v2295_v35  ;;  %v602_v36 = vrot.slane %v594_v28, %v2122_v14  ;;  %v453_v41 = vrot.slane %v439_v33, %v2122_v14  ;;  %v681_v43 = vrot.slane %v667_v37, %v2122_v14 }
  0x2f   : > { %v818_v44 = vrot.slane %v2272_v23, %v2122_v14  ;;  %v826_v52 = vrot.slane %v2284_v29, %v2122_v14  ;;  %v837_v53 = vshrl.u32 %v810_v39, 16  ;;  %v840_v17 = vshll.u32 %v810_v39, 16 }
  0x30   : > { %v609_v51 = vrot.slane %v595_v38, %v2122_v14  ;;  %v454_v62 = vcombine.low %v446_v34, %v453_v41  ;;  %v834_v0 = vrot.slane %v2287_v30, %v2122_v14  ;;  %v738_v2 = vcombine.low %v1856_v46, %v2313_v47 }
  0x31   : > { %v739_v6 = vcombine.low %v2319_v58, %v2322_v59  ;;  %v839_v9 = vrot.slane %v837_v53, 6  ;;  %v842_v10 = vrot.slane %v840_v17, 7  ;;  %v2330_v11 = vrot.slane %v1856_v46, %v2122_v14 }
  0x32   : > { %v610_v7 = vcombine.low %v602_v36, %v609_v51  ;;  %1943 = vmatmul.mubr.msk.bf16.vlgmr.msra.gmra.mxu0 %vm224_vm2, %v454_v62  ;;  %v682_v12 = vcombine.low %v674_v42, %v681_v43  ;;  %v746_v13 = vrot.slane %v738_v2, %v2122_v14  ;;  %v2337_v16 = vrot.slane %v2313_v47, %v2122_v14 }
  0x33   : > { %v753_v15 = vrot.slane %v739_v6, %v2122_v14  ;;  %1953 = vmatpush3.bf16.msra.mxu0 %v2140_v19  ;;  %v2343_v18 = vrot.slane %v2319_v58, %v2122_v14  ;;  %v993_v45 = vshrl.u32 %v2330_v11, 16  ;;  %v996_v56 = vshll.u32 %v2330_v11, 16  ;;  %1954 = vmatprep.mubr.msk.bf16.mxu0 %vm2062_vm1, %v2060_v3 }
  0x34   : > { %1949 = vmatmul.mubr.msk.bf16.vlgmr.msra.gmra.mxu1 %vm224_vm2, %v610_v7  ;;  %v811_v57 = vcombine.high %v810_v39, %v810_v39  ;;  %v2352_v48 = vrot.slane %v2322_v59, %v2122_v14  ;;  %v819_v60 = vcombine.high %v818_v44, %v818_v44  ;;  %v827_v19 = vcombine.high %v826_v52, %v826_v52 }
  0x35   : > { %1959 = vmatpush3.bf16.msra.mxu1 %v2143_v20  ;;  %v851_v63 = vshrl.u32 %v818_v44, 16  ;;  %1960 = vmatprep.mubr.msk.bf16.mxu1 %vm2062_vm1, %v2060_v3  ;;  %v754_v5 = vcombine.low %v746_v13, %v753_v15  ;;  %v995_v8 = vrot.slane %v993_v45, 6  ;;  %v835_v28 = vcombine.high %v834_v0, %v834_v0 }
  0x36   : > { %1964 = vmatprep.subr.bf16.mxu0 %v2060_v3  ;;  %v843_v31 = vor.u32 %v842_v10, %v839_v9  ;;  %1970 = vmatprep.subr.bf16.mxu1 %v2060_v3  ;;  %v846_v20 = vshll.u32 %v811_v57, 16  ;;  %v854_v34 = vshll.u32 %v818_v44, 16  ;;  %v860_v37 = vshll.u32 %v819_v60, 16 }
  0x37   : > { %v853_v33 = vrot.slane %v851_v63, 6  ;;  %v998_v38 = vrot.slane %v996_v56, 7  ;;  %v865_v36 = vshrl.u32 %v826_v52, 16  ;;  %v868_v39 = vshll.u32 %v826_v52, 16 }
  0x38   : > { %v874_v41 = vshll.u32 %v827_v19, 16  ;;  %v844_v42 = vrot.slane %v843_v31, 2  ;;  %v848_v43 = vrot.slane %v846_v20, 7  ;;  %v856_v46 = vrot.slane %v854_v34, 7 }
  0x39   : > { %v879_v51 = vshrl.u32 %v834_v0, 16  ;;  %v862_v53 = vrot.slane %v860_v37, 7  ;;  %v867_v17 = vrot.slane %v865_v36, 6  ;;  %v870_v62 = vrot.slane %v868_v39, 7 }
  0x3a   : > { %v882_v2 = vshll.u32 %v834_v0, 16  ;;  %1955 = vmatmul.mubr.msk.bf16.vlgmr.msra.gmra.mxu0 %vm224_vm2, %v682_v12  ;;  %v857_v6 = vor.u32 %v856_v46, %v853_v33  ;;  %v876_v7 = vrot.slane %v874_v41, 7  ;;  %v888_v10 = vshll.u32 %v835_v28, 16 }
  0x3b   : > { %v881_v9 = vrot.slane %v879_v51, 6  ;;  %1965 = vmatpush3.bf16.msra.mxu0 %v2146_v21  ;;  %v871_v44 = vor.u32 %v870_v62, %v867_v17  ;;  %v967_v13 = vcombine.high %v2330_v11, %v2330_v11  ;;  %v975_v15 = vcombine.high %v2337_v16, %v2337_v16  ;;  %1966 = vmatprep.mubr.msk.bf16.mxu0 %vm2062_vm1, %v2060_v3 }
  0x3c   : > { %1961 = vmatmul.mubr.msk.bf16.vlgmr.msra.gmra.mxu1 %vm224_vm2, %v754_v5  ;;  %v884_v52 = vrot.slane %v882_v2, 7  ;;  %v849_v0 = vsel %vm2234_vm9, %v844_v42, %v848_v43  ;;  %v858_v12 = vrot.slane %v857_v6, 2  ;;  %v890_v45 = vrot.slane %v888_v10, 7  ;;  %1976 = vmatprep.subr.bf16.mxu0 %v2060_v3 }
  0x3d   : > { %1971 = vmatpush3.bf16.msra.mxu1 %v2149_v22  ;;  %v983_v21 = vcombine.high %v2343_v18, %v2343_v18  ;;  %1972 = vmatprep.mubr.msk.bf16.mxu1 %vm2062_vm1, %v2060_v3  ;;  %v872_v11 = vrot.slane %v871_v44, 2  ;;  %v999_v57 = vor.u32 %v998_v38, %v995_v8  ;;  %v1002_v22 = vshll.u32 %v967_v13, 16 }
  0x3e   : > { %v885_v56 = vor.u32 %v884_v52, %v881_v9  ;;  %v2377_v60 = vsel %vm2234_vm9, %v858_v12, %v862_v53  ;;  %v1007_v19 = vshrl.u32 %v2337_v16, 16  ;;  %v1010_v63 = vshll.u32 %v2337_v16, 16  ;;  %1982 = vmatprep.subr.bf16.mxu1 %v2060_v3 }
  0x3f   : > { %v1016_v5 = vshll.u32 %v975_v15, 16  ;;  %v2384_v28 = vsel %vm2234_vm9, %v872_v11, %v876_v7  ;;  %v894_v20 = vcombine.low %v849_v0, %v2377_v60  ;;  %v991_v8 = vcombine.high %v2352_v48, %v2352_v48  ;;  %v181_v15 = vld [vmem:[%s2137_s7 + $0x10] sm:$0x7] }
  0x40   : > { %v886_v31 = vrot.slane %v885_v56, 2  ;;  %v1000_v33 = vrot.slane %v999_v57, 2  ;;  %v1004_v34 = vrot.slane %v1002_v22, 7  ;;  %v1009_v37 = vrot.slane %v1007_v19, 6  ;;  %v1850_v22 = vld [vmem:[%s2137_s7 + $0x24] sm:$0x7] }
  0x41   : > { %v1012_v38 = vrot.slane %v1010_v63, 7  ;;  %v1018_v36 = vrot.slane %v1016_v5, 7  ;;  %v1021_v39 = vshrl.u32 %v2343_v18, 16  ;;  %v1024_v41 = vshll.u32 %v2343_v18, 16 }
  0x42   : > { %v2391_v16 = vsel %vm2234_vm9, %v886_v31, %v890_v45  ;;  %v902_v43 = vrot.slane %v894_v20, %v2122_v14  ;;  %v1030_v51 = vshll.u32 %v983_v21, 16  ;;  %v1035_v62 = vshrl.u32 %v2352_v48, 16 }
  0x43   : > { %v895_v42 = vcombine.low %v2384_v28, %v2391_v16  ;;  %v1013_v46 = vor.u32 %v1012_v38, %v1009_v37  ;;  %v1023_v53 = vrot.slane %v1021_v39, 6  ;;  %v1026_v17 = vrot.slane %v1024_v41, 7  ;;  %v1880_v37 = vld [vmem:[%s2555_s1 + $0x14] sm:$0x3] }
  0x44   : > { %v1038_v2 = vshll.u32 %v2352_v48, 16  ;;  %v1005_v7 = vsel %vm2234_vm9, %v1000_v33, %v1004_v34  ;;  %v1044_v9 = vshll.u32 %v991_v8, 16  ;;  %v1032_v44 = vrot.slane %v1030_v51, 7 }
  0x45   : > { %v909_v6 = vrot.slane %v895_v42, %v2122_v14  ;;  %v1014_v18 = vrot.slane %v1013_v46, 2  ;;  %v1027_v10 = vor.u32 %v1026_v17, %v1023_v53  ;;  %v1037_v52 = vrot.slane %v1035_v62, 6 }
  0x46   : > { %v1040_v13 = vrot.slane %v1038_v2, 7  ;;  %v1046_v45 = vrot.slane %v1044_v9, 7  ;;  %v1119_v48 = vcombine.low %v2169_v32, %v2184_v49  ;;  %v1120_v57 = vcombine.low %v2187_v54, %v181_v15 }
  0x47   : > { %v910_v0 = vcombine.low %v902_v43, %v909_v6  ;;  %v2406_v12 = vsel %vm2234_vm9, %v1014_v18, %v1018_v36  ;;  %v1028_v21 = vrot.slane %v1027_v10, 2  ;;  %v1260_v63 = vrot.slane %v181_v15, %v2122_v14  ;;  %v1878_v36 = vld [vmem:[%s2555_s1 + $0x12] sm:$0x3]  ;;  %v1855_v15 = vld [vmem:[%s2137_s7 + $0x38] sm:$0x7] }
  0x48   : > { %v1041_v11 = vor.u32 %v1040_v13, %v1037_v52  ;;  %v1050_v56 = vcombine.low %v1005_v7, %v2406_v12  ;;  %v1127_v19 = vrot.slane %v1119_v48, %v2122_v14  ;;  %v1188_v5 = vcombine.low %v2153_v24, %v2156_v25 }
  0x49   : > { %1967 = vmatmul.mubr.msk.bf16.vlgmr.msra.gmra.mxu0 %vm224_vm2, %v910_v0  ;;  %v1189_v31 = vcombine.low %v2159_v26, %v1850_v22  ;;  %v2421_v32 = vsel %vm2234_vm9, %v1028_v21, %v1032_v44  ;;  %v1134_v54 = vrot.slane %v1120_v57, %v2122_v14  ;;  %v1263_v20 = vshrl.u32 %v1260_v63, 16 }
  0x4a   : > { %v1042_v49 = vrot.slane %v1041_v11, 2  ;;  %1977 = vmatpush3.bf16.msra.mxu0 %v2304_v40  ;;  %1978 = vmatprep.mubr.msk.bf16.mxu0 %vm2062_vm1, %v2060_v3  ;;  %v1266_v8 = vshll.u32 %v1260_v63, 16  ;;  %v2429_v24 = vrot.slane %v1188_v5, %v2122_v14  ;;  %v1058_v40 = vrot.slane %v1050_v56, %v2122_v14  ;;  %v1882_v11 = vld [vmem:[%s2555_s1 + $0x16] sm:$0x3] }
  0x4b   : > { %1988 = vmatprep.subr.bf16.mxu0 %v2060_v3  ;;  %v2432_v25 = vrot.slane %v1189_v31, %v2122_v14  ;;  %v1135_v33 = vcombine.low %v1127_v19, %v1134_v54  ;;  %v1350_v34 = vrot.slane %v1850_v22, %v2122_v14  ;;  %v1265_v39 = vrot.slane %v1263_v20, 6  ;;  %v1884_v31 = vld [vmem:[%s2555_s1 + $0x18] sm:$0x3] }
  0x4c   : > { %v2436_v26 = vsel %vm2234_vm9, %v1042_v49, %v1046_v45  ;;  %v1268_v41 = vrot.slane %v1266_v8, 7  ;;  %v1261_v51 = vcombine.high %v1260_v63, %v1260_v63  ;;  %v1299_v17 = vsel %vm228_vm0, %v1880_v37, 0  ;;  %v1860_v63 = vld [vmem:[%s2137_s7 + $0x4c] sm:$0x7] }
  0x4d   : > { %v1051_v38 = vcombine.low %v2421_v32, %v2436_v26  ;;  %v1204_v42 = vcombine.low %v2429_v24, %v2432_v25  ;;  %v1353_v43 = vshrl.u32 %v1350_v34, 16  ;;  %v1356_v46 = vshll.u32 %v1350_v34, 16 }
  0x4e   : > { %v1269_v62 = vor.u32 %v1268_v41, %v1265_v39  ;;  %v1351_v2 = vcombine.high %v1350_v34, %v1350_v34  ;;  %v1209_v6 = vsel %vm228_vm0, %v1878_v36, 0  ;;  %v1272_v9 = vshll.u32 %v1261_v51, 16 }
  0x4f   : > { %v1065_v53 = vrot.slane %v1051_v38, %v2122_v14  ;;  %v1355_v7 = vrot.slane %v1353_v43, 6  ;;  %v1358_v18 = vrot.slane %v1356_v46, 7  ;;  %v1278_v52 = vcombine.low %v2255_v55, %v2263_v61 }
  0x50   : > { %v1270_v44 = vrot.slane %v1269_v62, 2  ;;  %v1362_v13 = vshll.u32 %v1351_v2, 16  ;;  %v1274_v0 = vrot.slane %v1272_v9, 7  ;;  %v1578_v21 = vrot.slane %v1855_v15, %v2122_v14  ;;  %v1888_v9 = vld [vmem:[%s2555_s1 + $0x1c] sm:$0x3] }
  0x51   : > { %v1066_v10 = vcombine.low %v1058_v40, %v1065_v53  ;;  %1979 = vmatmul.mubr.msk.bf16.vlgmr.msra.gmra.mxu0 %vm224_vm2, %v1135_v33  ;;  %v1359_v45 = vor.u32 %v1358_v18, %v1355_v7  ;;  %v1286_v57 = vrot.slane %v1278_v52, %v2122_v14  ;;  %v1368_v22 = vcombine.low %v2268_v4, %v2280_v27 }
  0x52   : > { %1989 = vmatpush3.bf16.msra.mxu0 %v1299_v17  ;;  %1990 = vmatprep.mubr.msk.bf16.mxu0 %vm2062_vm1, %v2060_v3  ;;  %v1364_v48 = vrot.slane %v1362_v13, 7  ;;  %v1275_v55 = vsel %vm2234_vm9, %v1270_v44, %v1274_v0  ;;  %v1437_v19 = vcombine.low %v2272_v23, %v2284_v29  ;;  %v1581_v49 = vshrl.u32 %v1578_v21, 16 }
  0x53   : > { %1973 = vmatmul.mubr.msk.bf16.vlgmr.msra.gmra.mxu1 %vm224_vm2, %v1066_v10  ;;  %2000 = vmatprep.subr.bf16.mxu0 %v2060_v3  ;;  %v1360_v61 = vrot.slane %v1359_v45, 2  ;;  %v1279_v56 = vcombine.low %v2276_v1, %v1275_v55  ;;  %v1584_v54 = vshll.u32 %v1578_v21, 16  ;;  %v1438_v8 = vcombine.low %v2287_v30, %v1855_v15 }
  0x54   : > { %1983 = vmatpush3.bf16.msra.mxu1 %v1209_v6  ;;  %1984 = vmatprep.mubr.msk.bf16.mxu1 %vm2062_vm1, %v2060_v3  ;;  %v1389_v4 = vsel %vm228_vm0, %v1882_v11, 0  ;;  %v1583_v27 = vrot.slane %v1581_v49, 6  ;;  %v1668_v29 = vrot.slane %v1860_v63, %v2122_v14  ;;  %v1376_v25 = vrot.slane %v1368_v22, %v2122_v14 }
  0x55   : > { %1994 = vmatprep.subr.bf16.mxu1 %v2060_v3  ;;  %v1365_v5 = vsel %vm2234_vm9, %v1360_v61, %v1364_v48  ;;  %v1293_v1 = vrot.slane %v1279_v56, %v2122_v14  ;;  %v1586_v23 = vrot.slane %v1584_v54, 7  ;;  %v1458_v40 = vsel %vm228_vm0, %v1884_v31, 0 }
  0x56   : > { %v1369_v20 = vcombine.low %v2295_v35, %v1365_v5  ;;  %v1445_v33 = vrot.slane %v1437_v19, %v2122_v14  ;;  %v1671_v34 = vshrl.u32 %v1668_v29, 16  ;;  %v1674_v37 = vshll.u32 %v1668_v29, 16 }
  0x57   : > { %v1294_v24 = vcombine.low %v1286_v57, %v1293_v1  ;;  %v1579_v38 = vcombine.high %v1578_v21, %v1578_v21  ;;  %v1587_v36 = vor.u32 %v1586_v23, %v1583_v27  ;;  %v1452_v35 = vrot.slane %v1438_v8, %v2122_v14 }
  0x58   : > { %v1383_v30 = vrot.slane %v1369_v20, %v2122_v14  ;;  %v1669_v39 = vcombine.high %v1668_v29, %v1668_v29  ;;  %v1673_v41 = vrot.slane %v1671_v34, 6  ;;  %v1676_v43 = vrot.slane %v1674_v37, 7 }
  0x59   : > { %1991 = vmatmul.mubr.msk.bf16.vlgmr.msra.gmra.mxu0 %vm224_vm2, %v1294_v24  ;;  %v1588_v46 = vrot.slane %v1587_v36, 2  ;;  %v1590_v51 = vshll.u32 %v1579_v38, 16  ;;  %v1506_v17 = vcombine.low %v2313_v47, %v2319_v58  ;;  %v1507_v62 = vcombine.low %v2322_v59, %v1860_v63 }
  0x5a   : > { %2001 = vmatpush3.bf16.msra.mxu0 %v1458_v40  ;;  %v1680_v53 = vshll.u32 %v1669_v39, 16  ;;  %2002 = vmatprep.mubr.msk.bf16.mxu0 %vm2062_vm1, %v2060_v3  ;;  %v1677_v6 = vor.u32 %v1676_v43, %v1673_v41  ;;  %v1384_v7 = vcombine.low %v1376_v25, %v1383_v30  ;;  %v1453_v18 = vcombine.low %v1445_v33, %v1452_v35 }
  0x5b   : > { %1985 = vmatmul.mubr.msk.bf16.vlgmr.msra.gmra.mxu1 %vm224_vm2, %v1204_v42  ;;  %v1886_v42 = vld [vmem:[%s2555_s1 + $0x1a] sm:$0x3]  ;;  %2012 = vmatprep.subr.bf16.mxu0 %v2060_v3  ;;  %v1592_v2 = vrot.slane %v1590_v51, 7  ;;  %v1596_v10 = vcombine.low %v2377_v60, %v2384_v28  ;;  %v1514_v59 = vrot.slane %v1506_v17, %v2122_v14  ;;  %v1617_v15 = vsel %vm228_vm0, %v1888_v9, 0 }
  0x5c   : > { %1995 = vmatpush3.bf16.msra.mxu1 %v1389_v4  ;;  %1996 = vmatprep.mubr.msk.bf16.mxu1 %vm2062_vm1, %v2060_v3  ;;  %v1682_v44 = vrot.slane %v1680_v53, 7  ;;  %v1678_v13 = vrot.slane %v1677_v6, 2  ;;  %v1527_v47 = vsel %vm228_vm0, %v1886_v42, 0  ;;  %v1521_v60 = vrot.slane %v1507_v62, %v2122_v14 }
  0x5d   : > { %2006 = vmatprep.subr.bf16.mxu1 %v2060_v3  ;;  %v1593_v52 = vsel %vm2234_vm9, %v1588_v46, %v1592_v2  ;;  %v1604_v28 = vrot.slane %v1596_v10, %v2122_v14  ;;  %v1686_v55 = vcombine.low %v2406_v12, %v2421_v32  ;;  %v1707_v21 = vsel %vm228_vm0, %v1890_v50, 0 }
  0x5e   : > { %v1597_v58 = vcombine.low %v2391_v16, %v1593_v52  ;;  %v1683_v0 = vsel %vm2234_vm9, %v1678_v13, %v1682_v44  ;;  %v1522_v16 = vcombine.low %v1514_v59, %v1521_v60  ;;  %vm1777_vm11 = vcmask 58368  }
  0x5f   : > { %v1687_v61 = vcombine.low %v2436_v26, %v1683_v0  ;;  %v1694_v11 = vrot.slane %v1686_v55, %v2122_v14 }
  0x60   : > { %v1611_v45 = vrot.slane %v1597_v58, %v2122_v14 }
  0x61   : > { %2003 = vmatmul.mubr.msk.bf16.vlgmr.msra.gmra.mxu0 %vm224_vm2, %v1453_v18  ;;  %v1701_v56 = vrot.slane %v1687_v61, %v2122_v14 }
  0x62   : > { %2013 = vmatpush3.bf16.msra.mxu0 %v1617_v15  ;;  %2014 = vmatprep.mubr.msk.bf16.mxu0 %vm2062_vm1, %v2060_v3  ;;  %v1612_v48 = vcombine.low %v1604_v28, %v1611_v45 }
  0x63   : > { %1997 = vmatmul.mubr.msk.bf16.vlgmr.msra.gmra.mxu1 %vm224_vm2, %v1384_v7  ;;  %v1702_v57 = vcombine.low %v1694_v11, %v1701_v56 }
  0x64   : > { %2007 = vmatpush3.bf16.msra.mxu1 %v1527_v47  ;;  %2008 = vmatprep.mubr.msk.bf16.mxu1 %vm2062_vm1, %v2060_v3 }
  0x65   : > { %2018 = vmatprep.subr.bf16.mxu1 %v2060_v3 }
  0x69   : > { %2015 = vmatmul.mubr.msk.bf16.vlgmr.msra.gmra.mxu0 %vm224_vm2, %v1612_v48 }
  0x6b   : > { %2009 = vmatmul.mubr.msk.bf16.vlgmr.msra.gmra.mxu1 %vm224_vm2, %v1522_v16 }
  0x6c   : > { %2019 = vmatpush3.bf16.msra.mxu1 %v1707_v21  ;;  %2020 = vmatprep.mubr.msk.bf16.mxu1 %vm2062_vm1, %v2060_v3 }
  0x73   : > { %2021 = vmatmul.mubr.msk.bf16.vlgmr.msra.gmra.mxu1 %vm224_vm2, %v1702_v57 }
  0xda   : > { %v266_v12 = vpop.f32.mrf.mxu0 }
  0xdc   : > { %v1932_v32 = vpop.f32.mrf.mxu0 }
  0xde   : > { %v269_v26 = vpop.f32.mrf.mxu0 }
  0xe0   : > { %v1933_v22 = vpop.f32.mrf.mxu0 }
  0xe1   : > { %v334_v19 = vpop.f32.mrf.mxu1 }
  0xe2   : > { %v335_v38 = vadd.f32 %v334_v19, %v266_v12 }
  0xe3   : > { %v1938_v63 = vpop.f32.mrf.mxu1 }
  0xe5   : > { %v337_v5 = vpop.f32.mrf.mxu1 }
  0xe6   : > { %v338_v39 = vadd.f32 %v337_v5, %v269_v26 }
  0xe7   : > { %v1939_v31 = vpop.f32.mrf.mxu1 }
  0xf2   : > { %v495_v49 = vpop.f32.mrf.mxu0 }
  0xf3   : > { %v502_v30 = vadd.f32 %v495_v49, %v335_v38 }
  0xf4   : > { %v651_v54 = vpop.f32.mrf.mxu1  ;;  %v1944_v1 = vpop.f32.mrf.mxu0 }
  0xf5   : > { %v658_v43 = vadd.f32 %v651_v54, %v502_v30 }
  0xf6   : > { %v1950_v20 = vpop.f32.mrf.mxu1  ;;  %v498_v14 = vpop.f32.mrf.mxu0 }
  0xf7   : > { %v503_v46 = vadd.f32 %v498_v14, %v338_v39 }
  0xf8   : > { %v654_v8 = vpop.f32.mrf.mxu1  ;;  %v1945_v4 = vpop.f32.mrf.mxu0 }
  0xf9   : > { %v659_v62 = vadd.f32 %v654_v8, %v503_v46 }
  0xfa   : > { %v1951_v27 = vpop.f32.mrf.mxu1  ;;  %v723_v3 = vpop.f32.mrf.mxu0 }
  0xfb   : > { %v730_v53 = vadd.f32 %v723_v3, %v658_v43 }
  0xfc   : > { %v795_v23 = vpop.f32.mrf.mxu1  ;;  %v1956_v29 = vpop.f32.mrf.mxu0 }
  0xfd   : > { %v802_v7 = vadd.f32 %v795_v23, %v730_v53 }
  0xfe   : > { %v1962_v24 = vpop.f32.mrf.mxu1  ;;  %v726_v25 = vpop.f32.mrf.mxu0 }
  0xff   : > { %v731_v18 = vadd.f32 %v726_v25, %v659_v62 }
 0x100   : > { %v798_v40 = vpop.f32.mrf.mxu1  ;;  %v1957_v33 = vpop.f32.mrf.mxu0 }
 0x101   : > { %v803_v13 = vadd.f32 %v798_v40, %v731_v18 }
 0x102   : > { %v1963_v34 = vpop.f32.mrf.mxu1 }
 0x109   : > { %v951_v37 = vpop.f32.mrf.mxu0 }
 0x10a   : > { %v958_v44 = vadd.f32 %v951_v37, %v802_v7  ;;  %v1892_v37 = vld [vmem:[%s2556_s2] ss:$0 sm:$0xff] }
 0x10b   : > { %v1968_v36 = vpop.f32.mrf.mxu0 }
 0x10d   : > { %v954_v35 = vpop.f32.mrf.mxu0 }
 0x10e   : > { %v959_v15 = vadd.f32 %v954_v35, %v803_v13 }
 0x10f   : > { %v1969_v41 = vpop.f32.mrf.mxu0 }
 0x111   : > { %v1176_v51 = vpop.f32.mrf.mxu0 }
 0x113   : > { %v1107_v42 = vpop.f32.mrf.mxu1  ;;  %v1980_v17 = vpop.f32.mrf.mxu0 }
 0x114   : > { %v1114_v59 = vadd.f32 %v1107_v42, %v958_v44 }
 0x115   : > { %v1974_v2 = vpop.f32.mrf.mxu1  ;;  %v1179_v6 = vpop.f32.mrf.mxu0 }
 0x116   : > { %v1183_v28 = vadd.f32 %v1176_v51, %v1114_v59 }
 0x117   : > { %v1110_v9 = vpop.f32.mrf.mxu1  ;;  %v1981_v10 = vpop.f32.mrf.mxu0 }
 0x118   : > { %v1115_v16 = vadd.f32 %v1110_v9, %v959_v15 }
 0x119   : > { %v1975_v52 = vpop.f32.mrf.mxu1  ;;  %v1335_v58 = vpop.f32.mrf.mxu0 }
 0x11a   : > { %v1184_v21 = vadd.f32 %v1179_v6, %v1115_v16 }
 0x11b   : > { %v1245_v47 = vpop.f32.mrf.mxu1  ;;  %v1992_v60 = vpop.f32.mrf.mxu0 }
 0x11c   : > { %v1252_v61 = vadd.f32 %v1245_v47, %v1183_v28 }
 0x11d   : > { %v1986_v0 = vpop.f32.mrf.mxu1  ;;  %v1338_v50 = vpop.f32.mrf.mxu0 }
 0x11e   : > { %v1342_v57 = vadd.f32 %v1335_v58, %v1252_v61 }
 0x11f   : > { %v1248_v45 = vpop.f32.mrf.mxu1  ;;  %v1993_v55 = vpop.f32.mrf.mxu0 }
 0x120   : > { %v1253_v26 = vadd.f32 %v1248_v45, %v1184_v21 }
 0x121   : > { %v1987_v48 = vpop.f32.mrf.mxu1  ;;  %v1494_v56 = vpop.f32.mrf.mxu0 }
 0x122   : > { %v1343_v5 = vadd.f32 %v1338_v50, %v1253_v26 }
 0x123   : > { %v1425_v11 = vpop.f32.mrf.mxu1  ;;  %v2004_v32 = vpop.f32.mrf.mxu0 }
 0x124   : > { %v1432_v63 = vadd.f32 %v1425_v11, %v1342_v57 }
 0x125   : > { %v1998_v12 = vpop.f32.mrf.mxu1  ;;  %v1497_v19 = vpop.f32.mrf.mxu0 }
 0x126   : > { %v1501_v54 = vadd.f32 %v1494_v56, %v1432_v63 }
 0x127   : > { %v1428_v22 = vpop.f32.mrf.mxu1  ;;  %v2005_v49 = vpop.f32.mrf.mxu0 }
 0x128   : > { %v1433_v14 = vadd.f32 %v1428_v22, %v1343_v5 }
 0x129   : > { %v1999_v31 = vpop.f32.mrf.mxu1  ;;  %v1653_v20 = vpop.f32.mrf.mxu0 }
 0x12a   : > { %v1502_v3 = vadd.f32 %v1497_v19, %v1433_v14 }
 0x12b   : > { %v1563_v1 = vpop.f32.mrf.mxu1  ;;  %v2016_v4 = vpop.f32.mrf.mxu0 }
 0x12c   : > { %v1570_v27 = vadd.f32 %v1563_v1, %v1501_v54 }
 0x12d   : > { %v2010_v8 = vpop.f32.mrf.mxu1  ;;  %v1656_v29 = vpop.f32.mrf.mxu0 }
 0x12e   : > { %v1660_v24 = vadd.f32 %v1653_v20, %v1570_v27 }
 0x12f   : > { %v1566_v23 = vpop.f32.mrf.mxu1  ;;  %v2017_v40 = vpop.f32.mrf.mxu0 }
 0x130   : > { %v1571_v33 = vadd.f32 %v1566_v23, %v1502_v3 }
 0x131   : > { %v2011_v25 = vpop.f32.mrf.mxu1 }
 0x132   : > { %v1661_v36 = vadd.f32 %v1656_v29, %v1571_v33 }
 0x133   : > { %v1743_v34 = vpop.f32.mrf.mxu1 }
 0x134   : > { %v1750_v38 = vadd.f32 %v1743_v34, %v1660_v24 }
 0x135   : > { %v2022_v30 = vpop.f32.mrf.mxu1 }
 0x136   : > { %v1759_v35 = vadd.f32 %v1892_v37, %v1750_v38 }
 0x137   : > { %v1746_v39 = vpop.f32.mrf.mxu1 }
 0x138   : > { %vm1761_vm10 = vcmp.ge.f32.partialorder %v1759_v35, 0.0  ;;  %v1763_v41 = vmul.f32 0.2, %v1759_v35  ;;  %v1751_v43 = vadd.f32 %v1746_v39, %v1661_v36 }
 0x139   : > { %v2023_v46 = vpop.f32.mrf.mxu1 }
 0x13a   : > { %v1765_v51 = vsel %vm1761_vm10, %v1759_v35, %v1763_v41  ;;  %v1760_v53 = vadd.f32 %v1892_v37, %v1751_v43 }
 0x13b   : > { %v1769_v42 = vcombine.high %v1765_v51, %v1765_v51  ;;  %v1773_v17 = vpack.c.bf16 %v1765_v51, %v1765_v51 }
 0x13c   : > { %vm1762_vm12 = vcmp.ge.f32.partialorder %v1760_v53, 0.0  ;;  %v1764_v62 = vmul.f32 0.2, %v1760_v53 }
 0x13d   : > { %v1774_v2 = vpack.c.bf16 %v1769_v42, %v1769_v42  ;;  %1778 = vst.msk [vmem:[%s175_s4] sm:$0x3] %vm1777_vm11, %v1773_v17 }
 0x13e   : > { %v1766_v6 = vsel %vm1762_vm12, %v1760_v53, %v1764_v62 }
 0x13f   : > { %1779 = vst.msk [vmem:[%s175_s4 + $0x2] sm:$0x3] %vm1777_vm11, %v1774_v2  ;;  %v1770_v7 = vcombine.high %v1766_v6, %v1766_v6  ;;  %v1775_v18 = vpack.c.bf16 %v1766_v6, %v1766_v6 }
 0x141   : > { %v1776_v9 = vpack.c.bf16 %v1770_v7, %v1770_v7  ;;  %1780 = vst.msk [vmem:[%s175_s4 + $0x4] sm:$0x3] %vm1777_vm11, %v1775_v18 }
 0x143   : > { %1781 = vst.msk [vmem:[%s175_s4 + $0x6] sm:$0x3] %vm1777_vm11, %v1776_v9 }
 0x144 PF: > { %s13_s12 = sadd.s32 1, %s2058_s12  }
 0x145   : > { %p10_p5 = scmp.ge.s32.totalorder %s13_s12, 4  }
 0x147   :  { %12 = sbr.rel (!%p10_p5) target bundleno = 1 (0x1), region = 80 }

// kernel: discriminator2_forward.6
= control target key start
LH: loop header
LB: loop body
LE: loop exit
PB: predicated region body
PF: predicated region fallthrough
CT: control target
= control target key end

     0   :  { %s1760_s12 = smov 0   ;;  %s2052_s0 = inlined_call_operand.vmem [shape: bf16[8,3,3,8], index: 0, kind: input, shape index: {}]   ;;  %s2053_s1 = inlined_call_operand.vmem [shape: bf16[16,8,16], index: 1, kind: input, shape index: {}]   ;;  %s2054_s2 = inlined_call_operand.vmem [shape: f32[1,16], index: 2, kind: input, shape index: {}]   ;;  %s2055_s3 = inlined_call_operand.vmem [shape: bf16[2,2,2,16], index: 3, kind: output, shape index: {}]  }
   0x1 LB: > { %s1766_s13 = sadd.s32 4294967295, %s1734_s12   ;;  %p1528_p0 = scmp.ge.s32.totalorder %s1734_s12, 1  ;;  %s1734_s12 = sphi %s1760_s12, %s13_s12  }
   0x2   : > { %p139_p1 = scmp.lt.s32.totalorder %s1734_s12, 3 }
   0x4   : > { %p140_p2 = pnand %p1528_p0, %p139_p1 }
   0x5   : > { %s1529_s18 = sshll.u32 (!%p140_p2), %s1766_s13, 2  ;;  %p170_p4 = scmp.lt.s32.totalorder (!%p140_p2), %s1766_s13, 1 }
   0x6   : > { %143 = sbr.rel (%p140_p2) target bundleno = 290 (0x122), region = 32  ;;  %p164_p3 = scmp.lt.s32.totalorder (!%p140_p2), %s1529_s18, 7 }
   0xb   : > { %v1541_v0 = vld [vmem:[%s2053_s1 + $0x4] sm:$0xf]  ;;  %vm214_vm0 = vcmask 1043456   ;;  %v190_v1 = vld [vmem:[%s2053_s1] sm:$0xf]  ;;  %v199_v2 = vlaneseq  ;;  %v1736_v3 = vmov 0.0  }
   0xc   : > { %1619 = vmatprep.subr.bf16.mxu0 %v1736_v3  ;;  %v216_v4 = vsel %vm214_vm0, %v1541_v0, 0  ;;  %1625 = vmatprep.subr.bf16.mxu1 %v1736_v3  ;;  %v279_v5 = vsel %vm214_vm0, %v190_v1, 0  ;;  %v1737_v6 = vmov 1966171168   ;;  %vm1738_vm1 = vmmov 0   ;;  %s2059_s18 = smov (!%p164_p3, %s1529_s18), 7 }
   0xd   : > { %1620 = vmatpush3.bf16.msra.mxu0 %v216_v4  ;;  %1626 = vmatpush3.bf16.msra.mxu1 %v279_v5  ;;  %v197_v7 = vunpack.c.l.s4 %v1737_v6  ;;  %v1781_v8 = vshrl.u32 %v199_v2, 7  ;;  %v1546_v9 = vld [vmem:[%s2053_s1 + $0x8] sm:$0xf]  ;;  %vm337_vm2 = vsmask.f32 256  ;;  %s1715_s21 = smul.u32 6, %s2059_s18 }
   0xe   : > { %1621 = vmatprep.mubr.msk.bf16.mxu0 %vm1738_vm1, %v1736_v3  ;;  %1627 = vmatprep.mubr.msk.bf16.mxu1 %vm1738_vm1, %v1736_v3  ;;  %vm338_vm3 = vsmask.f32 1284  ;;  %vm340_vm4 = vsmask.f32 2312  ;;  %vm342_vm6 = vsmask.f32 3340 }
   0xf   : > { %1631 = vmatprep.subr.bf16.mxu0 %v1736_v3  ;;  %v198_v10 = vunpack.c.0.s8 %v197_v7  ;;  %1637 = vmatprep.subr.bf16.mxu1 %v1736_v3  ;;  %vm339_vm5 = vmor %vm337_vm2, %vm338_vm3  ;;  %vm344_vm7 = vsmask.f32 4368  ;;  %vm210_vm9 = vcmask 64512   ;;  %v391_v12 = vsel %vm214_vm0, %v1546_v9, 0  ;;  %s1799_s24 = scalar_lea.vmem %s2052_s0, %s1715_s21  ;;  %v1550_v13 = vld [vmem:[%s2053_s1 + $0xc] sm:$0xf] }
  0x10   : > { %vm341_vm8 = vmor %vm339_vm5, %vm340_vm4  ;;  %vm346_vm11 = vsmask.f32 5396  ;;  %vm348_vm13 = vsmask.f32 6424  ;;  %vm350_vm14 = vsmask.f32 7452 }
  0x11   : > { %v1793_v11 = vsub.s32 %v198_v10, %v1781_v8  ;;  %vm343_vm10 = vmor %vm341_vm8, %vm342_vm6  ;;  %v1532_v14 = vld [vmem:[%s1799_s24 + $0x6] sm:$0x3]  ;;  %v1806_v15 = vld [vmem:[%s1799_s24 + $0x8] sm:$0x3]  ;;  %v489_v25 = vsel %vm214_vm0, %v1550_v13, 0  ;;  %s2061_s13 = smov (!%p170_p4, %s1766_s13), 1 }
  0x12   : > { %vm345_vm12 = vmor %vm343_vm10, %vm344_vm7  ;;  %v175_v16 = vld [vmem:[%s1799_s24] sm:$0x3]  ;;  %v195_v17 = vcombine.low %v1532_v14, %v1806_v15  ;;  %v1814_v20 = vld [vmem:[%s1799_s24 + $0x2] sm:$0x3]  ;;  %s1531_s28 = sshll.u32 %s2061_s13, 1 }
  0x13   : > { %v440_v18 = vrot.slane %v1532_v14, %v1793_v11  ;;  %v448_v19 = vrot.slane %v1806_v15, %v1793_v11  ;;  %v327_v21 = vrot.slane %v175_v16, %v1793_v11  ;;  %vm347_vm15 = vmor %vm345_vm12, %vm346_vm11  ;;  %v1818_v22 = vld [vmem:[%s1799_s24 + $0xc] sm:$0x3]  ;;  %v260_v23 = vcombine.low %v175_v16, %v1814_v20  ;;  %v1839_v44 = vld [vmem:[%s1799_s24 + $0xe] sm:$0x3]  ;;  %s173_s4 = scalar_lea.vmem %s2055_s3, %s1531_s28 }
  0x14   : > { %v335_v24 = vrot.slane %v1814_v20, %v1793_v11  ;;  %vm349_vm2 = vmor %vm347_vm15, %vm348_vm13  ;;  %v1827_v26 = vrot.slane %v1818_v22, %v1793_v11  ;;  %v202_v27 = vrot.slane %v195_v17, %v1793_v11  ;;  %v1552_v47 = vld [vmem:[%s2053_s1 + $0x10] sm:$0xf]  ;;  %v1863_v53 = vld [vmem:[%s1799_s24 + $0x14] sm:$0x3]  ;;  %v678_v55 = vrot.slane %v1839_v44, %v1793_v11 }
  0x15   : > { %v441_v28 = vcombine.high %v440_v18, %v440_v18  ;;  %v449_v29 = vcombine.high %v448_v19, %v448_v19  ;;  %v451_v30 = vshrl.u32 %v440_v18, 16  ;;  %v460_v31 = vshrl.u32 %v448_v19, 16  ;;  %vm1832_vm3 = vmor %vm349_vm2, %vm350_vm14  ;;  %v1538_v49 = vld [vmem:[%s1799_s24 + $0x12] sm:$0x3]  ;;  %v1554_v61 = vld [vmem:[%s2053_s1 + $0x14] sm:$0xf] }
  0x16   : > { %v267_v32 = vrot.slane %v260_v23, %v1793_v11  ;;  %v328_v33 = vcombine.high %v327_v21, %v327_v21  ;;  %v336_v34 = vcombine.high %v335_v24, %v335_v24  ;;  %v209_v36 = vrot.slane %v202_v27, %v1793_v11  ;;  %v1534_v27 = vld [vmem:[%s1799_s24 + $0xa] sm:$0x3] }
  0x17   : > { %v456_v37 = vshll.u32 %v441_v28, 16  ;;  %v465_v38 = vshll.u32 %v449_v29, 16  ;;  %v353_v39 = vshrl.u32 %v327_v21, 16  ;;  %v362_v42 = vshrl.u32 %v335_v24, 16  ;;  %v177_v24 = vld [vmem:[%s1799_s24 + $0x4] sm:$0x3] }
  0x18   : > { %v274_v40 = vrot.slane %v267_v32, %v1793_v11  ;;  %v358_v41 = vshll.u32 %v328_v33, 16  ;;  %v367_v43 = vshll.u32 %v336_v34, 16  ;;  %1622 = vmatmul.mubr.msk.bf16.vlgmr.msra.gmra.mxu0 %vm210_vm9, %v209_v36  ;;  %v671_v48 = vcombine.high %v1827_v26, %v1827_v26  ;;  %v1562_v29 = vld [vmem:[%s2053_s1 + $0x1c] sm:$0xf] }
  0x19   : > { %v458_v45 = vsel %vm1832_vm3, %v451_v30, %v456_v37  ;;  %v1846_v46 = vsel %vm1832_vm3, %v460_v31, %v465_v38  ;;  %1632 = vmatpush3.bf16.msra.mxu0 %v391_v12  ;;  %1633 = vmatprep.mubr.msk.bf16.mxu0 %vm1738_vm1, %v1736_v3  ;;  %v555_v57 = vsel %vm214_vm0, %v1552_v47, 0  ;;  %v536_v58 = vcombine.low %v1818_v22, %v1839_v44 }
  0x1a   : > { %1628 = vmatmul.mubr.msk.bf16.vlgmr.msra.gmra.mxu1 %vm210_vm9, %v274_v40  ;;  %v360_v50 = vsel %vm1832_vm3, %v353_v39, %v358_v41  ;;  %v1859_v51 = vsel %vm1832_vm3, %v362_v42, %v367_v43  ;;  %v470_v52 = vcombine.low %v458_v45, %v1846_v46  ;;  %1643 = vmatprep.subr.bf16.mxu0 %v1736_v3  ;;  %v681_v62 = vshrl.u32 %v1827_v26, 16  ;;  %v1564_v42 = vld [vmem:[%s2053_s1 + $0x20] sm:$0xf]  ;;  %v1566_v45 = vld [vmem:[%s2053_s1 + $0x24] sm:$0xf] }
  0x1b   : > { %1638 = vmatpush3.bf16.msra.mxu1 %v489_v25  ;;  %v372_v54 = vcombine.low %v360_v50, %v1859_v51  ;;  %1639 = vmatprep.mubr.msk.bf16.mxu1 %vm1738_vm1, %v1736_v3  ;;  %v768_v59 = vrot.slane %v1538_v49, %v1793_v11  ;;  %v776_v63 = vrot.slane %v1863_v53, %v1793_v11  ;;  %v686_v2 = vshll.u32 %v671_v48, 16  ;;  %v1558_v25 = vld [vmem:[%s2053_s1 + $0x18] sm:$0xf] }
  0x1c   : > { %v477_v56 = vrot.slane %v470_v52, %v1793_v11  ;;  %1649 = vmatprep.subr.bf16.mxu1 %v1736_v3  ;;  %v679_v0 = vcombine.high %v678_v55, %v678_v55  ;;  %v602_v4 = vcombine.low %v1538_v49, %v1863_v53  ;;  %v690_v9 = vshrl.u32 %v678_v55, 16 }
  0x1d   : > { %v379_v60 = vrot.slane %v372_v54, %v1793_v11  ;;  %v769_v5 = vcombine.high %v768_v59, %v768_v59  ;;  %v779_v7 = vshrl.u32 %v768_v59, 16  ;;  %v621_v12 = vsel %vm214_vm0, %v1554_v61, 0  ;;  %v1569_v61 = vld [vmem:[%s2053_s1 + $0x28] sm:$0xf] }
  0x1e   : > { %v484_v1 = vrot.slane %v477_v56, %v1793_v11  ;;  %v695_v10 = vshll.u32 %v679_v0, 16  ;;  %v777_v14 = vcombine.high %v776_v63, %v776_v63  ;;  %v788_v16 = vshrl.u32 %v776_v63, 16  ;;  %v1572_v0 = vld [vmem:[%s2053_s1 + $0x2c] sm:$0xf] }
  0x1f   : > { %v386_v6 = vrot.slane %v379_v60, %v1793_v11  ;;  %v784_v13 = vshll.u32 %v769_v5, 16  ;;  %v543_v17 = vrot.slane %v536_v58, %v1793_v11  ;;  %v609_v18 = vrot.slane %v602_v4, %v1793_v11  ;;  %v1537_v60 = vld [vmem:[%s1799_s24 + $0x10] sm:$0x3] }
  0x20   : > { %v688_v19 = vsel %vm1832_vm3, %v681_v62, %v686_v2  ;;  %v1898_v21 = vsel %vm1832_vm3, %v690_v9, %v695_v10  ;;  %v793_v22 = vshll.u32 %v777_v14, 16  ;;  %v996_v33 = vrot.slane %v177_v24, %v1793_v11  ;;  %v1540_v62 = vld [vmem:[%s1799_s24 + $0x16] sm:$0x3] }
  0x21   : > { %1634 = vmatmul.mubr.msk.bf16.vlgmr.msra.gmra.mxu0 %vm210_vm9, %v386_v6  ;;  %v786_v23 = vsel %vm1832_vm3, %v779_v7, %v784_v13  ;;  %v550_v28 = vrot.slane %v543_v17, %v1793_v11  ;;  %v700_v30 = vcombine.low %v688_v19, %v1898_v21  ;;  %v616_v31 = vrot.slane %v609_v18, %v1793_v11  ;;  %v1574_v13 = vld [vmem:[%s2053_s1 + $0x30] sm:$0xf] }
  0x22   : > { %1640 = vmatmul.mubr.msk.bf16.vlgmr.msra.gmra.mxu1 %vm210_vm9, %v484_v1  ;;  %1644 = vmatpush3.bf16.msra.mxu0 %v555_v57  ;;  %v1913_v26 = vsel %vm1832_vm3, %v788_v16, %v793_v22  ;;  %v719_v34 = vsel %vm214_vm0, %v1558_v25, 0  ;;  %v1077_v36 = vrot.slane %v1534_v27, %v1793_v11  ;;  %v817_v37 = vsel %vm214_vm0, %v1562_v29, 0  ;;  %v1576_v16 = vld [vmem:[%s2053_s1 + $0x34] sm:$0xf] }
  0x23   : > { %1650 = vmatpush3.bf16.msra.mxu1 %v621_v12  ;;  %1645 = vmatprep.mubr.msk.bf16.mxu0 %vm1738_vm1, %v1736_v3  ;;  %v798_v32 = vcombine.low %v786_v23, %v1913_v26  ;;  %v707_v38 = vrot.slane %v700_v30, %v1793_v11  ;;  %v997_v40 = vcombine.high %v996_v33, %v996_v33  ;;  %v999_v49 = vshrl.u32 %v996_v33, 16  ;;  %v1582_v33 = vld [vmem:[%s2053_s1 + $0x3c] sm:$0xf] }
  0x24   : > { %1651 = vmatprep.mubr.msk.bf16.mxu1 %vm1738_vm1, %v1736_v3  ;;  %1655 = vmatprep.subr.bf16.mxu0 %v1736_v3  ;;  %v1078_v41 = vcombine.high %v1077_v36, %v1077_v36  ;;  %v863_v47 = vcombine.low %v1814_v20, %v177_v24  ;;  %v928_v52 = vcombine.low %v1806_v15, %v1534_v27  ;;  %v882_v54 = vsel %vm214_vm0, %v1564_v42, 0 }
  0x25   : > { %1661 = vmatprep.subr.bf16.mxu1 %v1736_v3  ;;  %v805_v39 = vrot.slane %v798_v32, %v1793_v11  ;;  %v714_v43 = vrot.slane %v707_v38, %v1793_v11  ;;  %v1004_v50 = vshll.u32 %v997_v40, 16  ;;  %v1080_v55 = vshrl.u32 %v1077_v36, 16 }
  0x26   : > { %v1085_v56 = vshll.u32 %v1078_v41, 16  ;;  %v947_v57 = vsel %vm214_vm0, %v1566_v45, 0  ;;  %v870_v58 = vrot.slane %v863_v47, %v1793_v11  ;;  %v935_v20 = vrot.slane %v928_v52, %v1793_v11 }
  0x27   : > { %v812_v48 = vrot.slane %v805_v39, %v1793_v11  ;;  %v1006_v59 = vsel %vm1832_vm3, %v999_v49, %v1004_v50  ;;  %v1288_v5 = vrot.slane %v1537_v60, %v1793_v11  ;;  %v1028_v6 = vsel %vm214_vm0, %v1569_v61, 0 }
  0x28   : > { %v1087_v15 = vsel %vm1832_vm3, %v1080_v55, %v1085_v56  ;;  %v877_v63 = vrot.slane %v870_v58, %v1793_v11  ;;  %v1009_v1 = vcombine.low %v1859_v51, %v1006_v59  ;;  %v942_v2 = vrot.slane %v935_v20, %v1793_v11 }
  0x29   : > { %1646 = vmatmul.mubr.msk.bf16.vlgmr.msra.gmra.mxu0 %vm210_vm9, %v550_v28  ;;  %v1090_v4 = vcombine.low %v1846_v46, %v1087_v15  ;;  %v1369_v7 = vrot.slane %v1540_v62, %v1793_v11  ;;  %v1109_v9 = vsel %vm214_vm0, %v1572_v0, 0  ;;  %v1289_v12 = vcombine.high %v1288_v5, %v1288_v5 }
  0x2a   : > { %1652 = vmatmul.mubr.msk.bf16.vlgmr.msra.gmra.mxu1 %vm210_vm9, %v616_v31  ;;  %1656 = vmatpush3.bf16.msra.mxu0 %v719_v34  ;;  %v1016_v10 = vrot.slane %v1009_v1, %v1793_v11  ;;  %v1155_v17 = vcombine.low %v1839_v44, %v1537_v60  ;;  %v1291_v19 = vshrl.u32 %v1288_v5, 16  ;;  %v1220_v23 = vcombine.low %v1863_v53, %v1540_v62  ;;  %v1579_v31 = vld [vmem:[%s2053_s1 + $0x38] sm:$0xf] }
  0x2b   : > { %1662 = vmatpush3.bf16.msra.mxu1 %v817_v37  ;;  %1657 = vmatprep.mubr.msk.bf16.mxu0 %vm1738_vm1, %v1736_v3  ;;  %v1097_v51 = vrot.slane %v1090_v4, %v1793_v11  ;;  %v1370_v46 = vcombine.high %v1369_v7, %v1369_v7  ;;  %v1296_v22 = vshll.u32 %v1289_v12, 16  ;;  %v1174_v24 = vsel %vm214_vm0, %v1574_v13, 0 }
  0x2c   : > { %1663 = vmatprep.mubr.msk.bf16.mxu1 %vm1738_vm1, %v1736_v3  ;;  %1667 = vmatprep.subr.bf16.mxu0 %v1736_v3  ;;  %v1023_v14 = vrot.slane %v1016_v10, %v1793_v11  ;;  %v1372_v25 = vshrl.u32 %v1369_v7, 16  ;;  %v1239_v28 = vsel %vm214_vm0, %v1576_v16, 0  ;;  %v1162_v29 = vrot.slane %v1155_v17, %v1793_v11 }
  0x2d   : > { %1673 = vmatprep.subr.bf16.mxu1 %v1736_v3  ;;  %v1104_v18 = vrot.slane %v1097_v51, %v1793_v11  ;;  %v1377_v27 = vshll.u32 %v1370_v46, 16  ;;  %v1227_v44 = vrot.slane %v1220_v23, %v1793_v11  ;;  %v1298_v30 = vsel %vm1832_vm3, %v1291_v19, %v1296_v22 }
  0x2e   : > { %v1169_v32 = vrot.slane %v1162_v29, %v1793_v11  ;;  %v1301_v35 = vcombine.low %v1898_v21, %v1298_v30  ;;  %v1320_v37 = vsel %vm214_vm0, %v1579_v31, 0  ;;  %v1401_v38 = vsel %vm214_vm0, %v1582_v33, 0 }
  0x2f   : > { %v1379_v53 = vsel %vm1832_vm3, %v1372_v25, %v1377_v27  ;;  %v1234_v34 = vrot.slane %v1227_v44, %v1793_v11 }
  0x30   : > { %v1382_v36 = vcombine.low %v1913_v26, %v1379_v53  ;;  %v1308_v39 = vrot.slane %v1301_v35, %v1793_v11 }
  0x31   : > { %1658 = vmatmul.mubr.msk.bf16.vlgmr.msra.gmra.mxu0 %vm210_vm9, %v714_v43 }
  0x32   : > { %1664 = vmatmul.mubr.msk.bf16.vlgmr.msra.gmra.mxu1 %vm210_vm9, %v812_v48  ;;  %1668 = vmatpush3.bf16.msra.mxu0 %v882_v54  ;;  %v1389_v40 = vrot.slane %v1382_v36, %v1793_v11  ;;  %v1315_v21 = vrot.slane %v1308_v39, %v1793_v11 }
  0x33   : > { %1674 = vmatpush3.bf16.msra.mxu1 %v947_v57  ;;  %1669 = vmatprep.mubr.msk.bf16.mxu0 %vm1738_vm1, %v1736_v3 }
  0x34   : > { %1675 = vmatprep.mubr.msk.bf16.mxu1 %vm1738_vm1, %v1736_v3  ;;  %1679 = vmatprep.subr.bf16.mxu0 %v1736_v3  ;;  %v1396_v26 = vrot.slane %v1389_v40, %v1793_v11 }
  0x35   : > { %1685 = vmatprep.subr.bf16.mxu1 %v1736_v3 }
  0x39   : > { %1670 = vmatmul.mubr.msk.bf16.vlgmr.msra.gmra.mxu0 %vm210_vm9, %v877_v63 }
  0x3a   : > { %1676 = vmatmul.mubr.msk.bf16.vlgmr.msra.gmra.mxu1 %vm210_vm9, %v942_v2  ;;  %1680 = vmatpush3.bf16.msra.mxu0 %v1028_v6 }
  0x3b   : > { %1686 = vmatpush3.bf16.msra.mxu1 %v1109_v9  ;;  %1681 = vmatprep.mubr.msk.bf16.mxu0 %vm1738_vm1, %v1736_v3 }
  0x3c   : > { %1687 = vmatprep.mubr.msk.bf16.mxu1 %vm1738_vm1, %v1736_v3  ;;  %1691 = vmatprep.subr.bf16.mxu0 %v1736_v3 }
  0x3d   : > { %1697 = vmatprep.subr.bf16.mxu1 %v1736_v3 }
  0x41   : > { %1682 = vmatmul.mubr.msk.bf16.vlgmr.msra.gmra.mxu0 %vm210_vm9, %v1023_v14 }
  0x42   : > { %1688 = vmatmul.mubr.msk.bf16.vlgmr.msra.gmra.mxu1 %vm210_vm9, %v1104_v18  ;;  %1692 = vmatpush3.bf16.msra.mxu0 %v1174_v24 }
  0x43   : > { %1698 = vmatpush3.bf16.msra.mxu1 %v1239_v28  ;;  %1693 = vmatprep.mubr.msk.bf16.mxu0 %vm1738_vm1, %v1736_v3 }
  0x44   : > { %1699 = vmatprep.mubr.msk.bf16.mxu1 %vm1738_vm1, %v1736_v3  ;;  %1703 = vmatprep.subr.bf16.mxu0 %v1736_v3 }
  0x45   : > { %1709 = vmatprep.subr.bf16.mxu1 %v1736_v3 }
  0x49   : > { %1694 = vmatmul.mubr.msk.bf16.vlgmr.msra.gmra.mxu0 %vm210_vm9, %v1169_v32 }
  0x4a   : > { %1700 = vmatmul.mubr.msk.bf16.vlgmr.msra.gmra.mxu1 %vm210_vm9, %v1234_v34  ;;  %1704 = vmatpush3.bf16.msra.mxu0 %v1320_v37 }
  0x4b   : > { %1710 = vmatpush3.bf16.msra.mxu1 %v1401_v38  ;;  %1705 = vmatprep.mubr.msk.bf16.mxu0 %vm1738_vm1, %v1736_v3 }
  0x4c   : > { %1711 = vmatprep.mubr.msk.bf16.mxu1 %vm1738_vm1, %v1736_v3  ;;  %vm1468_vm1 = vcmask 122880  }
  0x51   : > { %1706 = vmatmul.mubr.msk.bf16.vlgmr.msra.gmra.mxu0 %vm210_vm9, %v1315_v21 }
  0x52   : > { %1712 = vmatmul.mubr.msk.bf16.vlgmr.msra.gmra.mxu1 %vm210_vm9, %v1396_v26 }
  0xd8   : > { %v252_v41 = vpop.f32.mrf.mxu0 }
  0xda   : > { %v315_v42 = vpop.f32.mrf.mxu1  ;;  %v1623_v43 = vpop.f32.mrf.mxu0 }
  0xdb   : > { %v316_v60 = vadd.f32 %v315_v42, %v252_v41 }
  0xdc   : > { %v1629_v45 = vpop.f32.mrf.mxu1  ;;  %v255_v47 = vpop.f32.mrf.mxu0 }
  0xdd   : > { %v1739_v47 = vmov 1983009808  }
  0xde   : > { %v318_v48 = vpop.f32.mrf.mxu1  ;;  %v1624_v49 = vpop.f32.mrf.mxu0 }
  0xdf   : > { %v1457_v48 = vunpack.c.l.s4 %v1739_v47 }
  0xe0   : > { %v1630_v50 = vpop.f32.mrf.mxu1 }
  0xe1   : > { %v427_v52 = vpop.f32.mrf.mxu0 }
  0xe2   : > { %v525_v54 = vpop.f32.mrf.mxu1  ;;  %v433_v63 = vadd.f32 %v427_v52, %v316_v60 }
  0xe3   : > { %v1635_v55 = vpop.f32.mrf.mxu0 }
  0xe4   : > { %v1641_v3 = vpop.f32.mrf.mxu1  ;;  %v531_v5 = vadd.f32 %v525_v54, %v433_v63 }
  0xe5   : > { %v430_v56 = vpop.f32.mrf.mxu0  ;;  %v1584_v3 = vld [vmem:[%s2054_s2] ss:$0 sm:$0xff] }
  0xe6   : > { %v528_v57 = vpop.f32.mrf.mxu1  ;;  %v1458_v56 = vunpack.c.0.s8 %v1457_v48 }
  0xe7   : > { %v1636_v58 = vpop.f32.mrf.mxu0 }
  0xe8   : > { %v1642_v11 = vpop.f32.mrf.mxu1  ;;  %v1461_v60 = vsub.s32 %v1458_v56, %v1781_v8 }
  0xe9   : > { %v591_v20 = vpop.f32.mrf.mxu0 }
  0xea   : > { %v657_v59 = vpop.f32.mrf.mxu1  ;;  %v597_v9 = vadd.f32 %v591_v20, %v531_v5 }
  0xeb   : > { %v1647_v15 = vpop.f32.mrf.mxu0 }
  0xec   : > { %v1653_v61 = vpop.f32.mrf.mxu1  ;;  %v663_v13 = vadd.f32 %v657_v59, %v597_v9 }
  0xed   : > { %v594_v62 = vpop.f32.mrf.mxu0 }
  0xee   : > { %v660_v0 = vpop.f32.mrf.mxu1 }
  0xef   : > { %v1648_v1 = vpop.f32.mrf.mxu0 }
  0xf0   : > { %v1654_v2 = vpop.f32.mrf.mxu1 }
  0xf1   : > { %v755_v4 = vpop.f32.mrf.mxu0 }
  0xf2   : > { %v853_v6 = vpop.f32.mrf.mxu1  ;;  %v761_v17 = vadd.f32 %v755_v4, %v663_v13 }
  0xf3   : > { %v1659_v7 = vpop.f32.mrf.mxu0 }
  0xf4   : > { %v1665_v10 = vpop.f32.mrf.mxu1  ;;  %v859_v24 = vadd.f32 %v853_v6, %v761_v17 }
  0xf5   : > { %v758_v51 = vpop.f32.mrf.mxu0 }
  0xf6   : > { %v856_v12 = vpop.f32.mrf.mxu1 }
  0xf7   : > { %v1660_v46 = vpop.f32.mrf.mxu0 }
  0xf8   : > { %v1666_v14 = vpop.f32.mrf.mxu1 }
  0xf9   : > { %v918_v16 = vpop.f32.mrf.mxu0 }
  0xfa   : > { %v983_v18 = vpop.f32.mrf.mxu1  ;;  %v924_v28 = vadd.f32 %v918_v16, %v859_v24 }
  0xfb   : > { %v1671_v19 = vpop.f32.mrf.mxu0 }
  0xfc   : > { %v1677_v22 = vpop.f32.mrf.mxu1  ;;  %v989_v31 = vadd.f32 %v983_v18, %v924_v28 }
  0xfd   : > { %v921_v23 = vpop.f32.mrf.mxu0 }
  0xfe   : > { %v986_v25 = vpop.f32.mrf.mxu1 }
  0xff   : > { %v1672_v27 = vpop.f32.mrf.mxu0 }
 0x100   : > { %v1678_v29 = vpop.f32.mrf.mxu1 }
 0x101   : > { %v1064_v44 = vpop.f32.mrf.mxu0 }
 0x102   : > { %v1145_v30 = vpop.f32.mrf.mxu1  ;;  %v1070_v35 = vadd.f32 %v1064_v44, %v989_v31 }
 0x103   : > { %v1683_v53 = vpop.f32.mrf.mxu0 }
 0x104   : > { %v1689_v32 = vpop.f32.mrf.mxu1  ;;  %v1151_v39 = vadd.f32 %v1145_v30, %v1070_v35 }
 0x105   : > { %v1067_v33 = vpop.f32.mrf.mxu0 }
 0x106   : > { %v1148_v34 = vpop.f32.mrf.mxu1 }
 0x107   : > { %v1684_v36 = vpop.f32.mrf.mxu0 }
 0x108   : > { %v1690_v37 = vpop.f32.mrf.mxu1 }
 0x109   : > { %v1210_v38 = vpop.f32.mrf.mxu0 }
 0x10a   : > { %v1275_v40 = vpop.f32.mrf.mxu1  ;;  %v1216_v26 = vadd.f32 %v1210_v38, %v1151_v39 }
 0x10b   : > { %v1695_v21 = vpop.f32.mrf.mxu0 }
 0x10c   : > { %v1701_v41 = vpop.f32.mrf.mxu1  ;;  %v1281_v49 = vadd.f32 %v1275_v40, %v1216_v26 }
 0x10d   : > { %v1213_v42 = vpop.f32.mrf.mxu0 }
 0x10e   : > { %v1278_v43 = vpop.f32.mrf.mxu1 }
 0x10f   : > { %v1696_v45 = vpop.f32.mrf.mxu0 }
 0x110   : > { %v1702_v50 = vpop.f32.mrf.mxu1 }
 0x111   : > { %v1356_v52 = vpop.f32.mrf.mxu0 }
 0x112   : > { %v1362_v54 = vadd.f32 %v1356_v52, %v1281_v49  ;;  %v1437_v55 = vpop.f32.mrf.mxu1 }
 0x113   : > { %v1707_v57 = vpop.f32.mrf.mxu0 }
 0x114   : > { %v1443_v58 = vadd.f32 %v1437_v55, %v1362_v54  ;;  %v1713_v11 = vpop.f32.mrf.mxu1 }
 0x115   : > { %v1359_v20 = vpop.f32.mrf.mxu0 }
 0x116   : > { %v1451_v59 = vadd.f32 %v1584_v3, %v1443_v58  ;;  %v1440_v15 = vpop.f32.mrf.mxu1 }
 0x117   : > { %v1708_v61 = vpop.f32.mrf.mxu0 }
 0x118   : > { %vm1452_vm0 = vcmp.ge.f32.partialorder %v1451_v59, 0.0  ;;  %v1453_v62 = vmul.f32 0.2, %v1451_v59  ;;  %v1714_v63 = vpop.f32.mrf.mxu1 }
 0x11a   : > { %v1454_v0 = vsel %vm1452_vm0, %v1451_v59, %v1453_v62 }
 0x11b   : > { %v1462_v1 = vrot.slane %v1454_v0, %v1461_v60 }
 0x11d   : > { %v1463_v2 = vcombine.high %v1462_v1, %v1462_v1  ;;  %v1466_v4 = vpack.c.bf16 %v1462_v1, %v1462_v1 }
 0x11f   : > { %v1467_v5 = vpack.c.bf16 %v1463_v2, %v1463_v2  ;;  %1469 = vst.msk [vmem:[%s173_s4] sm:$0x1] %vm1468_vm1, %v1466_v4 }
 0x121   : > { %1470 = vst.msk [vmem:[%s173_s4 + $0x1] sm:$0x1] %vm1468_vm1, %v1467_v5 }
 0x122 PF: > { %s13_s12 = sadd.s32 1, %s1734_s12  }
 0x123   : > { %p10_p5 = scmp.ge.s32.totalorder %s13_s12, 4  }
 0x125   :  { %12 = sbr.rel (!%p10_p5) target bundleno = 1 (0x1), region = 80 }

// kernel: discriminator2_forward.4
= control target key start
LH: loop header
LB: loop body
LE: loop exit
PB: predicated region body
PF: predicated region fallthrough
CT: control target
= control target key end

     0   :  { %s2990_s12 = smov 0   ;;  %s3986_s0 = inlined_call_operand.vmem [shape: bf16[8,9,9,1], index: 0, kind: input, shape index: {}]   ;;  %s3987_s1 = inlined_call_operand.vmem [shape: bf16[16,1,4], index: 1, kind: input, shape index: {}]   ;;  %s3988_s2 = inlined_call_operand.vmem [shape: f32[1,4], index: 2, kind: input, shape index: {}]   ;;  %s3989_s3 = inlined_call_operand.vmem [shape: bf16[2,8,8,4], index: 3, kind: output, shape index: {}]  }
   0x1 LB: > { %s2996_s13 = sadd.s32 4294967295, %s2967_s12   ;;  %p2473_p0 = scmp.ge.s32.totalorder %s2967_s12, 1  ;;  %s2967_s12 = sphi %s2990_s12, %s13_s12  }
   0x2   : > { %p139_p1 = scmp.lt.s32.totalorder %s2967_s12, 3 }
   0x4   : > { %p140_p2 = pnand %p2473_p0, %p139_p1 }
   0x6   : > { %143 = sbr.rel (%p140_p2) target bundleno = 386 (0x182), region = 32 }
   0xb   : > { %v2532_v0 = vld [vmem:[%s3987_s1 + $0x1] sm:$0x1]  ;;  %vm288_vm0 = vcmask 1040384   ;;  %v252_v1 = vld [vmem:[%s3987_s1] sm:$0x1]  ;;  %v2969_v2 = vmov 0  }
   0xc   : > { %v3006_v3 = vsel %vm288_vm0, 65535, %v2969_v2  ;;  %s2474_s18 = sshll.u32 %s2996_s13, 2  ;;  %v2549_v4 = vld [vmem:[%s3987_s1 + $0x2] sm:$0x1]  ;;  %v2558_v8 = vld [vmem:[%s3987_s1 + $0x3] sm:$0x1] }
   0xd   : > { %v292_v5 = vand.u32 %v2532_v0, %v3006_v3  ;;  %v392_v6 = vand.u32 %v3006_v3, %v252_v1  ;;  %p165_p3 = scmp.lt.s32.totalorder %s2474_s18, 7  ;;  %v3015_v7 = vand.u32 %v2549_v4, %v3006_v3  ;;  %v3021_v9 = vand.u32 %v2558_v8, %v3006_v3  ;;  %v2567_v10 = vld [vmem:[%s3987_s1 + $0x4] sm:$0x1]  ;;  %v2576_v11 = vld [vmem:[%s3987_s1 + $0x5] sm:$0x1]  ;;  %p171_p4 = scmp.lt.s32.totalorder %s2996_s13, 1 }
   0xe   : > { %v2585_v12 = vld [vmem:[%s3987_s1 + $0x6] sm:$0x1]  ;;  %v2594_v13 = vld [vmem:[%s3987_s1 + $0x7] sm:$0x1]  ;;  %v2603_v14 = vld [vmem:[%s3987_s1 + $0x8] sm:$0x1]  ;;  %v3055_v18 = vand.u32 %v2567_v10, %v3006_v3  ;;  %v3058_v19 = vand.u32 %v2576_v11, %v3006_v3 }
   0xf   : > { %2759 = vmatprep.subr.bf16.mxu0 %v292_v5  ;;  %2769 = vmatprep.subr.bf16.mxu1 %v392_v6  ;;  %s4101_s18 = smov (!%p165_p3, %s2474_s18), 7  ;;  %v2612_v15 = vld [vmem:[%s3987_s1 + $0x9] sm:$0x1]  ;;  %v2621_v16 = vld [vmem:[%s3987_s1 + $0xa] sm:$0x1]  ;;  %vm275_vm1 = vcmask 7168   ;;  %v3061_v20 = vand.u32 %v2585_v12, %v3006_v3  ;;  %v3064_v21 = vand.u32 %v2594_v13, %v3006_v3  ;;  %v3072_v25 = vand.u32 %v2603_v14, %v3006_v3 }
  0x10   : > { %2760 = vmatpush3.bf16.msra.mxu0 %v292_v5  ;;  %2770 = vmatpush3.bf16.msra.mxu1 %v392_v6  ;;  %s2919_s8 = smul.u32 72, %s4101_s18  ;;  %v2630_v17 = vld [vmem:[%s3987_s1 + $0xb] sm:$0x1]  ;;  %v3075_v26 = vand.u32 %v2612_v15, %v3006_v3  ;;  %v3078_v27 = vand.u32 %v2621_v16, %v3006_v3  ;;  %vm459_vm2 = vsmask.f32 3328  ;;  %s4103_s13 = smov (!%p171_p4, %s2996_s13), 1 }
  0x11   : > { %2779 = vmatprep.subr.bf16.mxu0 %v3015_v7  ;;  %2789 = vmatprep.subr.bf16.mxu1 %v3021_v9  ;;  %v3081_v28 = vand.u32 %v2630_v17, %v3006_v3  ;;  %vm460_vm3 = vsmask.f32 7440  ;;  %s2678_s28 = sshll.u32 %s4103_s13, 5  ;;  %vm2405_vm6 = vcmask 27648  }
  0x12   : > { %s3052_s17 = scalar_lea.vmem %s3986_s0, %s2919_s8  ;;  %vm3202_vm4 = vmor %vm459_vm2, %vm460_vm3  ;;  %s3959_s4 = scalar_lea.vmem %s3989_s3, %s2678_s28 }
  0x13   : > { %v2478_v22 = vld [vmem:[%s3052_s17 + $0x48] sm:$0xf]  ;;  %v3068_v23 = vld [vmem:[%s3052_s17 + $0x50] sm:$0xf]  ;;  %v177_v24 = vld [vmem:[%s3052_s17] sm:$0xf] }
  0x14   : > { %v2533_v29 = vcombine.low %v2478_v22, %v3068_v23  ;;  %v677_v30 = vshrl.u32 %v2478_v22, 16  ;;  %v680_v31 = vshll.u32 %v2478_v22, 16  ;;  %v691_v32 = vshrl.u32 %v3068_v23, 16  ;;  %v3086_v33 = vld [vmem:[%s3052_s17 + $0x8] sm:$0xf] }
  0x15   : > { %v694_v34 = vshll.u32 %v3068_v23, 16  ;;  %v2541_v35 = vcombine.low %v177_v24, %v3086_v33  ;;  %v463_v36 = vshrl.u32 %v177_v24, 16  ;;  %v466_v37 = vshll.u32 %v177_v24, 16  ;;  %v3091_v38 = vld [vmem:[%s3052_s17 + $0x58] sm:$0xf] }
  0x16   : > { %2761 = vmatprep.mubr.msk.bf16.mxu0 %vm275_vm1, %v2533_v29  ;;  %v679_v39 = vrot.slane %v677_v30, 4  ;;  %v682_v40 = vrot.slane %v680_v31, 5  ;;  %v693_v41 = vrot.slane %v691_v32, 4  ;;  %v477_v42 = vshrl.u32 %v3086_v33, 16  ;;  %v3096_v43 = vld [vmem:[%s3052_s17 + $0x60] sm:$0xf] }
  0x17   : > { %4004 = vst [vmem:[#allocation2_spill] sm:$0xff] %v3096_v43  ;;  %v696_v44 = vrot.slane %v694_v34, 5  ;;  %2771 = vmatprep.mubr.msk.bf16.mxu1 %vm275_vm1, %v2541_v35  ;;  %v465_v45 = vrot.slane %v463_v36, 4  ;;  %v468_v46 = vrot.slane %v466_v37, 5  ;;  %v480_v47 = vshll.u32 %v3086_v33, 16 }
  0x18   : > { %v683_v48 = vor.u32 %v682_v40, %v679_v39  ;;  %v479_v49 = vrot.slane %v477_v42, 4  ;;  %v2534_v50 = vcombine.low %v3091_v38, %v3096_v43  ;;  %v705_v51 = vshrl.u32 %v3091_v38, 16  ;;  %v3105_v56 = vld [vmem:[%s3052_s17 + $0x10] sm:$0xf]  ;;  %v3108_v57 = vld [vmem:[%s3052_s17 + $0x18] sm:$0xf] }
  0x19   : > { %v697_v52 = vor.u32 %v696_v44, %v693_v41  ;;  %v469_v53 = vor.u32 %v468_v46, %v465_v45  ;;  %v482_v54 = vrot.slane %v480_v47, 5  ;;  %v708_v55 = vshll.u32 %v3091_v38, 16  ;;  %v3116_v62 = vld [vmem:[%s3052_s17 + $0x68] sm:$0xf]  ;;  %v3124_v4 = vld [vmem:[%s3052_s17 + $0x70] sm:$0xf] }
  0x1a   : > { %v3110_v58 = vrot.slane %v683_v48, 4  ;;  %2762 = vmatmul.mubr.msk.bf16.vlgmr.msra.gmra.mxu0 %vm275_vm1, %v2534_v50  ;;  %v707_v59 = vrot.slane %v705_v51, 4  ;;  %v719_v60 = vshrl.u32 %v3096_v43, 16  ;;  %v722_v61 = vshll.u32 %v3096_v43, 16  ;;  %4005 = vst [vmem:[#allocation3_spill] sm:$0xff] %v3116_v62 }
  0x1b   : > { %v3118_v63 = vrot.slane %v697_v52, 4  ;;  %v3120_v0 = vrot.slane %v469_v53, 4  ;;  %v483_v1 = vor.u32 %v482_v54, %v479_v49  ;;  %v710_v2 = vrot.slane %v708_v55, 5  ;;  %2780 = vmatpush3.bf16.msra.mxu0 %v3015_v7  ;;  %v3135_v14 = vld [vmem:[%s3052_s17 + $0x20] sm:$0xf] }
  0x1c   : > { %v721_v5 = vrot.slane %v719_v60, 4  ;;  %v724_v6 = vrot.slane %v722_v61, 5  ;;  %v2542_v8 = vcombine.low %v3105_v56, %v3108_v57  ;;  %v491_v10 = vshrl.u32 %v3105_v56, 16  ;;  %2799 = vmatprep.subr.bf16.mxu0 %v3055_v18  ;;  %v3142_v24 = vld [vmem:[%s3052_s17 + $0x28] sm:$0xf] }
  0x1d   : > { %v3130_v11 = vrot.slane %v483_v1, 4  ;;  %v711_v12 = vor.u32 %v710_v2, %v707_v59  ;;  %v494_v7 = vshll.u32 %v3105_v56, 16  ;;  %v505_v13 = vshrl.u32 %v3108_v57, 16  ;;  %v3145_v29 = vld [vmem:[%s3052_s17 + $0x78] sm:$0xf] }
  0x1e   : > { %v725_v15 = vor.u32 %v724_v6, %v721_v5  ;;  %2772 = vmatmul.mubr.msk.bf16.vlgmr.msra.gmra.mxu1 %vm275_vm1, %v2542_v8  ;;  %v493_v16 = vrot.slane %v491_v10, 4  ;;  %v508_v17 = vshll.u32 %v3108_v57, 16  ;;  %v2535_v22 = vcombine.low %v3116_v62, %v3124_v4  ;;  %v3152_v35 = vld [vmem:[%s3052_s17 + $0x80] sm:$0xf]  ;;  %v3160_v41 = vld [vmem:[%s3052_s17 + $0x30] sm:$0xf] }
  0x1f   : > { %v3147_v30 = vrot.slane %v711_v12, 4  ;;  %v496_v31 = vrot.slane %v494_v7, 5  ;;  %v507_v32 = vrot.slane %v505_v13, 4  ;;  %2790 = vmatpush3.bf16.msra.mxu1 %v3021_v9  ;;  %v733_v34 = vshrl.u32 %v3116_v62, 16  ;;  %4006 = vst [vmem:[#allocation4_spill] sm:$0xff] %v3152_v35 }
  0x20   : > { %v3154_v36 = vrot.slane %v725_v15, 4  ;;  %v510_v37 = vrot.slane %v508_v17, 5  ;;  %2765 = vmatprep.mubr.msk.bf16.mxu0 %vm275_vm1, %v2535_v22  ;;  %v736_v39 = vshll.u32 %v3116_v62, 16  ;;  %v747_v40 = vshrl.u32 %v3124_v4, 16  ;;  %v3163_v42 = vld [vmem:[%s3052_s17 + $0x38] sm:$0xf]  ;;  %2809 = vmatprep.subr.bf16.mxu1 %v3058_v19 }
  0x21   : > { %4007 = vst [vmem:[#allocation5_spill] sm:$0xff] %v3163_v42  ;;  %v497_v9 = vor.u32 %v496_v31, %v493_v16  ;;  %v750_v44 = vshll.u32 %v3124_v4, 16  ;;  %v2543_v46 = vcombine.low %v3135_v14, %v3142_v24  ;;  %v178_v47 = vld [vmem:[%s3052_s17 + $0x4] sm:$0x1]  ;;  %v180_v48 = vld [vmem:[%s3052_s17 + $0xc] sm:$0x1]  ;;  %v2536_v61 = vcombine.low %v3145_v29, %v3152_v35 }
  0x22   : > { %v511_v49 = vor.u32 %v510_v37, %v507_v32  ;;  %v519_v50 = vshrl.u32 %v3135_v14, 16  ;;  %v522_v51 = vshll.u32 %v3135_v14, 16  ;;  %v533_v52 = vshrl.u32 %v3142_v24, 16  ;;  %v2479_v53 = vld [vmem:[%s3052_s17 + $0x4c] sm:$0x1] }
  0x23   : > { %v2481_v54 = vld [vmem:[%s3052_s17 + $0x54] sm:$0x1]  ;;  %v498_v55 = vrot.slane %v497_v9, 4  ;;  %2775 = vmatprep.mubr.msk.bf16.mxu1 %vm275_vm1, %v2543_v46  ;;  %v536_v59 = vshll.u32 %v3142_v24, 16  ;;  %v184_v2 = vld [vmem:[%s3052_s17 + $0x1c] sm:$0x1]  ;;  %2766 = vmatmul.mubr.msk.bf16.gmra.mxu0 %vm275_vm1, %v2536_v61  ;;  %v2544_v13 = vcombine.low %v3160_v41, %v3163_v42 }
  0x24   : > { %v182_v1 = vld [vmem:[%s3052_s17 + $0x14] sm:$0x1]  ;;  %v512_v5 = vrot.slane %v511_v49, 4  ;;  %v2483_v12 = vld [vmem:[%s3052_s17 + $0x5c] sm:$0x1]  ;;  %v547_v15 = vshrl.u32 %v3160_v41, 16 }
  0x25   : > { %v550_v16 = vshll.u32 %v3160_v41, 16  ;;  %v2485_v17 = vld [vmem:[%s3052_s17 + $0x64] sm:$0x1]  ;;  %v561_v22 = vshrl.u32 %v3163_v42, 16  ;;  %v472_v32 = vshll.u32 %v178_v47, 16  ;;  %v486_v37 = vshll.u32 %v180_v48, 16 }
  0x26   : > { %2776 = vmatmul.mubr.msk.bf16.gmra.mxu1 %vm275_vm1, %v2544_v13  ;;  %v686_v46 = vshll.u32 %v2479_v53, 16  ;;  %v700_v49 = vshll.u32 %v2481_v54, 16  ;;  %v500_v61 = vshll.u32 %v182_v1, 16  ;;  %v514_v45 = vshll.u32 %v184_v2, 16 }
  0x27   : > { %v474_v60 = vrot.slane %v472_v32, 5  ;;  %v488_v7 = vrot.slane %v486_v37, 5  ;;  %v714_v10 = vshll.u32 %v2483_v12, 16  ;;  %v728_v8 = vshll.u32 %v2485_v17, 16 }
  0x28   : > { %v688_v47 = vrot.slane %v686_v46, 5  ;;  %v702_v48 = vrot.slane %v700_v49, 5  ;;  %v502_v6 = vrot.slane %v500_v61, 5  ;;  %v516_v13 = vrot.slane %v514_v45, 5  ;;  %v2489_v46 = vld [vmem:[%s3052_s17 + $0x74] sm:$0x1] }
  0x29   : > { %v475_v31 = vsel %vm3202_vm4, %v3120_v0, %v474_v60  ;;  %v3212_v53 = vsel %vm3202_vm4, %v3130_v11, %v488_v7  ;;  %v716_v54 = vrot.slane %v714_v10, 5  ;;  %v730_v1 = vrot.slane %v728_v8, 5  ;;  %v186_v60 = vld [vmem:[%s3052_s17 + $0x24] sm:$0x1]  ;;  %v188_v11 = vld [vmem:[%s3052_s17 + $0x2c] sm:$0x1] }
  0x2a   : > { %v2550_v2 = vcombine.low %v475_v31, %v3212_v53  ;;  %v689_v12 = vsel %vm3202_vm4, %v3110_v58, %v688_v47  ;;  %v3221_v45 = vsel %vm3202_vm4, %v3118_v63, %v702_v48  ;;  %v3225_v0 = vsel %vm3202_vm4, %v498_v55, %v502_v6  ;;  %v2487_v55 = vld [vmem:[%s3052_s17 + $0x6c] sm:$0x1]  ;;  %v190_v48 = vld [vmem:[%s3052_s17 + $0x34] sm:$0x1] }
  0x2b   : > { %v2559_v10 = vcombine.low %v689_v12, %v3221_v45  ;;  %v3232_v8 = vsel %vm3202_vm4, %v512_v5, %v516_v13  ;;  %v3237_v58 = vsel %vm3202_vm4, %v3147_v30, %v716_v54  ;;  %v3242_v63 = vsel %vm3202_vm4, %v3154_v36, %v730_v1 }
  0x2c   : > { %4010 = vst [vmem:[#allocation6_spill] sm:$0xff] %v3232_v8  ;;  %4011 = vst [vmem:[#allocation7_spill] sm:$0xff] %v3242_v63  ;;  %2781 = vmatprep.mubr.msk.bf16.mxu0 %vm275_vm1, %v2550_v2  ;;  %v2551_v6 = vcombine.low %v3225_v0, %v3232_v8  ;;  %v2560_v5 = vcombine.low %v3237_v58, %v3242_v63  ;;  %v521_v7 = vrot.slane %v519_v50, 4  ;;  %v524_v17 = vrot.slane %v522_v51, 5  ;;  %v2499_v8 = vld [vmem:[%s3052_s17 + $0x9c] sm:$0x1] }
  0x2d   : > { %2791 = vmatprep.mubr.msk.bf16.mxu1 %vm275_vm1, %v2559_v10  ;;  %v528_v30 = vshll.u32 %v186_v60, 16  ;;  %v535_v31 = vrot.slane %v533_v52, 4  ;;  %v538_v32 = vrot.slane %v536_v59, 5  ;;  %v542_v37 = vshll.u32 %v188_v11, 16 }
  0x2e   : > { %2782 = vmatmul.mubr.msk.bf16.vlgmr.msra.gmra.mxu0 %vm275_vm1, %v2551_v6  ;;  %2792 = vmatmul.mubr.msk.bf16.vlgmr.msra.gmra.mxu1 %vm275_vm1, %v2560_v5  ;;  %v525_v36 = vor.u32 %v524_v17, %v521_v7  ;;  %v735_v49 = vrot.slane %v733_v34, 4  ;;  %v738_v50 = vrot.slane %v736_v39, 5  ;;  %v742_v51 = vshll.u32 %v2487_v55, 16  ;;  %v192_v55 = vld [vmem:[%s3052_s17 + $0x3c] sm:$0x1] }
  0x2f   : > { %2800 = vmatpush3.bf16.msra.mxu0 %v3055_v18  ;;  %2810 = vmatpush3.bf16.msra.mxu1 %v3058_v19  ;;  %v530_v52 = vrot.slane %v528_v30, 5  ;;  %v539_v59 = vor.u32 %v538_v32, %v535_v31  ;;  %v544_v61 = vrot.slane %v542_v37, 5  ;;  %v749_v47 = vrot.slane %v747_v40, 4  ;;  %v2491_v30 = vld [vmem:[%s3052_s17 + $0x7c] sm:$0x1] }
  0x30   : > { %v526_v13 = vrot.slane %v525_v36, 4  ;;  %v739_v54 = vor.u32 %v738_v50, %v735_v49  ;;  %v744_v1 = vrot.slane %v742_v51, 5  ;;  %v752_v34 = vrot.slane %v750_v44, 5  ;;  %2819 = vmatprep.subr.bf16.mxu0 %v3061_v20  ;;  %2829 = vmatprep.subr.bf16.mxu1 %v3064_v21  ;;  %v2493_v31 = vld [vmem:[%s3052_s17 + $0x84] sm:$0x1] }
  0x31   : > { %v540_v18 = vrot.slane %v539_v59, 4  ;;  %v756_v19 = vshll.u32 %v2489_v46, 16  ;;  %v549_v39 = vrot.slane %v547_v15, 4  ;;  %v552_v40 = vrot.slane %v550_v16, 5  ;;  %v2496_v50 = vld [vmem:[%s3052_s17 + $0x90] sm:$0xf] }
  0x32   : > { %v3273_v2 = vsel %vm3202_vm4, %v526_v13, %v530_v52  ;;  %v740_v12 = vrot.slane %v739_v54, 4  ;;  %v753_v44 = vor.u32 %v752_v34, %v749_v47  ;;  %v556_v60 = vshll.u32 %v190_v48, 16 }
  0x33   : > { %4012 = vst [vmem:[#allocation8_spill] sm:$0xff] %v3273_v2  ;;  %v3277_v11 = vsel %vm3202_vm4, %v540_v18, %v544_v61  ;;  %v758_v15 = vrot.slane %v756_v19, 5  ;;  %v553_v6 = vor.u32 %v552_v40, %v549_v39  ;;  %v563_v36 = vrot.slane %v561_v22, 4  ;;  %v3307_v22 = vld [vmem:[%s3052_s17 + $0x98] sm:$0xf] }
  0x34   : > { %v2552_v16 = vcombine.low %v3273_v2, %v3277_v11  ;;  %v3286_v5 = vsel %vm3202_vm4, %v740_v12, %v744_v1  ;;  %v754_v7 = vrot.slane %v753_v44, 4  ;;  %v558_v17 = vrot.slane %v556_v60, 5  ;;  %v2514_v60 = vld [vmem:[%s3052_s17 + $0xd8] sm:$0xf] }
  0x35   : > { %4013 = vst [vmem:[#allocation9_spill] sm:$0xff] %v3286_v5  ;;  %v554_v37 = vrot.slane %v553_v6, 4  ;;  %v4014_v46 = vshll.u32 %v3163_v42, 16  ;;  %v570_v52 = vshll.u32 %v192_v55, 16  ;;  %v4015_v59 = vshrl.u32 %v3145_v29, 16 }
  0x36   : > { %2785 = vmatprep.mubr.msk.bf16.mxu0 %vm275_vm1, %v2552_v16  ;;  %v3300_v51 = vsel %vm3202_vm4, %v754_v7, %v758_v15  ;;  %v4016_v47 = vshll.u32 %v3145_v29, 16  ;;  %v770_v34 = vshll.u32 %v2491_v30, 16  ;;  %v4017_v39 = vshrl.u32 %v3152_v35, 16  ;;  %v3323_v7 = vld [vmem:[%s3052_s17 + $0xe0] sm:$0xf] }
  0x37   : > { %v566_v49 = vrot.slane %v4014_v46, 5  ;;  %v763_v61 = vrot.slane %v4015_v59, 4  ;;  %v2561_v13 = vcombine.low %v3286_v5, %v3300_v51  ;;  %v3313_v54 = vsel %vm3202_vm4, %v554_v37, %v558_v17  ;;  %v3326_v46 = vld [vmem:[%s3052_s17 + $0xa0] sm:$0xf]  ;;  %v2517_v42 = vld [vmem:[%s3052_s17 + $0xe4] sm:$0x1] }
  0x38   : > { %v766_v48 = vrot.slane %v4016_v47, 5  ;;  %v572_v18 = vrot.slane %v570_v52, 5  ;;  %v777_v40 = vrot.slane %v4017_v39, 4  ;;  %v4018_v12 = vshll.u32 %v3152_v35, 16  ;;  %v2515_v35 = vld [vmem:[%s3052_s17 + $0xdc] sm:$0x1] }
  0x39   : > { %v567_v1 = vor.u32 %v566_v49, %v563_v36  ;;  %2795 = vmatprep.mubr.msk.bf16.mxu1 %vm275_vm1, %v2561_v13  ;;  %v772_v55 = vrot.slane %v770_v34, 5  ;;  %v784_v6 = vshll.u32 %v2493_v31, 16  ;;  %v2568_v16 = vcombine.low %v2496_v50, %v3307_v22  ;;  %v3412_v31 = vld [vmem:[%s3052_s17 + $0x108] sm:$0xf] }
  0x3a   : > { %v767_v19 = vor.u32 %v766_v48, %v763_v61  ;;  %v780_v44 = vrot.slane %v4018_v12, 5  ;;  %v1111_v37 = vshrl.u32 %v2496_v50, 16  ;;  %v1114_v36 = vshll.u32 %v2496_v50, 16  ;;  %v3335_v61 = vld [vmem:[%s3052_s17 + $0xa8] sm:$0xf] }
  0x3b   : > { %v568_v15 = vrot.slane %v567_v1, 4  ;;  %v786_v52 = vrot.slane %v784_v6, 5  ;;  %4019 = vst [vmem:[#allocation10_spill] sm:$0xff] %v3335_v61  ;;  %v3346_v1 = vld [vmem:[%s3052_s17 + $0xe8] sm:$0xf]  ;;  %v1328_v39 = vshll.u32 %v2514_v60, 16  ;;  %v4061_v9 = vcombine.low %v3221_v45, %v3237_v58 }
  0x3c   : > { %v768_v17 = vrot.slane %v767_v19, 4  ;;  %v781_v30 = vor.u32 %v780_v44, %v777_v40  ;;  %v3343_v13 = vrot.slane %v1111_v37, 4  ;;  %v3348_v34 = vrot.slane %v1114_v36, 5  ;;  %v3352_v40 = vld [vmem:[%s3052_s17 + $0xf0] sm:$0xf]  ;;  %v4065_v58 = vld [vmem:[#allocation7_spill] sm:$0xff] }
  0x3d   : > { %v3330_v49 = vsel %vm3202_vm4, %v568_v15, %v572_v18  ;;  %v2577_v18 = vcombine.low %v2514_v60, %v3323_v7  ;;  %v1325_v19 = vshrl.u32 %v2514_v60, 16  ;;  %4020 = vst [vmem:[#allocation11_spill] sm:$0xff] %v3352_v40  ;;  %v3364_v6 = vld [vmem:[%s3052_s17 + $0xb0] sm:$0xf]  ;;  %v3374_v37 = vrot.slane %v1328_v39, 5 }
  0x3e   : > { %v2553_v47 = vcombine.low %v3313_v54, %v3330_v49  ;;  %v3341_v50 = vsel %vm3202_vm4, %v768_v17, %v772_v55  ;;  %v782_v48 = vrot.slane %v781_v30, 4  ;;  %v2569_v55 = vcombine.low %v3326_v46, %v3335_v61  ;;  %v3367_v17 = vld [vmem:[%s3052_s17 + $0xb8] sm:$0xf]  ;;  %v3386_v15 = vld [vmem:[%s3052_s17 + $0x100] sm:$0xf] }
  0x3f   : > { %v3372_v30 = vrot.slane %v1325_v19, 4  ;;  %v2578_v10 = vcombine.low %v3346_v1, %v3352_v40  ;;  %v2570_v32 = vcombine.low %v3364_v6, %v3367_v17  ;;  %v3403_v44 = vld [vmem:[%s3052_s17 + $0xc8] sm:$0xf]  ;;  %v4022_v19 = vshrl.u32 %v3307_v22, 16 }
  0x40   : > { %2786 = vmatmul.mubr.msk.bf16.gmra.mxu0 %vm275_vm1, %v2553_v47  ;;  %v3357_v12 = vsel %vm3202_vm4, %v782_v48, %v786_v52  ;;  %v3378_v52 = vld [vmem:[%s3052_s17 + $0xf8] sm:$0xf]  ;;  %v3394_v48 = vld [vmem:[%s3052_s17 + $0xc0] sm:$0xf]  ;;  %v2497_v47 = vld [vmem:[%s3052_s17 + $0x94] sm:$0x1] }
  0x41   : > { %4021 = vst [vmem:[#allocation12_spill] sm:$0xff] %v3357_v12  ;;  %v2562_v60 = vcombine.low %v3341_v50, %v3357_v12  ;;  %2801 = vmatprep.mubr.msk.bf16.mxu0 %vm275_vm1, %v2568_v16  ;;  %v2571_v5 = vcombine.low %v3394_v48, %v3403_v44  ;;  %v1120_v36 = vshll.u32 %v2497_v47, 16  ;;  %v1127_v62 = vrot.slane %v4022_v19, 4  ;;  %v2501_v47 = vld [vmem:[%s3052_s17 + $0xa4] sm:$0x1] }
  0x42   : > { %v4023_v39 = vshll.u32 %v3307_v22, 16  ;;  %v1134_v43 = vshll.u32 %v2499_v8, 16  ;;  %v1334_v2 = vshll.u32 %v2515_v35, 16 }
  0x43   : > { %2796 = vmatmul.mubr.msk.bf16.gmra.mxu1 %vm275_vm1, %v2562_v60  ;;  %v3415_v60 = vld [vmem:[%s3052_s17 + $0x110] sm:$0xf]  ;;  %v1122_v63 = vrot.slane %v1120_v36, 5  ;;  %v1348_v36 = vshll.u32 %v2517_v42, 16 }
  0x44   : > { %2811 = vmatprep.mubr.msk.bf16.mxu1 %vm275_vm1, %v2577_v18  ;;  %v2579_v18 = vcombine.low %v3378_v52, %v3386_v15  ;;  %v2580_v59 = vcombine.low %v3412_v31, %v3415_v60  ;;  %v1130_v16 = vrot.slane %v4023_v39, 5  ;;  %v1136_v19 = vrot.slane %v1134_v43, 5 }
  0x45   : > { %v1336_v35 = vrot.slane %v1334_v2, 5  ;;  %v4027_v43 = vshll.u32 %v3326_v46, 16  ;;  %v4029_v2 = vshll.u32 %v3335_v61, 16 }
  0x46   : > { %v1131_v8 = vor.u32 %v1130_v16, %v1127_v62  ;;  %v1148_v16 = vshll.u32 %v2501_v47, 16 }
  0x47   : > { %v1144_v62 = vrot.slane %v4027_v43, 5  ;;  %v4030_v43 = vshrl.u32 %v3346_v1, 16 }
  0x48   : > { %2802 = vmatmul.mubr.msk.bf16.vlgmr.msra.gmra.mxu0 %vm275_vm1, %v2569_v55  ;;  %v1117_v55 = vor.u32 %v3348_v34, %v3343_v13  ;;  %v4024_v13 = vshrl.u32 %v3323_v7, 16 }
  0x49   : > { %2820 = vmatpush3.bf16.msra.mxu0 %v3061_v20  ;;  %2805 = vmatprep.mubr.msk.bf16.mxu0 %vm275_vm1, %v2570_v32  ;;  %v1331_v20 = vor.u32 %v3374_v37, %v3372_v30  ;;  %v4025_v30 = vshll.u32 %v3323_v7, 16 }
  0x4a   : > { %2839 = vmatprep.subr.bf16.mxu0 %v3072_v25  ;;  %v1118_v32 = vrot.slane %v1117_v55, 4  ;;  %v1341_v34 = vrot.slane %v4024_v13, 4  ;;  %v4026_v55 = vshrl.u32 %v3326_v46, 16 }
  0x4b   : > { %2812 = vmatmul.mubr.msk.bf16.vlgmr.msra.gmra.mxu1 %vm275_vm1, %v2578_v10  ;;  %v1332_v39 = vrot.slane %v1331_v20, 4  ;;  %v1344_v37 = vrot.slane %v4025_v30, 5  ;;  %v1350_v30 = vrot.slane %v1348_v36, 5 }
  0x4c   : > { %2830 = vmatpush3.bf16.msra.mxu1 %v3064_v21  ;;  %2815 = vmatprep.mubr.msk.bf16.mxu1 %vm275_vm1, %v2579_v18  ;;  %v1123_v10 = vsel %vm3202_vm4, %v1118_v32, %v1122_v63  ;;  %v1141_v13 = vrot.slane %v4026_v55, 4  ;;  %v1132_v21 = vrot.slane %v1131_v8, 4  ;;  %v2503_v18 = vld [vmem:[%s3052_s17 + $0xac] sm:$0x1]  ;;  %v4028_v63 = vshrl.u32 %v3335_v61, 16 }
  0x4d   : > { %2849 = vmatprep.subr.bf16.mxu1 %v3075_v26  ;;  %v1345_v12 = vor.u32 %v1344_v37, %v1341_v34  ;;  %v1337_v20 = vsel %vm3202_vm4, %v1332_v39, %v1336_v35  ;;  %v1158_v32 = vrot.slane %v4029_v2, 5  ;;  %v2519_v55 = vld [vmem:[%s3052_s17 + $0xec] sm:$0x1]  ;;  %v1150_v37 = vrot.slane %v1148_v16, 5  ;;  %v2521_v61 = vld [vmem:[%s3052_s17 + $0xf4] sm:$0x1] }
  0x4e   : > { %v1155_v42 = vrot.slane %v4028_v63, 4  ;;  %v3476_v34 = vsel %vm3202_vm4, %v1132_v21, %v1136_v19  ;;  %v1145_v47 = vor.u32 %v1144_v62, %v1141_v13  ;;  %v1162_v36 = vshll.u32 %v2503_v18, 16 }
  0x4f   : > { %v1346_v8 = vrot.slane %v1345_v12, 4  ;;  %v2586_v39 = vcombine.low %v1123_v10, %v3476_v34  ;;  %v1355_v63 = vrot.slane %v4030_v43, 4  ;;  %v4031_v19 = vshll.u32 %v3346_v1, 16 }
  0x50   : > { %2806 = vmatmul.mubr.msk.bf16.gmra.mxu0 %vm275_vm1, %v2571_v5  ;;  %v1159_v35 = vor.u32 %v1158_v32, %v1155_v42  ;;  %v1146_v5 = vrot.slane %v1145_v47, 4  ;;  %v1362_v12 = vshll.u32 %v2519_v55, 16  ;;  %v1164_v18 = vrot.slane %v1162_v36, 5 }
  0x51   : > { %v3483_v2 = vsel %vm3202_vm4, %v1346_v8, %v1350_v30  ;;  %v1358_v21 = vrot.slane %v4031_v19, 5  ;;  %2821 = vmatprep.mubr.msk.bf16.mxu0 %vm275_vm1, %v2586_v39  ;;  %v4032_v62 = vshrl.u32 %v3352_v40, 16  ;;  %v2505_v30 = vld [vmem:[%s3052_s17 + $0xb4] sm:$0x1]  ;;  %v4033_v55 = vshll.u32 %v3352_v40, 16 }
  0x52   : > { %v2595_v10 = vcombine.low %v1337_v20, %v3483_v2  ;;  %v1160_v13 = vrot.slane %v1159_v35, 4  ;;  %v3496_v42 = vsel %vm3202_vm4, %v1146_v5, %v1150_v37  ;;  %v1364_v8 = vrot.slane %v1362_v12, 5  ;;  %v2507_v39 = vld [vmem:[%s3052_s17 + $0xbc] sm:$0x1] }
  0x53   : > { %2816 = vmatmul.mubr.msk.bf16.gmra.mxu1 %vm275_vm1, %v2580_v59  ;;  %v1369_v16 = vrot.slane %v4032_v62, 4  ;;  %v1359_v32 = vor.u32 %v1358_v21, %v1355_v63  ;;  %v1372_v59 = vrot.slane %v4033_v55, 5  ;;  %v1376_v47 = vshll.u32 %v2521_v61, 16  ;;  %v2523_v55 = vld [vmem:[%s3052_s17 + $0xfc] sm:$0x1] }
  0x54   : > { %2831 = vmatprep.mubr.msk.bf16.mxu1 %vm275_vm1, %v2595_v10  ;;  %v3503_v20 = vsel %vm3202_vm4, %v1160_v13, %v1164_v18  ;;  %v4035_v35 = vshrl.u32 %v3364_v6, 16  ;;  %v4036_v37 = vshll.u32 %v3364_v6, 16  ;;  %v1176_v21 = vshll.u32 %v2505_v30, 16 }
  0x55   : > { %4034 = vst [vmem:[#allocation13_spill] sm:$0xff] %v3503_v20  ;;  %v2587_v63 = vcombine.low %v3496_v42, %v3503_v20  ;;  %v1360_v5 = vrot.slane %v1359_v32, 4  ;;  %v1373_v19 = vor.u32 %v1372_v59, %v1369_v16  ;;  %v1378_v12 = vrot.slane %v1376_v47, 5  ;;  %v2525_v59 = vld [vmem:[%s3052_s17 + $0x104] sm:$0x1] }
  0x56   : > { %v1169_v36 = vrot.slane %v4035_v35, 4  ;;  %v1172_v43 = vrot.slane %v4036_v37, 5  ;;  %v4037_v13 = vshrl.u32 %v3367_v17, 16  ;;  %v4038_v61 = vshll.u32 %v3367_v17, 16 }
  0x57   : > { %v3520_v35 = vsel %vm3202_vm4, %v1360_v5, %v1364_v8  ;;  %v1374_v37 = vrot.slane %v1373_v19, 4  ;;  %v1178_v32 = vrot.slane %v1176_v21, 5  ;;  %v1190_v40 = vshll.u32 %v2507_v39, 16 }
  0x58   : > { %v1173_v10 = vor.u32 %v1172_v43, %v1169_v36  ;;  %v1183_v18 = vrot.slane %v4037_v13, 4  ;;  %v1186_v62 = vrot.slane %v4038_v61, 5  ;;  %2822 = vmatmul.mubr.msk.bf16.vlgmr.msra.gmra.mxu0 %vm275_vm1, %v2587_v63  ;;  %v4039_v47 = vshrl.u32 %v3378_v52, 16  ;;  %v2509_v61 = vld [vmem:[%s3052_s17 + $0xc4] sm:$0x1] }
  0x59   : > { %2840 = vmatpush3.bf16.msra.mxu0 %v3072_v25  ;;  %v4040_v43 = vshll.u32 %v3378_v52, 16  ;;  %v3530_v63 = vsel %vm3202_vm4, %v1374_v37, %v1378_v12  ;;  %v1192_v8 = vrot.slane %v1190_v40, 5  ;;  %v1390_v5 = vshll.u32 %v2523_v55, 16  ;;  %v2527_v40 = vld [vmem:[%s3052_s17 + $0x10c] sm:$0x1] }
  0x5a   : > { %v1174_v16 = vrot.slane %v1173_v10, 4  ;;  %v1187_v30 = vor.u32 %v1186_v62, %v1183_v18  ;;  %v1383_v36 = vrot.slane %v4039_v47, 4  ;;  %v4041_v39 = vshrl.u32 %v3386_v15, 16  ;;  %2859 = vmatprep.subr.bf16.mxu0 %v3078_v27 }
  0x5b   : > { %v1386_v13 = vrot.slane %v4040_v43, 5  ;;  %v2596_v25 = vcombine.low %v3520_v35, %v3530_v63  ;;  %v1392_v12 = vrot.slane %v1390_v5, 5  ;;  %v4043_v62 = vshll.u32 %v3386_v15, 16 }
  0x5c   : > { %v1397_v19 = vrot.slane %v4041_v39, 4  ;;  %v3539_v21 = vsel %vm3202_vm4, %v1174_v16, %v1178_v32  ;;  %v1188_v10 = vrot.slane %v1187_v30, 4  ;;  %v1404_v37 = vshll.u32 %v2525_v59, 16  ;;  %v2511_v16 = vld [vmem:[%s3052_s17 + $0xcc] sm:$0x1] }
  0x5d   : > { %4042 = vst [vmem:[#allocation14_spill] sm:$0xff] %v3539_v21  ;;  %v1387_v18 = vor.u32 %v1386_v13, %v1383_v36  ;;  %v1400_v55 = vrot.slane %v4043_v62, 5  ;;  %2832 = vmatmul.mubr.msk.bf16.vlgmr.msra.gmra.mxu1 %vm275_vm1, %v2596_v25  ;;  %v4044_v30 = vshrl.u32 %v3394_v48, 16  ;;  %v4045_v43 = vshll.u32 %v3394_v48, 16 }
  0x5e   : > { %v3549_v47 = vsel %vm3202_vm4, %v1188_v10, %v1192_v8  ;;  %2850 = vmatpush3.bf16.msra.mxu1 %v3075_v26  ;;  %v1406_v39 = vrot.slane %v1404_v37, 5  ;;  %v1204_v25 = vshll.u32 %v2509_v61, 16  ;;  %v4051_v20 = vshrl.u32 %v3415_v60, 16 }
  0x5f   : > { %v1388_v32 = vrot.slane %v1387_v18, 4  ;;  %v1197_v36 = vrot.slane %v4044_v30, 4  ;;  %v1200_v13 = vrot.slane %v4045_v43, 5  ;;  %v2588_v59 = vcombine.low %v3539_v21, %v3549_v47  ;;  %2869 = vmatprep.subr.bf16.mxu1 %v3081_v28 }
  0x60   : > { %v1401_v5 = vor.u32 %v1400_v55, %v1397_v19  ;;  %v4047_v18 = vshrl.u32 %v3403_v44, 16  ;;  %v4048_v30 = vshll.u32 %v3403_v44, 16  ;;  %v1206_v61 = vrot.slane %v1204_v25, 5 }
  0x61   : > { %v3561_v8 = vsel %vm3202_vm4, %v1388_v32, %v1392_v12  ;;  %v1201_v10 = vor.u32 %v1200_v13, %v1197_v36  ;;  %2825 = vmatprep.mubr.msk.bf16.mxu0 %vm275_vm1, %v2588_v59  ;;  %v1218_v55 = vshll.u32 %v2511_v16, 16  ;;  %v2529_v32 = vld [vmem:[%s3052_s17 + $0x114] sm:$0x1]  ;;  %v4049_v36 = vshrl.u32 %v3412_v31, 16  ;;  %v2639_v16 = vld [vmem:[%s3987_s1 + $0xc] sm:$0x1] }
  0x62   : > { %4046 = vst [vmem:[#allocation15_spill] sm:$0xff] %v3561_v8  ;;  %v1211_v62 = vrot.slane %v4047_v18, 4  ;;  %v1214_v43 = vrot.slane %v4048_v30, 5  ;;  %v1402_v26 = vrot.slane %v1401_v5, 4  ;;  %v4050_v18 = vshll.u32 %v3412_v31, 16 }
  0x63   : > { %v1202_v12 = vrot.slane %v1201_v10, 4  ;;  %v1411_v13 = vrot.slane %v4049_v36, 4  ;;  %v1220_v59 = vrot.slane %v1218_v55, 5  ;;  %v1418_v5 = vshll.u32 %v2527_v40, 16  ;;  %v2648_v40 = vld [vmem:[%s3987_s1 + $0xd] sm:$0x1] }
  0x64   : > { %v1215_v37 = vor.u32 %v1214_v43, %v1211_v62  ;;  %v1414_v30 = vrot.slane %v4050_v18, 5  ;;  %v3579_v21 = vsel %vm3202_vm4, %v1402_v26, %v1406_v39  ;;  %v1425_v19 = vrot.slane %v4051_v20, 4 }
  0x65   : > { %v2597_v25 = vcombine.low %v3561_v8, %v3579_v21  ;;  %v3590_v10 = vsel %vm3202_vm4, %v1202_v12, %v1206_v61  ;;  %v1420_v43 = vrot.slane %v1418_v5, 5  ;;  %v4052_v20 = vshll.u32 %v3415_v60, 16 }
  0x66   : > { %v1216_v62 = vrot.slane %v1215_v37, 4  ;;  %v1415_v39 = vor.u32 %v1414_v30, %v1411_v13  ;;  %v1432_v55 = vshll.u32 %v2529_v32, 16  ;;  %v2604_v12 = vcombine.low %v3086_v33, %v3105_v56  ;;  %v3610_v32 = vld [vmem:[%s3052_s17 + $0x40] sm:$0xf] }
  0x67   : > { %v1428_v26 = vrot.slane %v4052_v20, 5  ;;  %2835 = vmatprep.mubr.msk.bf16.mxu1 %vm275_vm1, %v2597_v25  ;;  %v3605_v37 = vand.u32 %v2639_v16, %v3006_v3  ;;  %v3613_v5 = vand.u32 %v2648_v40, %v3006_v3  ;;  %v2606_v33 = vcombine.low %v3142_v24, %v3160_v41  ;;  %v3622_v25 = vld [vmem:[%s3052_s17 + $0x88] sm:$0xf]  ;;  %v3649_v40 = vld [vmem:[%s3052_s17 + $0xd0] sm:$0xf] }
  0x68   : > { %v3600_v36 = vsel %vm3202_vm4, %v1216_v62, %v1220_v59  ;;  %v1416_v61 = vrot.slane %v1415_v39, 4  ;;  %v1434_v30 = vrot.slane %v1432_v55, 5  ;;  %v2613_v59 = vcombine.low %v3068_v23, %v3091_v38  ;;  %v194_v38 = vld [vmem:[%s3052_s17 + $0x44] sm:$0x1] }
  0x69   : > { %v2589_v13 = vcombine.low %v3590_v10, %v3600_v36  ;;  %v1429_v18 = vor.u32 %v1428_v26, %v1425_v19  ;;  %v1731_v56 = vshrl.u32 %v3610_v32, 16  ;;  %v1734_v16 = vshll.u32 %v3610_v32, 16 }
  0x6a   : > { %v3627_v19 = vsel %vm3202_vm4, %v1416_v61, %v1420_v43  ;;  %v1840_v39 = vshrl.u32 %v3622_v25, 16  ;;  %v1843_v23 = vshll.u32 %v3622_v25, 16  ;;  %v2495_v43 = vld [vmem:[%s3052_s17 + $0x8c] sm:$0x1] }
  0x6b   : > { %2826 = vmatmul.mubr.msk.bf16.gmra.mxu0 %vm275_vm1, %v2589_v13  ;;  %v1430_v62 = vrot.slane %v1429_v18, 4  ;;  %v1733_v24 = vrot.slane %v1731_v56, 4  ;;  %v1736_v41 = vrot.slane %v1734_v16, 5  ;;  %v2624_v13 = vcombine.low %v3277_v11, %v3313_v54 }
  0x6c   : > { %2841 = vmatprep.mubr.msk.bf16.mxu0 %vm275_vm1, %v2604_v12  ;;  %v1842_v55 = vrot.slane %v1840_v39, 4  ;;  %v1845_v61 = vrot.slane %v1843_v23, 5  ;;  %v1740_v16 = vshll.u32 %v194_v38, 16  ;;  %v1849_v8 = vshll.u32 %v2495_v43, 16  ;;  %v3656_v39 = vld [vmem:[%s3052_s17 + $0x118] sm:$0xf] }
  0x6d   : > { %v3640_v26 = vsel %vm3202_vm4, %v1430_v62, %v1434_v30  ;;  %v1737_v56 = vor.u32 %v1736_v41, %v1733_v24  ;;  %v2640_v30 = vcombine.low %v3307_v22, %v3326_v46  ;;  %v2649_v62 = vcombine.low %v3323_v7, %v3346_v1  ;;  %v4057_v38 = vld [vmem:[#allocation3_spill] sm:$0xff]  ;;  %v4077_v1 = vld [vmem:[#allocation13_spill] sm:$0xff] }
  0x6e   : > { %v2598_v12 = vcombine.low %v3627_v19, %v3640_v26  ;;  %v1846_v20 = vor.u32 %v1845_v61, %v1842_v55  ;;  %v2615_v23 = vcombine.low %v3124_v4, %v3145_v29  ;;  %v1742_v24 = vrot.slane %v1740_v16, 5  ;;  %v2531_v61 = vld [vmem:[%s3052_s17 + $0x11c] sm:$0x1]  ;;  %v4072_v22 = vld [vmem:[#allocation11_spill] sm:$0xff] }
  0x6f   : > { %v1738_v18 = vrot.slane %v1737_v56, 4  ;;  %v1851_v43 = vrot.slane %v1849_v8, 5  ;;  %v2141_v29 = vshrl.u32 %v3649_v40, 16  ;;  %v2250_v16 = vshrl.u32 %v3656_v39, 16  ;;  %v4054_v56 = vld [vmem:[#allocation12_spill] sm:$0xff] }
  0x70   : > { %2836 = vmatmul.mubr.msk.bf16.gmra.mxu1 %vm275_vm1, %v2598_v12  ;;  %v1847_v41 = vrot.slane %v1846_v20, 4  ;;  %v2144_v12 = vshll.u32 %v3649_v40, 16  ;;  %v4073_v54 = vcombine.low %v4072_v22, %v3378_v52  ;;  %v4074_v7 = vcombine.low %v3386_v15, %v3412_v31  ;;  %v4080_v31 = vld [vmem:[#allocation15_spill] sm:$0xff] }
  0x71   : > { %2851 = vmatprep.mubr.msk.bf16.mxu1 %vm275_vm1, %v2613_v59  ;;  %v1743_v4 = vsel %vm3202_vm4, %v1738_v18, %v1742_v24  ;;  %v4053_v59 = vcombine.low %v3108_v57, %v3135_v14  ;;  %v2253_v18 = vshll.u32 %v3656_v39, 16  ;;  %v2513_v24 = vld [vmem:[%s3052_s17 + $0xd4] sm:$0x1]  ;;  %v2143_v57 = vrot.slane %v2141_v29, 4 }
  0x72   : > { %v2625_v8 = vcombine.low %v3330_v49, %v1743_v4  ;;  %v1852_v20 = vsel %vm3202_vm4, %v1847_v41, %v1851_v43  ;;  %v2146_v14 = vrot.slane %v2144_v12, 5  ;;  %v2658_v49 = vcombine.low %v3476_v34, %v3496_v42  ;;  %v4055_v12 = vld [vmem:[#allocation5_spill] sm:$0xff]  ;;  %v4056_v42 = vld [vmem:[#allocation2_spill] sm:$0xff] }
  0x73   : > { %2842 = vmatmul.mubr.msk.bf16.vlgmr.msra.gmra.mxu0 %vm275_vm1, %v4053_v59  ;;  %v2634_v55 = vcombine.low %v4054_v56, %v1852_v20  ;;  %v2252_v41 = vrot.slane %v2250_v16, 4  ;;  %v2255_v43 = vrot.slane %v2253_v18, 5  ;;  %v2667_v4 = vcombine.low %v3483_v2, %v3520_v35 }
  0x74   : > { %2860 = vmatpush3.bf16.msra.mxu0 %v3078_v27  ;;  %2845 = vmatprep.mubr.msk.bf16.mxu0 %vm275_vm1, %v2606_v33  ;;  %v2660_v59 = vcombine.low %v3549_v47, %v3590_v10  ;;  %v2669_v27 = vcombine.low %v3579_v21, %v3627_v19  ;;  %v2147_v33 = vor.u32 %v2146_v14, %v2143_v57  ;;  %v2150_v56 = vshll.u32 %v2513_v24, 16  ;;  %v4059_v19 = vld [vmem:[#allocation4_spill] sm:$0xff] }
  0x75   : > { %2879 = vmatprep.subr.bf16.mxu0 %v3605_v37  ;;  %v2259_v29 = vshll.u32 %v2531_v61, 16  ;;  %v2607_v20 = vcombine.low %v4055_v12, %v3610_v32  ;;  %v2256_v34 = vor.u32 %v2255_v43, %v2252_v41  ;;  %v4058_v16 = vcombine.low %v4056_v42, %v4057_v38  ;;  %v2657_v61 = vld [vmem:[%s3987_s1 + $0xe] sm:$0x1]  ;;  %v4063_v24 = vld [vmem:[#allocation8_spill] sm:$0xff] }
  0x76   : > { %v2148_v18 = vrot.slane %v2147_v33, 4  ;;  %v2152_v2 = vrot.slane %v2150_v56, 5  ;;  %v2616_v38 = vcombine.low %v4059_v19, %v3622_v25  ;;  %v4062_v25 = vld [vmem:[#allocation6_spill] sm:$0xff]  ;;  %v4068_v14 = vcombine.low %v3300_v51, %v3341_v50 }
  0x77   : > { %v2261_v35 = vrot.slane %v2259_v29, 5  ;;  %v2257_v21 = vrot.slane %v2256_v34, 4  ;;  %v4071_v51 = vcombine.low %v3367_v17, %v3394_v48  ;;  %v4075_v46 = vcombine.low %v3403_v44, %v3649_v40 }
  0x78   : > { %2852 = vmatmul.mubr.msk.bf16.vlgmr.msra.gmra.mxu1 %vm275_vm1, %v4058_v16  ;;  %v2153_v47 = vsel %vm3202_vm4, %v2148_v18, %v2152_v2  ;;  %v4076_v50 = vcombine.low %v3415_v60, %v3656_v39  ;;  %v4081_v44 = vcombine.low %v3530_v63, %v4080_v31 }
  0x79   : > { %2870 = vmatpush3.bf16.msra.mxu1 %v3081_v28  ;;  %2855 = vmatprep.mubr.msk.bf16.mxu1 %vm275_vm1, %v2615_v23  ;;  %v2661_v10 = vcombine.low %v3600_v36, %v2153_v47  ;;  %v2262_v32 = vsel %vm3202_vm4, %v2257_v21, %v2261_v35  ;;  %v4060_v28 = vcombine.low %v3212_v53, %v3225_v0  ;;  %v2666_v0 = vld [vmem:[%s3987_s1 + $0xf] sm:$0x1] }
  0x7a   : > { %2889 = vmatprep.subr.bf16.mxu1 %v3613_v5  ;;  %v2670_v23 = vcombine.low %v3640_v26, %v2262_v32  ;;  %v2174_v36 = vand.u32 %v2657_v61, %v3006_v3  ;;  %v4064_v53 = vcombine.low %v4062_v25, %v4063_v24  ;;  %v2283_v45 = vand.u32 %v2666_v0, %v3006_v3  ;;  %v4066_v26 = vld [vmem:[#allocation9_spill] sm:$0xff]  ;;  %v4069_v3 = vld [vmem:[#allocation10_spill] sm:$0xff] }
  0x7b   : > { %2846 = vmatmul.mubr.msk.bf16.gmra.mxu0 %vm275_vm1, %v2607_v20  ;;  %v4067_v57 = vcombine.low %v4065_v58, %v4066_v26  ;;  %v4070_v11 = vcombine.low %v4069_v3, %v3364_v6  ;;  %v4078_v6 = vld [vmem:[#allocation14_spill] sm:$0xff] }
  0x7c   : > { %2861 = vmatprep.mubr.msk.bf16.mxu0 %vm275_vm1, %v4060_v28  ;;  %v4079_v17 = vcombine.low %v4077_v1, %v4078_v6 }
  0x80   : > { %2856 = vmatmul.mubr.msk.bf16.gmra.mxu1 %vm275_vm1, %v2616_v38 }
  0x81   : > { %2871 = vmatprep.mubr.msk.bf16.mxu1 %vm275_vm1, %v4061_v9 }
  0x83   : > { %2862 = vmatmul.mubr.msk.bf16.vlgmr.msra.gmra.mxu0 %vm275_vm1, %v4064_v53 }
  0x84   : > { %2880 = vmatpush3.bf16.msra.mxu0 %v3605_v37  ;;  %2865 = vmatprep.mubr.msk.bf16.mxu0 %vm275_vm1, %v2624_v13 }
  0x85   : > { %2899 = vmatprep.subr.bf16.mxu0 %v2174_v36 }
  0x88   : > { %2872 = vmatmul.mubr.msk.bf16.vlgmr.msra.gmra.mxu1 %vm275_vm1, %v4067_v57 }
  0x89   : > { %2890 = vmatpush3.bf16.msra.mxu1 %v3613_v5  ;;  %2875 = vmatprep.mubr.msk.bf16.mxu1 %vm275_vm1, %v4068_v14 }
  0x8a   : > { %2909 = vmatprep.subr.bf16.mxu1 %v2283_v45 }
  0x8b   : > { %2866 = vmatmul.mubr.msk.bf16.gmra.mxu0 %vm275_vm1, %v2625_v8 }
  0x8c   : > { %2881 = vmatprep.mubr.msk.bf16.mxu0 %vm275_vm1, %v2640_v30 }
  0x90   : > { %2876 = vmatmul.mubr.msk.bf16.gmra.mxu1 %vm275_vm1, %v2634_v55 }
  0x91   : > { %2891 = vmatprep.mubr.msk.bf16.mxu1 %vm275_vm1, %v2649_v62 }
  0x93   : > { %2882 = vmatmul.mubr.msk.bf16.vlgmr.msra.gmra.mxu0 %vm275_vm1, %v4070_v11 }
  0x94   : > { %2900 = vmatpush3.bf16.msra.mxu0 %v2174_v36  ;;  %2885 = vmatprep.mubr.msk.bf16.mxu0 %vm275_vm1, %v4071_v51 }
  0x98   : > { %2892 = vmatmul.mubr.msk.bf16.vlgmr.msra.gmra.mxu1 %vm275_vm1, %v4073_v54 }
  0x99   : > { %2910 = vmatpush3.bf16.msra.mxu1 %v2283_v45  ;;  %2895 = vmatprep.mubr.msk.bf16.mxu1 %vm275_vm1, %v4074_v7 }
  0x9b   : > { %2886 = vmatmul.mubr.msk.bf16.gmra.mxu0 %vm275_vm1, %v4075_v46 }
  0x9c   : > { %2901 = vmatprep.mubr.msk.bf16.mxu0 %vm275_vm1, %v2658_v49 }
  0xa0   : > { %2896 = vmatmul.mubr.msk.bf16.gmra.mxu1 %vm275_vm1, %v4076_v50 }
  0xa1   : > { %2911 = vmatprep.mubr.msk.bf16.mxu1 %vm275_vm1, %v2667_v4 }
  0xa3   : > { %2902 = vmatmul.mubr.msk.bf16.vlgmr.msra.gmra.mxu0 %vm275_vm1, %v4079_v17 }
  0xa4   : > { %2905 = vmatprep.mubr.msk.bf16.mxu0 %vm275_vm1, %v2660_v59 }
  0xa8   : > { %2912 = vmatmul.mubr.msk.bf16.vlgmr.msra.gmra.mxu1 %vm275_vm1, %v4081_v44 }
  0xa9   : > { %2915 = vmatprep.mubr.msk.bf16.mxu1 %vm275_vm1, %v2669_v27 }
  0xab   : > { %2906 = vmatmul.mubr.msk.bf16.gmra.mxu0 %vm275_vm1, %v2661_v10 }
  0xb0   : > { %2916 = vmatmul.mubr.msk.bf16.gmra.mxu1 %vm275_vm1, %v2670_v23 }
  0xda   : > { %v2763_v15 = vpop.f32.mrf.mxu0 }
  0xdc   : > { %v328_v52 = vpop.f32.mrf.mxu0 }
  0xde   : > { %v2773_v48 = vpop.f32.mrf.mxu1  ;;  %v2764_v60 = vpop.f32.mrf.mxu0 }
  0xdf   : > { %v437_v37 = vadd.f32 %v2773_v48, %v2763_v15 }
  0xe0   : > { %v428_v5 = vpop.f32.mrf.mxu1  ;;  %v331_v13 = vpop.f32.mrf.mxu0 }
  0xe1   : > { %v429_v40 = vadd.f32 %v428_v5, %v328_v52 }
  0xe2   : > { %v2774_v30 = vpop.f32.mrf.mxu1 }
  0xe3   : > { %v440_v62 = vadd.f32 %v2774_v30, %v2764_v60  ;;  %v2767_v55 = vpop.f32.mrf.mxu0 }
  0xe4   : > { %v431_v39 = vpop.f32.mrf.mxu1 }
  0xe5   : > { %v432_v63 = vadd.f32 %v431_v39, %v331_v13  ;;  %v344_v49 = vpop.f32.mrf.mxu0 }
  0xe6   : > { %v2777_v8 = vpop.f32.mrf.mxu1 }
  0xe7   : > { %v453_v41 = vadd.f32 %v2777_v8, %v2767_v55  ;;  %v2768_v4 = vpop.f32.mrf.mxu0 }
  0xe8   : > { %v444_v43 = vpop.f32.mrf.mxu1 }
  0xe9   : > { %v445_v59 = vadd.f32 %v444_v43, %v344_v49  ;;  %v347_v33 = vpop.f32.mrf.mxu0 }
  0xea   : > { %v2778_v27 = vpop.f32.mrf.mxu1 }
  0xeb   : > { %v456_v56 = vadd.f32 %v2778_v27, %v2768_v4 }
  0xec   : > { %v447_v29 = vpop.f32.mrf.mxu1 }
  0xed   : > { %v448_v12 = vadd.f32 %v447_v29, %v347_v33 }
  0xee   : > { %v2783_v20 = vpop.f32.mrf.mxu0  ;;  %v2793_v34 = vpop.f32.mrf.mxu1 }
  0xef   : > { %v670_v42 = vadd.f32 %v2783_v20, %v437_v37 }
  0xf0   : > { %v637_v16 = vpop.f32.mrf.mxu0  ;;  %v851_v18 = vpop.f32.mrf.mxu1 }
  0xf1   : > { %v3798_v2 = vadd.f32 %v2793_v34, %v670_v42  ;;  %v668_v35 = vadd.f32 %v637_v16, %v429_v40 }
  0xf2   : > { %v2784_v21 = vpop.f32.mrf.mxu0  ;;  %v2794_v47 = vpop.f32.mrf.mxu1 }
  0xf3   : > { %v3800_v10 = vadd.f32 %v851_v18, %v668_v35  ;;  %v671_v32 = vadd.f32 %v2784_v21, %v440_v62 }
  0xf4   : > { %v640_v19 = vpop.f32.mrf.mxu0  ;;  %v854_v23 = vpop.f32.mrf.mxu1 }
  0xf5   : > { %v3802_v38 = vadd.f32 %v2794_v47, %v671_v32  ;;  %v669_v28 = vadd.f32 %v640_v19, %v432_v63 }
  0xf7   : > { %v3804_v61 = vadd.f32 %v854_v23, %v669_v28 }
 0x100   : > { %v2787_v9 = vpop.f32.mrf.mxu0 }
 0x101   : > { %v674_v36 = vadd.f32 %v2787_v9, %v453_v41 }
 0x102   : > { %v653_v25 = vpop.f32.mrf.mxu0 }
 0x103   : > { %v2797_v24 = vpop.f32.mrf.mxu1  ;;  %v672_v53 = vadd.f32 %v653_v25, %v445_v59 }
 0x104   : > { %v3806_v0 = vadd.f32 %v2797_v24, %v674_v36  ;;  %v2788_v45 = vpop.f32.mrf.mxu0 }
 0x105   : > { %v867_v58 = vpop.f32.mrf.mxu1  ;;  %v675_v26 = vadd.f32 %v2788_v45, %v456_v56 }
 0x106   : > { %v3808_v57 = vadd.f32 %v867_v58, %v672_v53  ;;  %v656_v14 = vpop.f32.mrf.mxu0 }
 0x107   : > { %v2798_v3 = vpop.f32.mrf.mxu1  ;;  %v673_v11 = vadd.f32 %v656_v14, %v448_v12 }
 0x108   : > { %v3810_v51 = vadd.f32 %v2798_v3, %v675_v26  ;;  %v2803_v22 = vpop.f32.mrf.mxu0 }
 0x109   : > { %v870_v54 = vpop.f32.mrf.mxu1  ;;  %v994_v58 = vadd.f32 %v2803_v22, %v3798_v2 }
 0x10a   : > { %v3812_v7 = vadd.f32 %v870_v54, %v673_v11  ;;  %v961_v46 = vpop.f32.mrf.mxu0 }
 0x10b   : > { %v2813_v50 = vpop.f32.mrf.mxu1  ;;  %v992_v3 = vadd.f32 %v961_v46, %v3800_v10 }
 0x10c   : > { %v2804_v1 = vpop.f32.mrf.mxu0 }
 0x10d   : > { %v1071_v6 = vpop.f32.mrf.mxu1 }
 0x10e   : > { %v964_v17 = vpop.f32.mrf.mxu0 }
 0x10f   : > { %v2814_v31 = vpop.f32.mrf.mxu1  ;;  %v993_v2 = vadd.f32 %v964_v17, %v3804_v61 }
 0x110   : > { %v2807_v44 = vpop.f32.mrf.mxu0 }
 0x111   : > { %v3814_v15 = vpop.f32.mrf.mxu1  ;;  %v998_v22 = vadd.f32 %v2807_v44, %v3806_v0 }
 0x112   : > { %v977_v52 = vpop.f32.mrf.mxu0 }
 0x113   : > { %v3816_v48 = vpop.f32.mrf.mxu1 }
 0x114   : > { %v3818_v60 = vpop.f32.mrf.mxu0  ;;  %v1108_v61 = vadd.f32 %v3816_v48, %v998_v22 }
 0x115   : > { %v3820_v37 = vpop.f32.mrf.mxu1  ;;  %v999_v0 = vadd.f32 %v3818_v60, %v3810_v51 }
 0x116   : > { %v3822_v5 = vpop.f32.mrf.mxu0 }
 0x117   : > { %v3824_v40 = vpop.f32.mrf.mxu1  ;;  %v997_v51 = vadd.f32 %v3822_v5, %v3812_v7 }
 0x118   : > { %v2823_v13 = vpop.f32.mrf.mxu0  ;;  %v1109_v48 = vadd.f32 %v3824_v40, %v999_v0 }
 0x119   : > { %v3826_v30 = vpop.f32.mrf.mxu1 }
 0x11a   : > { %v1285_v62 = vpop.f32.mrf.mxu0 }
 0x11c   : > { %v2824_v63 = vpop.f32.mrf.mxu0 }
 0x11d   : > { %v2833_v39 = vpop.f32.mrf.mxu1 }
 0x11e   : > { %v1288_v8 = vpop.f32.mrf.mxu0 }
 0x11f   : > { %v1499_v55 = vpop.f32.mrf.mxu1 }
 0x121   : > { %v3828_v49 = vpop.f32.mrf.mxu1 }
 0x123   : > { %v3830_v43 = vpop.f32.mrf.mxu1 }
 0x12b   : > { %v2827_v41 = vpop.f32.mrf.mxu0 }
 0x12d   : > { %v3832_v4 = vpop.f32.mrf.mxu0 }
 0x12f   : > { %v3834_v59 = vpop.f32.mrf.mxu0 }
 0x130   : > { %v3836_v27 = vpop.f32.mrf.mxu1 }
 0x131   : > { %v3838_v33 = vpop.f32.mrf.mxu0 }
 0x132   : > { %v3840_v56 = vpop.f32.mrf.mxu1 }
 0x133   : > { %v2843_v29 = vpop.f32.mrf.mxu0 }
 0x134   : > { %v3842_v12 = vpop.f32.mrf.mxu1 }
 0x135   : > { %v1595_v20 = vpop.f32.mrf.mxu0 }
 0x136   : > { %v3844_v34 = vpop.f32.mrf.mxu1 }
 0x137   : > { %4082 = vst [vmem:[#allocation12_spill] sm:$0xff] %v3844_v34  ;;  %v2844_v42 = vpop.f32.mrf.mxu0 }
 0x138   : > { %v2853_v16 = vpop.f32.mrf.mxu1 }
 0x139   : > { %v3846_v18 = vpop.f32.mrf.mxu0 }
 0x13a   : > { %v1691_v35 = vpop.f32.mrf.mxu1 }
 0x13b   : > { %v3848_v21 = vpop.f32.mrf.mxu0 }
 0x13c   : > { %v3850_v47 = vpop.f32.mrf.mxu1 }
 0x13d   : > { %v3852_v32 = vpop.f32.mrf.mxu0 }
 0x13e   : > { %v3854_v19 = vpop.f32.mrf.mxu1 }
 0x13f   : > { %v3856_v28 = vpop.f32.mrf.mxu0 }
 0x140   : > { %4083 = vst [vmem:[#allocation5_spill] sm:$0xff] %v3856_v28  ;;  %v3858_v23 = vpop.f32.mrf.mxu1  ;;  %v1102_v28 = vadd.f32 %v1071_v6, %v992_v3 }
 0x141   : > { %4084 = vst [vmem:[#allocation2_spill] sm:$0xff] %v3858_v23  ;;  %v3860_v9 = vpop.f32.mrf.mxu0 }
 0x142   : > { %4085 = vst [vmem:[#allocation3_spill] sm:$0xff] %v3860_v9  ;;  %v3862_v36 = vpop.f32.mrf.mxu1  ;;  %v1104_v9 = vadd.f32 %v2813_v50, %v994_v58 }
 0x143   : > { %4086 = vst [vmem:[#allocation4_spill] sm:$0xff] %v3862_v36  ;;  %v2863_v25 = vpop.f32.mrf.mxu0  ;;  %v995_v36 = vadd.f32 %v2804_v1, %v3802_v38  ;;  %v996_v38 = vadd.f32 %v977_v52, %v3808_v57 }
 0x144   : > { %v3864_v24 = vpop.f32.mrf.mxu1 }
 0x145   : > { %4087 = vst [vmem:[#allocation6_spill] sm:$0xff] %v3864_v24  ;;  %v1800_v53 = vpop.f32.mrf.mxu0  ;;  %v1105_v46 = vadd.f32 %v2814_v31, %v995_v36  ;;  %v1106_v57 = vadd.f32 %v3820_v37, %v996_v38 }
 0x146   : > { %v3866_v45 = vpop.f32.mrf.mxu1 }
 0x147   : > { %4088 = vst [vmem:[#allocation8_spill] sm:$0xff] %v3866_v45  ;;  %v3869_v26 = vpop.f32.mrf.mxu0  ;;  %v1318_v45 = vadd.f32 %v2823_v13, %v1104_v9  ;;  %v1319_v58 = vadd.f32 %v2824_v63, %v1105_v46  ;;  %v1103_v13 = vadd.f32 %v3814_v15, %v993_v2  ;;  %v1320_v60 = vadd.f32 %v3832_v4, %v1106_v57  ;;  %v4092_v38 = vld [vmem:[#allocation5_spill] sm:$0xff] }
 0x148   : > { %v2873_v14 = vpop.f32.mrf.mxu1  ;;  %v4091_v46 = vld [vmem:[#allocation2_spill] sm:$0xff] }
 0x149   : > { %v3872_v11 = vpop.f32.mrf.mxu0  ;;  %v1532_v1 = vadd.f32 %v2833_v39, %v1318_v45  ;;  %v1317_v52 = vadd.f32 %v1288_v8, %v1103_v13  ;;  %v1533_v63 = vadd.f32 %v3828_v49, %v1319_v58  ;;  %v1323_v49 = vadd.f32 %v3834_v59, %v1109_v48 }
 0x14a   : > { %4089 = vst [vmem:[#allocation7_spill] sm:$0xff] %v3872_v11  ;;  %v3874_v54 = vpop.f32.mrf.mxu1  ;;  %v1316_v11 = vadd.f32 %v1285_v62, %v1102_v28  ;;  %v1322_v28 = vadd.f32 %v2827_v41, %v1108_v61  ;;  %v1534_v7 = vadd.f32 %v3840_v56, %v1320_v60  ;;  %v4094_v61 = vld [vmem:[#allocation12_spill] sm:$0xff] }
 0x14b   : > { %4090 = vst [vmem:[#allocation9_spill] sm:$0xff] %v3874_v54  ;;  %v3877_v34 = vpop.f32.mrf.mxu0  ;;  %v1628_v44 = vadd.f32 %v2843_v29, %v1532_v1  ;;  %v1629_v36 = vadd.f32 %v2844_v42, %v1533_v63  ;;  %v1531_v8 = vadd.f32 %v3830_v43, %v1317_v52  ;;  %v4095_v0 = vld [vmem:[#allocation4_spill] sm:$0xff] }
 0x14c   : > { %v3879_v24 = vpop.f32.mrf.mxu1  ;;  %v1530_v31 = vadd.f32 %v1499_v55, %v1316_v11  ;;  %v1536_v41 = vadd.f32 %v3836_v27, %v1322_v28  ;;  %v1107_v11 = vadd.f32 %v3826_v30, %v997_v51  ;;  %v1537_v27 = vadd.f32 %v3842_v12, %v1323_v49  ;;  %v4097_v28 = vld [vmem:[#allocation6_spill] sm:$0xff] }
 0x14d   : > { %v3881_v23 = vpop.f32.mrf.mxu0  ;;  %v1724_v29 = vadd.f32 %v2853_v16, %v1628_v44  ;;  %v1627_v5 = vadd.f32 %v3846_v18, %v1531_v8  ;;  %v1725_v16 = vadd.f32 %v3850_v47, %v1629_v36 }
 0x14e   : > { %v3885_v10 = vpop.f32.mrf.mxu1  ;;  %v1626_v9 = vadd.f32 %v1595_v20, %v1530_v31  ;;  %v1632_v4 = vadd.f32 %v3848_v21, %v1536_v41  ;;  %v1321_v59 = vadd.f32 %v3838_v33, %v1107_v11  ;;  %v1633_v1 = vadd.f32 %v4092_v38, %v1537_v27 }
 0x14f   : > { %v3887_v54 = vpop.f32.mrf.mxu0  ;;  %v1833_v3 = vadd.f32 %v2863_v25, %v1724_v29  ;;  %v1834_v30 = vadd.f32 %v3869_v26, %v1725_v16  ;;  %v1723_v18 = vadd.f32 %v3854_v19, %v1627_v5 }
 0x150   : > { %v3890_v50 = vpop.f32.mrf.mxu1  ;;  %v1722_v45 = vadd.f32 %v1691_v35, %v1626_v9  ;;  %v1630_v35 = vadd.f32 %v3852_v32, %v1534_v7  ;;  %v1728_v21 = vadd.f32 %v4091_v46, %v1632_v4  ;;  %v1535_v33 = vadd.f32 %v4094_v61, %v1321_v59  ;;  %v4098_v9 = vld [vmem:[#allocation3_spill] sm:$0xff] }
 0x151   : > { %v3892_v6 = vpop.f32.mrf.mxu0  ;;  %v1942_v22 = vadd.f32 %v2873_v14, %v1833_v3  ;;  %v4096_v31 = vld [vmem:[#allocation7_spill] sm:$0xff]  ;;  %v1943_v19 = vadd.f32 %v3879_v24, %v1834_v30  ;;  %v1729_v63 = vadd.f32 %v4097_v28, %v1633_v1  ;;  %v4099_v3 = vld [vmem:[#allocation8_spill] sm:$0xff] }
 0x152   : > { %v3898_v17 = vpop.f32.mrf.mxu1  ;;  %v1831_v43 = vadd.f32 %v1800_v53, %v1722_v45  ;;  %v4093_v53 = vld [vmem:[#allocation9_spill] sm:$0xff]  ;;  %v1726_v32 = vadd.f32 %v4095_v0, %v1630_v35  ;;  %v1832_v14 = vadd.f32 %v4096_v31, %v1723_v18  ;;  %v1837_v26 = vadd.f32 %v3877_v34, %v1728_v21 }
 0x153   : > { %v2883_v62 = vpop.f32.mrf.mxu0  ;;  %v1631_v48 = vadd.f32 %v4098_v9, %v1535_v33  ;;  %v1838_v41 = vadd.f32 %v3887_v54, %v1729_v63 }
 0x154   : > { %v3901_v39 = vpop.f32.mrf.mxu1  ;;  %v1940_v58 = vadd.f32 %v4093_v53, %v1831_v43  ;;  %v2038_v13 = vadd.f32 %v2883_v62, %v1942_v22  ;;  %v1835_v62 = vadd.f32 %v3881_v23, %v1726_v32  ;;  %v1941_v8 = vadd.f32 %v3885_v10, %v1832_v14 }
 0x155   : > { %v2005_v15 = vpop.f32.mrf.mxu0  ;;  %v1946_v34 = vadd.f32 %v3890_v50, %v1837_v26  ;;  %v1727_v11 = vadd.f32 %v4099_v3, %v1631_v48  ;;  %v1947_v50 = vadd.f32 %v3901_v39, %v1838_v41 }
 0x156   : > { %v3908_v55 = vpop.f32.mrf.mxu1  ;;  %v2036_v57 = vadd.f32 %v2005_v15, %v1940_v58  ;;  %v1944_v23 = vadd.f32 %v3898_v17, %v1835_v62  ;;  %v3950_v17 = vld [vmem:[%s3988_s2] ss:$0 sm:$0xff] }
 0x157   : > { %v2884_v37 = vpop.f32.mrf.mxu0  ;;  %v1836_v54 = vadd.f32 %v3892_v6, %v1727_v11 }
 0x158   : > { %v2893_v20 = vpop.f32.mrf.mxu1  ;;  %v2039_v29 = vadd.f32 %v2884_v37, %v1943_v19 }
 0x159   : > { %v2008_v40 = vpop.f32.mrf.mxu0  ;;  %v2134_v60 = vadd.f32 %v2893_v20, %v2038_v13  ;;  %v1945_v30 = vadd.f32 %v3908_v55, %v1836_v54 }
 0x15a   : > { %v2101_v42 = vpop.f32.mrf.mxu1  ;;  %v2037_v20 = vadd.f32 %v2008_v40, %v1941_v8 }
 0x15b   : > { %v2887_v2 = vpop.f32.mrf.mxu0  ;;  %v2132_v24 = vadd.f32 %v2101_v42, %v2036_v57 }
 0x15c   : > { %v2894_v25 = vpop.f32.mrf.mxu1  ;;  %v2042_v37 = vadd.f32 %v2887_v2, %v1946_v34 }
 0x15d   : > { %v2021_v56 = vpop.f32.mrf.mxu0  ;;  %v2135_v5 = vadd.f32 %v2894_v25, %v2039_v29 }
 0x15e   : > { %v2104_v47 = vpop.f32.mrf.mxu1  ;;  %v2040_v16 = vadd.f32 %v2021_v56, %v1944_v23 }
 0x15f   : > { %v2888_v12 = vpop.f32.mrf.mxu0  ;;  %v2133_v27 = vadd.f32 %v2104_v47, %v2037_v20 }
 0x160   : > { %v2897_v44 = vpop.f32.mrf.mxu1  ;;  %v2043_v35 = vadd.f32 %v2888_v12, %v1947_v50 }
 0x161   : > { %v2024_v52 = vpop.f32.mrf.mxu0  ;;  %v2138_v59 = vadd.f32 %v2897_v44, %v2042_v37 }
 0x162   : > { %v2117_v51 = vpop.f32.mrf.mxu1  ;;  %v2041_v13 = vadd.f32 %v2024_v52, %v1945_v30 }
 0x163   : > { %v2903_v36 = vpop.f32.mrf.mxu0  ;;  %v2136_v56 = vadd.f32 %v2117_v51, %v2040_v16 }
 0x164   : > { %v2898_v49 = vpop.f32.mrf.mxu1  ;;  %v2243_v15 = vadd.f32 %v2903_v36, %v2134_v60 }
 0x165   : > { %v2210_v45 = vpop.f32.mrf.mxu0  ;;  %v2139_v58 = vadd.f32 %v2898_v49, %v2043_v35 }
 0x166   : > { %v2120_v7 = vpop.f32.mrf.mxu1  ;;  %v2241_v10 = vadd.f32 %v2210_v45, %v2132_v24 }
 0x167   : > { %v2904_v4 = vpop.f32.mrf.mxu0  ;;  %v2137_v63 = vadd.f32 %v2120_v7, %v2041_v13 }
 0x168   : > { %v2913_v42 = vpop.f32.mrf.mxu1  ;;  %v2244_v43 = vadd.f32 %v2904_v4, %v2135_v5 }
 0x169   : > { %v2352_v40 = vadd.f32 %v2913_v42, %v2243_v15  ;;  %v2213_v2 = vpop.f32.mrf.mxu0 }
 0x16a   : > { %v2319_v39 = vpop.f32.mrf.mxu1  ;;  %v2242_v46 = vadd.f32 %v2213_v2, %v2133_v27 }
 0x16b   : > { %v2367_v6 = vadd.f32 %v3950_v17, %v2352_v40  ;;  %v2350_v25 = vadd.f32 %v2319_v39, %v2241_v10  ;;  %v2907_v22 = vpop.f32.mrf.mxu0 }
 0x16c   : > { %v2914_v18 = vpop.f32.mrf.mxu1  ;;  %v2247_v21 = vadd.f32 %v2907_v22, %v2138_v59 }
 0x16d   : > { %vm2375_vm5 = vcmp.ge.f32.partialorder %v2367_v6, 0.0  ;;  %v2383_v38 = vmul.f32 0.2, %v2367_v6  ;;  %v2365_v1 = vadd.f32 %v3950_v17, %v2350_v25  ;;  %v2353_v53 = vadd.f32 %v2914_v18, %v2244_v43  ;;  %v2226_v47 = vpop.f32.mrf.mxu0 }
 0x16e   : > { %v2322_v12 = vpop.f32.mrf.mxu1  ;;  %v2245_v61 = vadd.f32 %v2226_v47, %v2136_v56 }
 0x16f   : > { %v2391_v55 = vsel %vm2375_vm5, %v2367_v6, %v2383_v38  ;;  %vm2373_vm7 = vcmp.ge.f32.partialorder %v2365_v1, 0.0  ;;  %v2381_v33 = vmul.f32 0.2, %v2365_v1  ;;  %v2368_v0 = vadd.f32 %v3950_v17, %v2353_v53  ;;  %v2908_v32 = vpop.f32.mrf.mxu0 }
 0x170   : > { %v2399_v31 = vpack.c.bf16 %v2391_v55, %v2391_v55  ;;  %v2351_v14 = vadd.f32 %v2322_v12, %v2242_v46  ;;  %v2917_v26 = vpop.f32.mrf.mxu1  ;;  %v2248_v44 = vadd.f32 %v2908_v32, %v2139_v58 }
 0x171   : > { %v2389_v19 = vsel %vm2373_vm7, %v2365_v1, %v2381_v33  ;;  %vm2376_vm8 = vcmp.ge.f32.partialorder %v2368_v0, 0.0  ;;  %v2384_v57 = vmul.f32 0.2, %v2368_v0  ;;  %v2356_v52 = vadd.f32 %v2917_v26, %v2247_v21  ;;  %v2229_v28 = vpop.f32.mrf.mxu0 }
 0x172   : > { %2408 = vst.msk [vmem:[%s3959_s4 + $0x8] sm:$0xf] %vm2405_vm6, %v2399_v31  ;;  %v2397_v9 = vpack.c.bf16 %v2389_v19, %v2389_v19  ;;  %v2366_v48 = vadd.f32 %v3950_v17, %v2351_v14  ;;  %v2335_v62 = vpop.f32.mrf.mxu1  ;;  %v2246_v41 = vadd.f32 %v2229_v28, %v2137_v63 }
 0x173   : > { %v2392_v51 = vsel %vm2376_vm8, %v2368_v0, %v2384_v57  ;;  %v2371_v60 = vadd.f32 %v3950_v17, %v2356_v52  ;;  %v2354_v29 = vadd.f32 %v2335_v62, %v2245_v61 }
 0x174   : > { %2406 = vst.msk [vmem:[%s3959_s4] sm:$0xf] %vm2405_vm6, %v2397_v9  ;;  %v2400_v36 = vpack.c.bf16 %v2392_v51, %v2392_v51  ;;  %vm2374_vm9 = vcmp.ge.f32.partialorder %v2366_v48, 0.0  ;;  %v2382_v8 = vmul.f32 0.2, %v2366_v48  ;;  %v2918_v34 = vpop.f32.mrf.mxu1 }
 0x175   : > { %vm2379_vm10 = vcmp.ge.f32.partialorder %v2371_v60, 0.0  ;;  %v2387_v49 = vmul.f32 0.2, %v2371_v60  ;;  %v2369_v24 = vadd.f32 %v3950_v17, %v2354_v29  ;;  %v2357_v15 = vadd.f32 %v2918_v34, %v2248_v44 }
 0x176   : > { %2409 = vst.msk [vmem:[%s3959_s4 + $0xc] sm:$0xf] %vm2405_vm6, %v2400_v36  ;;  %v2390_v45 = vsel %vm2374_vm9, %v2366_v48, %v2382_v8  ;;  %v2338_v20 = vpop.f32.mrf.mxu1 }
 0x177   : > { %v2398_v3 = vpack.c.bf16 %v2390_v45, %v2390_v45  ;;  %v2395_v11 = vsel %vm2379_vm10, %v2371_v60, %v2387_v49  ;;  %vm2377_vm11 = vcmp.ge.f32.partialorder %v2369_v24, 0.0  ;;  %v2385_v23 = vmul.f32 0.2, %v2369_v24 }
 0x178   : > { %v2403_v37 = vpack.c.bf16 %v2395_v11, %v2395_v11  ;;  %v2372_v7 = vadd.f32 %v3950_v17, %v2357_v15  ;;  %v2355_v5 = vadd.f32 %v2338_v20, %v2246_v41 }
 0x179   : > { %2407 = vst.msk [vmem:[%s3959_s4 + $0x4] sm:$0xf] %vm2405_vm6, %v2398_v3  ;;  %v2393_v10 = vsel %vm2377_vm11, %v2369_v24, %v2385_v23 }
 0x17a   : > { %2412 = vst.msk [vmem:[%s3959_s4 + $0x18] sm:$0xf] %vm2405_vm6, %v2403_v37  ;;  %v2401_v4 = vpack.c.bf16 %v2393_v10, %v2393_v10  ;;  %vm2380_vm12 = vcmp.ge.f32.partialorder %v2372_v7, 0.0  ;;  %v2388_v50 = vmul.f32 0.2, %v2372_v7  ;;  %v2370_v54 = vadd.f32 %v3950_v17, %v2355_v5 }
 0x17c   : > { %2410 = vst.msk [vmem:[%s3959_s4 + $0x10] sm:$0xf] %vm2405_vm6, %v2401_v4  ;;  %v2396_v16 = vsel %vm2380_vm12, %v2372_v7, %v2388_v50  ;;  %vm2378_vm13 = vcmp.ge.f32.partialorder %v2370_v54, 0.0  ;;  %v2386_v42 = vmul.f32 0.2, %v2370_v54 }
 0x17d   : > { %v2404_v40 = vpack.c.bf16 %v2396_v16, %v2396_v16 }
 0x17e   : > { %v2394_v43 = vsel %vm2378_vm13, %v2370_v54, %v2386_v42 }
 0x17f   : > { %2413 = vst.msk [vmem:[%s3959_s4 + $0x1c] sm:$0xf] %vm2405_vm6, %v2404_v40  ;;  %v2402_v2 = vpack.c.bf16 %v2394_v43, %v2394_v43 }
 0x181   : > { %2411 = vst.msk [vmem:[%s3959_s4 + $0x14] sm:$0xf] %vm2405_vm6, %v2402_v2 }
 0x182 PF: > { %s13_s12 = sadd.s32 1, %s2967_s12  }
 0x183   : > { %p10_p5 = scmp.ge.s32.totalorder %s13_s12, 4  }
 0x185   :  { %12 = sbr.rel (!%p10_p5) target bundleno = 1 (0x1), region = 80 }

// kernel: discriminator2_forward.7
= control target key start
LH: loop header
LB: loop body
LE: loop exit
PB: predicated region body
PF: predicated region fallthrough
CT: control target
= control target key end

     0   :  { %s1581_s20 = smov 0   ;;  %s1749_s0 = inlined_call_operand.vmem [shape: bf16[8,2,2,16], index: 0, kind: input, shape index: {}]   ;;  %s1750_s1 = inlined_call_operand.vmem [shape: bf16[16,16,32], index: 1, kind: input, shape index: {}]   ;;  %s1751_s2 = inlined_call_operand.vmem [shape: f32[1,32], index: 2, kind: input, shape index: {}]   ;;  %s1752_s3 = inlined_call_operand.vmem [shape: f32[1,32], index: 3, kind: input, shape index: {}]   ;;  %s1753_s4 = inlined_call_operand.<no memory space> [shape: f32[1,1], index: 4, kind: input, shape index: {}]   ;;  %s1754_s5 = inlined_call_operand.vmem [shape: f32[2,1,1], index: 5, kind: output, shape index: {}]  }
   0x1   :  { %v10_v0 = vstv %s1753_s4 }
   0x2   :  { %11 = vst [vmem:[#allocation2] sm:$0x1] %v10_v0 }
   0x3 LB: > { %s1587_s21 = sadd.s32 4294967295, %s1543_s20   ;;  %p1301_p0 = scmp.ge.s32.totalorder %s1543_s20, 1  ;;  %s1543_s20 = sphi %s1581_s20, %s17_s20  }
   0x4   : > { %p190_p1 = scmp.lt.s32.totalorder %s1543_s20, 3 }
   0x6   : > { %p191_p2 = pnand %p1301_p0, %p190_p1 }
   0x7   : > { %s1302_s25 = sshll.u32 (!%p191_p2), %s1587_s21, 2  ;;  %p222_p4 = scmp.lt.s32.totalorder (!%p191_p2), %s1587_s21, 1 }
   0x8   : > { %194 = sbr.rel (%p191_p2) target bundleno = 485 (0x1e5), region = 40  ;;  %p217_p3 = scmp.lt.s32.totalorder (!%p191_p2), %s1302_s25, 7 }
   0xd   : > { %v1513_v1 = vld [vmem:[%s1750_s1 + $0x8] sm:$0xff]   ;;  %v348_v2 = vlaneseq  ;;  %v1545_v3 = vmov 0.0   ;;  %v1514_v4 = vld [vmem:[%s1750_s1] sm:$0xff]   ;;  %vm1546_vm0 = vmmov 0   ;;  %v1547_v5 = vmov 1966171168  }
   0xe   : > { %1406 = vmatprep.subr.bf16.mxu0 %v1545_v3  ;;  %1412 = vmatprep.subr.bf16.mxu1 %v1545_v3  ;;  %v346_v6 = vunpack.c.l.s4 %v1547_v5  ;;  %s1756_s25 = smov (!%p217_p3, %s1302_s25), 7  ;;  %vm248_vm1 = vcmask 130048   ;;  %v1515_v9 = vld [vmem:[%s1750_s1 + $0x10] sm:$0xff]   ;;  %v1516_v11 = vld [vmem:[%s1750_s1 + $0x18] sm:$0xff]   ;;  %v1517_v20 = vld [vmem:[%s1750_s1 + $0x20] sm:$0xff]   ;;  %vm1236_vm2 = vcmask 253952  }
   0xf   : > { %1407 = vmatpush3.bf16.msra.mxu0 %v1513_v1  ;;  %1408 = vmatprep.mubr.msk.bf16.mxu0 %vm1546_vm0, %v1545_v3  ;;  %v349_v7 = vshrl.u32 %v348_v2, 7  ;;  %s1303_s28 = sshll.u32 %s1756_s25, 1  ;;  %v1518_v21 = vld [vmem:[%s1750_s1 + $0x28] sm:$0xff]   ;;  %v1519_v26 = vld [vmem:[%s1750_s1 + $0x30] sm:$0xff]   ;;  %v1520_v27 = vld [vmem:[%s1750_s1 + $0x38] sm:$0xff]   ;;  %s1758_s21 = smov (!%p222_p4, %s1587_s21), 1 }
  0x10   : > { %1413 = vmatpush3.bf16.msra.mxu1 %v1514_v4  ;;  %1414 = vmatprep.mubr.msk.bf16.mxu1 %vm1546_vm0, %v1545_v3  ;;  %v347_v8 = vunpack.c.0.s8 %v346_v6  ;;  %s1617_s8 = scalar_lea.vmem %s1749_s0, %s1303_s28  ;;  %v1521_v32 = vld [vmem:[%s1750_s1 + $0x40] sm:$0xff]   ;;  %v1522_v33 = vld [vmem:[%s1750_s1 + $0x48] sm:$0xff]   ;;  %v1523_v38 = vld [vmem:[%s1750_s1 + $0x50] sm:$0xff]   ;;  %s224_s15 = scalar_lea.vmem %s1754_s5, %s1758_s21  ;;  %vm1248_vm3 = vcmask 0  }
  0x11   : > { %1418 = vmatprep.subr.bf16.mxu0 %v1545_v3  ;;  %1424 = vmatprep.subr.bf16.mxu1 %v1545_v3  ;;  %v1304_v12 = vld [vmem:[%s1617_s8 + $0x2] sm:$0x1]  ;;  %v226_v13 = vld [vmem:[%s1617_s8] sm:$0x1]  ;;  %v1306_v22 = vld [vmem:[%s1617_s8 + $0x4] sm:$0x1] }
  0x12   : > { %v1609_v10 = vsub.s32 %v347_v8, %v349_v7  ;;  %1409 = vmatmul.mubr.msk.bf16.vlgmr.msra.gmra.mxu0 %vm248_vm1, %v1304_v12  ;;  %v1308_v23 = vld [vmem:[%s1617_s8 + $0x6] sm:$0x1]  ;;  %v227_v34 = vld [vmem:[%s1617_s8 + $0x1] sm:$0x1]  ;;  %v1305_v35 = vld [vmem:[%s1617_s8 + $0x3] sm:$0x1] }
  0x13   : > { %1415 = vmatmul.mubr.msk.bf16.vlgmr.msra.gmra.mxu1 %vm248_vm1, %v226_v13  ;;  %1419 = vmatpush3.bf16.msra.mxu0 %v1515_v9  ;;  %v1524_v39 = vld [vmem:[%s1750_s1 + $0x58] sm:$0xff]   ;;  %v1525_v44 = vld [vmem:[%s1750_s1 + $0x60] sm:$0xff]   ;;  %v1526_v45 = vld [vmem:[%s1750_s1 + $0x68] sm:$0xff]  }
  0x14   : > { %v422_v14 = vrot.slane %v1304_v12, %v1609_v10  ;;  %v351_v15 = vrot.slane %v226_v13, %v1609_v10  ;;  %1425 = vmatpush3.bf16.msra.mxu1 %v1516_v11  ;;  %1420 = vmatprep.mubr.msk.bf16.mxu0 %vm1546_vm0, %v1545_v3  ;;  %v599_v24 = vrot.slane %v1306_v22, %v1609_v10  ;;  %v1307_v46 = vld [vmem:[%s1617_s8 + $0x5] sm:$0x1]  ;;  %v1309_v47 = vld [vmem:[%s1617_s8 + $0x7] sm:$0x1]  ;;  %v1527_v50 = vld [vmem:[%s1750_s1 + $0x70] sm:$0xff]  }
  0x15   : > { %1426 = vmatprep.mubr.msk.bf16.mxu1 %vm1546_vm0, %v1545_v3  ;;  %1430 = vmatprep.subr.bf16.mxu0 %v1545_v3  ;;  %v670_v25 = vrot.slane %v1308_v23, %v1609_v10  ;;  %v847_v36 = vrot.slane %v227_v34, %v1609_v10  ;;  %v918_v37 = vrot.slane %v1305_v35, %v1609_v10  ;;  %v1528_v51 = vld [vmem:[%s1750_s1 + $0x78] sm:$0xff]  }
  0x16   : > { %v429_v16 = vrot.slane %v422_v14, %v1609_v10  ;;  %v358_v17 = vrot.slane %v351_v15, %v1609_v10  ;;  %1436 = vmatprep.subr.bf16.mxu1 %v1545_v3  ;;  %v606_v28 = vrot.slane %v599_v24, %v1609_v10  ;;  %v1095_v48 = vrot.slane %v1307_v46, %v1609_v10 }
  0x17   : > { %v677_v29 = vrot.slane %v670_v25, %v1609_v10  ;;  %v854_v40 = vrot.slane %v847_v36, %v1609_v10  ;;  %v925_v41 = vrot.slane %v918_v37, %v1609_v10  ;;  %v1166_v49 = vrot.slane %v1309_v47, %v1609_v10 }
  0x18   : > { %v431_v18 = vshrl.u32 %v429_v16, 16  ;;  %v360_v19 = vshrl.u32 %v358_v17, 16  ;;  %v608_v30 = vshrl.u32 %v606_v28, 16  ;;  %v1102_v52 = vrot.slane %v1095_v48, %v1609_v10 }
  0x19   : > { %v679_v31 = vshrl.u32 %v677_v29, 16  ;;  %v856_v42 = vshrl.u32 %v854_v40, 16  ;;  %v927_v43 = vshrl.u32 %v925_v41, 16  ;;  %v1173_v53 = vrot.slane %v1166_v49, %v1609_v10 }
  0x1a   : > { %1421 = vmatmul.mubr.msk.bf16.vlgmr.msra.gmra.mxu0 %vm248_vm1, %v360_v19  ;;  %v1104_v54 = vshrl.u32 %v1102_v52, 16 }
  0x1b   : > { %1427 = vmatmul.mubr.msk.bf16.vlgmr.msra.gmra.mxu1 %vm248_vm1, %v431_v18  ;;  %1431 = vmatpush3.bf16.msra.mxu0 %v1517_v20  ;;  %v1175_v55 = vshrl.u32 %v1173_v53, 16 }
  0x1c   : > { %1437 = vmatpush3.bf16.msra.mxu1 %v1518_v21  ;;  %1432 = vmatprep.mubr.msk.bf16.mxu0 %vm1546_vm0, %v1545_v3 }
  0x1d   : > { %1438 = vmatprep.mubr.msk.bf16.mxu1 %vm1546_vm0, %v1545_v3  ;;  %1442 = vmatprep.subr.bf16.mxu0 %v1545_v3 }
  0x1e   : > { %1448 = vmatprep.subr.bf16.mxu1 %v1545_v3 }
  0x22   : > { %1433 = vmatmul.mubr.msk.bf16.vlgmr.msra.gmra.mxu0 %vm248_vm1, %v1306_v22 }
  0x23   : > { %1439 = vmatmul.mubr.msk.bf16.vlgmr.msra.gmra.mxu1 %vm248_vm1, %v1308_v23  ;;  %1443 = vmatpush3.bf16.msra.mxu0 %v1519_v26 }
  0x24   : > { %1449 = vmatpush3.bf16.msra.mxu1 %v1520_v27  ;;  %1444 = vmatprep.mubr.msk.bf16.mxu0 %vm1546_vm0, %v1545_v3 }
  0x25   : > { %1450 = vmatprep.mubr.msk.bf16.mxu1 %vm1546_vm0, %v1545_v3  ;;  %1454 = vmatprep.subr.bf16.mxu0 %v1545_v3 }
  0x26   : > { %1460 = vmatprep.subr.bf16.mxu1 %v1545_v3 }
  0x2a   : > { %1445 = vmatmul.mubr.msk.bf16.vlgmr.msra.gmra.mxu0 %vm248_vm1, %v608_v30 }
  0x2b   : > { %1451 = vmatmul.mubr.msk.bf16.vlgmr.msra.gmra.mxu1 %vm248_vm1, %v679_v31  ;;  %1455 = vmatpush3.bf16.msra.mxu0 %v1521_v32 }
  0x2c   : > { %1461 = vmatpush3.bf16.msra.mxu1 %v1522_v33  ;;  %1456 = vmatprep.mubr.msk.bf16.mxu0 %vm1546_vm0, %v1545_v3 }
  0x2d   : > { %1462 = vmatprep.mubr.msk.bf16.mxu1 %vm1546_vm0, %v1545_v3  ;;  %1466 = vmatprep.subr.bf16.mxu0 %v1545_v3 }
  0x2e   : > { %1472 = vmatprep.subr.bf16.mxu1 %v1545_v3 }
  0x32   : > { %1457 = vmatmul.mubr.msk.bf16.vlgmr.msra.gmra.mxu0 %vm248_vm1, %v227_v34 }
  0x33   : > { %1463 = vmatmul.mubr.msk.bf16.vlgmr.msra.gmra.mxu1 %vm248_vm1, %v1305_v35  ;;  %1467 = vmatpush3.bf16.msra.mxu0 %v1523_v38 }
  0x34   : > { %1473 = vmatpush3.bf16.msra.mxu1 %v1524_v39  ;;  %1468 = vmatprep.mubr.msk.bf16.mxu0 %vm1546_vm0, %v1545_v3 }
  0x35   : > { %1474 = vmatprep.mubr.msk.bf16.mxu1 %vm1546_vm0, %v1545_v3  ;;  %1478 = vmatprep.subr.bf16.mxu0 %v1545_v3 }
  0x36   : > { %1484 = vmatprep.subr.bf16.mxu1 %v1545_v3 }
  0x3a   : > { %1469 = vmatmul.mubr.msk.bf16.vlgmr.msra.gmra.mxu0 %vm248_vm1, %v856_v42 }
  0x3b   : > { %1475 = vmatmul.mubr.msk.bf16.vlgmr.msra.gmra.mxu1 %vm248_vm1, %v927_v43  ;;  %1479 = vmatpush3.bf16.msra.mxu0 %v1525_v44 }
  0x3c   : > { %1485 = vmatpush3.bf16.msra.mxu1 %v1526_v45  ;;  %1480 = vmatprep.mubr.msk.bf16.mxu0 %vm1546_vm0, %v1545_v3 }
  0x3d   : > { %1486 = vmatprep.mubr.msk.bf16.mxu1 %vm1546_vm0, %v1545_v3  ;;  %1490 = vmatprep.subr.bf16.mxu0 %v1545_v3 }
  0x3e   : > { %1496 = vmatprep.subr.bf16.mxu1 %v1545_v3 }
  0x42   : > { %1481 = vmatmul.mubr.msk.bf16.vlgmr.msra.gmra.mxu0 %vm248_vm1, %v1307_v46 }
  0x43   : > { %1487 = vmatmul.mubr.msk.bf16.vlgmr.msra.gmra.mxu1 %vm248_vm1, %v1309_v47  ;;  %1491 = vmatpush3.bf16.msra.mxu0 %v1527_v50 }
  0x44   : > { %1497 = vmatpush3.bf16.msra.mxu1 %v1528_v51  ;;  %1492 = vmatprep.mubr.msk.bf16.mxu0 %vm1546_vm0, %v1545_v3 }
  0x45   : > { %1498 = vmatprep.mubr.msk.bf16.mxu1 %vm1546_vm0, %v1545_v3 }
  0x4a   : > { %1493 = vmatmul.mubr.msk.bf16.vlgmr.msra.gmra.mxu0 %vm248_vm1, %v1104_v54 }
  0x4b   : > { %1499 = vmatmul.mubr.msk.bf16.vlgmr.msra.gmra.mxu1 %vm248_vm1, %v1175_v55 }
  0xd2   : > { %v286_v56 = vpop.f32.mrf.mxu0 }
  0xd3   : > { %v335_v57 = vpop.f32.mrf.mxu1 }
  0xd4   : > { %v1410_v58 = vpop.f32.mrf.mxu0  ;;  %v336_v12 = vadd.f32 %v335_v57, %v286_v56 }
  0xd5   : > { %v1416_v59 = vpop.f32.mrf.mxu1 }
  0xd6   : > { %v289_v60 = vpop.f32.mrf.mxu0 }
  0xd7   : > { %v338_v61 = vpop.f32.mrf.mxu1 }
  0xd8   : > { %v1411_v62 = vpop.f32.mrf.mxu0 }
  0xd9   : > { %v1417_v63 = vpop.f32.mrf.mxu1 }
  0xda   : > { %v405_v0 = vpop.f32.mrf.mxu0 }
  0xdb   : > { %v476_v1 = vpop.f32.mrf.mxu1  ;;  %v411_v15 = vadd.f32 %v405_v0, %v336_v12  ;;  %v1227_v0 = vld [vmem:[%s1751_s2] sm:$0x1] }
  0xdc   : > { %v1422_v2 = vpop.f32.mrf.mxu0 }
  0xdd   : > { %v1428_v4 = vpop.f32.mrf.mxu1  ;;  %v482_v20 = vadd.f32 %v476_v1, %v411_v15 }
  0xde   : > { %v408_v5 = vpop.f32.mrf.mxu0 }
  0xdf   : > { %v479_v3 = vpop.f32.mrf.mxu1 }
  0xe0   : > { %v1423_v6 = vpop.f32.mrf.mxu0 }
  0xe1   : > { %v1429_v7 = vpop.f32.mrf.mxu1 }
  0xe2   : > { %v529_v8 = vpop.f32.mrf.mxu0 }
  0xe3   : > { %v582_v9 = vpop.f32.mrf.mxu1  ;;  %v535_v23 = vadd.f32 %v529_v8, %v482_v20 }
  0xe4   : > { %v1434_v10 = vpop.f32.mrf.mxu0 }
  0xe5   : > { %v1440_v11 = vpop.f32.mrf.mxu1  ;;  %v588_v28 = vadd.f32 %v582_v9, %v535_v23 }
  0xe6   : > { %v532_v13 = vpop.f32.mrf.mxu0 }
  0xe7   : > { %v585_v14 = vpop.f32.mrf.mxu1  ;;  %v1234_v13 = vld [vmem:[%s1752_s3] sm:$0x1] }
  0xe8   : > { %v1435_v16 = vpop.f32.mrf.mxu0 }
  0xe9   : > { %v1441_v17 = vpop.f32.mrf.mxu1 }
  0xea   : > { %v653_v18 = vpop.f32.mrf.mxu0  ;;  %v1241_v17 = vld [vmem:[#allocation2] sm:$0x1] }
  0xeb   : > { %v724_v19 = vpop.f32.mrf.mxu1  ;;  %v659_v31 = vadd.f32 %v653_v18, %v588_v28 }
  0xec   : > { %v1446_v21 = vpop.f32.mrf.mxu0 }
  0xed   : > { %v1452_v22 = vpop.f32.mrf.mxu1  ;;  %v730_v36 = vadd.f32 %v724_v19, %v659_v31 }
  0xee   : > { %v656_v24 = vpop.f32.mrf.mxu0 }
  0xef   : > { %v727_v25 = vpop.f32.mrf.mxu1 }
  0xf0   : > { %v1447_v26 = vpop.f32.mrf.mxu0 }
  0xf1   : > { %v1453_v27 = vpop.f32.mrf.mxu1 }
  0xf2   : > { %v777_v29 = vpop.f32.mrf.mxu0 }
  0xf3   : > { %v830_v30 = vpop.f32.mrf.mxu1  ;;  %v783_v39 = vadd.f32 %v777_v29, %v730_v36 }
  0xf4   : > { %v1458_v32 = vpop.f32.mrf.mxu0 }
  0xf5   : > { %v1464_v33 = vpop.f32.mrf.mxu1  ;;  %v836_v44 = vadd.f32 %v830_v30, %v783_v39 }
  0xf6   : > { %v780_v34 = vpop.f32.mrf.mxu0 }
  0xf7   : > { %v833_v35 = vpop.f32.mrf.mxu1 }
  0xf8   : > { %v1459_v37 = vpop.f32.mrf.mxu0 }
  0xf9   : > { %v1465_v38 = vpop.f32.mrf.mxu1 }
  0xfa   : > { %v901_v40 = vpop.f32.mrf.mxu0 }
  0xfb   : > { %v972_v41 = vpop.f32.mrf.mxu1  ;;  %v907_v47 = vadd.f32 %v901_v40, %v836_v44 }
  0xfc   : > { %v1470_v42 = vpop.f32.mrf.mxu0 }
  0xfd   : > { %v1476_v43 = vpop.f32.mrf.mxu1  ;;  %v978_v52 = vadd.f32 %v972_v41, %v907_v47 }
  0xfe   : > { %v904_v45 = vpop.f32.mrf.mxu0 }
  0xff   : > { %v975_v46 = vpop.f32.mrf.mxu1 }
 0x100   : > { %v1471_v48 = vpop.f32.mrf.mxu0 }
 0x101   : > { %v1477_v49 = vpop.f32.mrf.mxu1 }
 0x102   : > { %v1025_v50 = vpop.f32.mrf.mxu0 }
 0x103   : > { %v1078_v51 = vpop.f32.mrf.mxu1  ;;  %v1031_v55 = vadd.f32 %v1025_v50, %v978_v52 }
 0x104   : > { %v1482_v53 = vpop.f32.mrf.mxu0 }
 0x105   : > { %v1488_v54 = vpop.f32.mrf.mxu1  ;;  %v1084_v60 = vadd.f32 %v1078_v51, %v1031_v55 }
 0x106   : > { %v1028_v56 = vpop.f32.mrf.mxu0 }
 0x107   : > { %v1081_v57 = vpop.f32.mrf.mxu1 }
 0x108   : > { %v1483_v58 = vpop.f32.mrf.mxu0 }
 0x109   : > { %v1489_v59 = vpop.f32.mrf.mxu1 }
 0x10a   : > { %v1149_v61 = vpop.f32.mrf.mxu0 }
 0x10b   : > { %v1220_v62 = vpop.f32.mrf.mxu1  ;;  %v1155_v63 = vadd.f32 %v1149_v61, %v1084_v60 }
 0x10c   : > { %v1494_v1 = vpop.f32.mrf.mxu0 }
 0x10d   : > { %v1500_v2 = vpop.f32.mrf.mxu1  ;;  %v1226_v4 = vadd.f32 %v1220_v62, %v1155_v63 }
 0x10e   : > { %v1152_v5 = vpop.f32.mrf.mxu0 }
 0x10f   : > { %v1223_v3 = vpop.f32.mrf.mxu1  ;;  %v1228_v6 = vadd.f32 %v1227_v0, %v1226_v4 }
 0x110   : > { %v1495_v7 = vpop.f32.mrf.mxu0 }
 0x111   : > { %v1501_v8 = vpop.f32.mrf.mxu1  ;;  %v1229_v9 = vsub.f32 0.0, %v1228_v6 }
 0x113   : > { %v1230_v10 = vmul.f32 1.442695, %v1229_v9 }
 0x115   : > { %1529 = vpow2.f32 %v1230_v10 }
 0x122   : > { %v1530_v11 = vpop.eup %1529 }
 0x123   : > { %v1232_v12 = vadd.f32 1.0, %v1530_v11 }
 0x125   : > { %1531 = vrcp.f32 %v1232_v12 }
 0x132   : > { %v1532_v14 = vpop.eup %1531 }
 0x133   : > { %v1235_v15 = vmul.f32 %v1532_v14, %v1234_v13 }
 0x135   : > { %v1237_v16 = vsel %vm1236_vm2, %v1235_v15, 0.0 }
 0x136   : > { %1238 = vadd.xlane.f32.xlu0 %v1237_v16 }
 0x1bf   : > { %v1239_v18 = vpop.xlane.xlu0 %1238 }
 0x1c0   : > { %v1242_v19 = vadd.f32 %v1241_v17, %v1239_v18 }
 0x1c2   : > { %v1243_v20 = vsub.f32 0.0, %v1242_v19 }
 0x1c4   : > { %v1244_v21 = vmul.f32 1.442695, %v1243_v20 }
 0x1c6   : > { %1533 = vpow2.f32 %v1244_v21 }
 0x1d3   : > { %v1534_v22 = vpop.eup %1533 }
 0x1d4   : > { %v1246_v23 = vadd.f32 1.0, %v1534_v22 }
 0x1d6   : > { %1535 = vrcp.f32 %v1246_v23 }
 0x1e3   : > { %v1536_v24 = vpop.eup %1535 }
 0x1e4   : > { %1249 = vst.msk [vmem:[%s224_s15] sm:$0x1] %vm1248_vm3, %v1536_v24 }
 0x1e5 PF: > { %s17_s20 = sadd.s32 1, %s1543_s20  }
 0x1e6   : > { %p14_p5 = scmp.ge.s32.totalorder %s17_s20, 4  }
 0x1e8   :  { %16 = sbr.rel (!%p14_p5) target bundleno = 3 (0x3), region = 88 }

</bundles_post_ra>
